<compile_context>
chip_gen: v7x
topology: tpu7x:2x2x1
jax: 0.10.0
libtpu: 0.0.40
codegen_flags: <defaults>
</compile_context>

<pallas_src>
import functools

import jax
import jax.numpy as jnp
import numpy as np
from jax.experimental import pallas as pl
from jax.experimental.pallas import tpu as pltpu

_MASK_PAD = -1e9  # bias for padded keys (representable in bf16)


def _attention_kernel(*refs, num_head, key_dim, value_dim, key_scale, has_nb,
                      compute_dtype):
    """Grid point (b, h): head h of `block_b` batch slices; head axis is a reduction."""
    if has_nb:
        (q_ref, m_ref, bias_ref, nb_ref,
         wqg_ref, wkv_ref, gb_ref, wo_ref, ob_ref,
         out_ref, q_sc, k_sc, v_sc, g_sc) = refs
    else:
        (q_ref, m_ref, bias_ref,
         wqg_ref, wkv_ref, gb_ref, wo_ref, ob_ref,
         out_ref, q_sc, k_sc, v_sc, g_sc) = refs
        nb_ref = None

    h = pl.program_id(1)
    tb, n_q, _ = q_ref.shape
    _, n_k, _ = m_ref.shape
    out_dim = out_ref.shape[-1]
    H, kd, vd = num_head, key_dim, value_dim
    hk = H * kd
    cdt = compute_dtype

    # ---- h == 0: fused lane-dense projections, once per batch slab ------------------
    @pl.when(h == 0)
    def _project_and_init():
        xq = q_ref[...].reshape(tb * n_q, -1).astype(cdt)
        xm = m_ref[...].reshape(tb * n_k, -1).astype(cdt)
        qg = jnp.dot(xq, wqg_ref[...], preferred_element_type=jnp.float32)  # (tb*Nq, hk+hv)
        kv = jnp.dot(xm, wkv_ref[...], preferred_element_type=jnp.float32)  # (tb*Nk, hk+hv)
        gate = jax.nn.sigmoid(qg[:, hk:] + gb_ref[0])                       # (tb*Nq, hv) f32
        # Split into per-head scratch (leading head index) with static lane slices:
        # one relayout per batch slab instead of one per head per step.
        for hh in range(H):
            q_sc[hh] = (qg[:, hh * kd:(hh + 1) * kd] * key_scale
                        ).reshape(tb, n_q, kd).astype(cdt)
            k_sc[hh] = kv[:, hh * kd:(hh + 1) * kd].reshape(tb, n_k, kd).astype(cdt)
            v_sc[hh] = kv[:, hk + hh * vd: hk + (hh + 1) * vd
                          ].reshape(tb, n_k, vd).astype(cdt)
            g_sc[hh] = gate[:, hh * vd:(hh + 1) * vd].reshape(tb, n_q, vd)
        # Initialize the resident f32 output block with the output bias.
        out_ref[...] = (jnp.zeros((tb, n_q, out_dim), jnp.float32)
                        + ob_ref[...]).astype(out_ref.dtype)

    # ---- every step: attention for head h --------------------------------------------
    qh = q_sc[h]                                      # (tb, Nq, kd)
    kh = k_sc[h]                                      # (tb, Nk, kd)
    vh = v_sc[h]                                      # (tb, Nk, vd)
    gh = g_sc[h]                                      # (tb, Nq, vd) f32

    bias = bias_ref[...].astype(jnp.float32)          # (tb, Nq, Nk)
    if has_nb:
        bias = bias + nb_ref[...].astype(jnp.float32)[None, :, :]

    logits = jnp.einsum('bqd,bkd->bqk', qh, kh,
                        preferred_element_type=jnp.float32) + bias
    mmax = jnp.max(logits, axis=-1, keepdims=True)
    p = jnp.exp(logits - mmax)
    denom = jnp.sum(p, axis=-1, keepdims=True)
    # Unnormalized PV matmul; normalize + gate afterwards on the small (Nq, vd) result.
    pv = jnp.einsum('bqk,bkd->bqd', p.astype(cdt), vh,
                    preferred_element_type=jnp.float32)
    pv = pv * pl.reciprocal(denom, approx=True) * gh  # (tb, Nq, vd) f32

    # Per-head Wo partial sum, accumulated into the resident f32 output block.
    partial = jnp.dot(pv.reshape(tb * n_q, vd).astype(cdt), wo_ref[0],
                      preferred_element_type=jnp.float32)
    out_ref[...] = out_ref[...] + partial.reshape(tb, n_q, out_dim)


# --------------------------------------------------------------------------------------
# Wrapper helpers
# --------------------------------------------------------------------------------------
def _round_up(x, m):
    return ((x + m - 1) // m) * m


def _pad_axis(x, axis, target, value=0.0):
    pad = target - x.shape[axis]
    if pad <= 0:
        return x
    widths = [(0, 0)] * x.ndim
    widths[axis] = (0, pad)
    return jnp.pad(x, widths, constant_values=value)


def _vmem_capacity_bytes():
    """Physical VMEM per TensorCore; conservative (v7x-sized) fallback if query fails."""
    try:
        return int(pltpu.get_tpu_info().vmem_capacity_bytes)
    except Exception:
        return 64 << 20


def _estimate_vmem_bytes(block_b, n_q, n_k, c_q, c_m, num_head, kd, vd, out_dim,
                         in_itemsize, bias_itemsize, c_itemsize, has_nb,
                         single_buffer_consts):
    """Rough per-call VMEM footprint (pipeline buffers + persistent scratch + live values)."""
    hk, hv = num_head * kd, num_head * vd
    # Double-buffered pipeline blocks (q, m, bias in; f32 out).
    pipe = 2 * block_b * (n_q * c_q * in_itemsize + n_k * c_m * in_itemsize
                          + n_q * n_k * bias_itemsize + n_q * out_dim * 4)
    # Persistent per-head projection scratch.
    scratch = block_b * (n_q * hk * c_itemsize + n_k * hk * c_itemsize
                         + n_k * hv * c_itemsize + n_q * hv * 4)
    # Transient live values: ONE head's logits/p (f32) + h==0 projection slabs + gate.
    transient = block_b * (2 * n_q * n_k * 4
                           + (n_q + n_k) * (hk + hv) * 4
                           + n_q * hv * 4)
    # Constant-index inputs (weight slabs, biases, nonbatched bias) + per-head Wo.
    const_mult = 1 if single_buffer_consts else 2
    consts = (c_q + c_m) * (hk + hv) * c_itemsize + hv * 4 + out_dim * 4
    if has_nb:
        consts += n_q * n_k * bias_itemsize
    consts = const_mult * consts + 2 * vd * out_dim * c_itemsize
    return pipe + scratch + transient + consts


def _pick_block_b(batch, fits_fn, min_grid_steps=2):
    """Largest batch divisor whose footprint fits; prefer an even number of grid steps
    (keeps both v7x TensorCores busy on the 'parallel' batch axis)."""
    divisors = [d for d in range(1, batch + 1) if batch % d == 0]
    steps_needed = min(min_grid_steps, batch)
    cands = [d for d in divisors if batch // d >= steps_needed and fits_fn(d)]
    if not cands:
        cands = [d for d in divisors if fits_fn(d)] or [1]
    even = [d for d in cands if (batch // d) % 2 == 0]
    pool = even if even else cands
    return max(pool)


# --------------------------------------------------------------------------------------
# Public entry point
# --------------------------------------------------------------------------------------
def attention_forward(q_data, m_data, bias, params, num_head,
                      nonbatched_bias=None, block_b=None,
                      compute_dtype=jnp.bfloat16):
    """q_data: (B, Nq, Cq), m_data: (B, Nk, Cm), bias: (B, Nq, Nk) -> (B, Nq, out_dim) f32."""
    B, Nq, Cq = q_data.shape
    _, Nk, Cm = m_data.shape
    key_dim = params['query_w'].shape[-1]
    value_dim = params['value_w'].shape[-1]
    out_dim = params['output_w'].shape[-1]
    H = num_head
    hk, hv = H * key_dim, H * value_dim
    key_scale = float(key_dim) ** (-0.5)
    cdt = jnp.dtype(compute_dtype)
    has_nb = nonbatched_bias is not None

    # Pad Nq/Nk to multiples of 8 so the in-kernel reshapes are free views.
    Nq_p, Nk_p = _round_up(Nq, 8), _round_up(Nk, 8)
    if Nk_p != Nk:
        m_data = _pad_axis(m_data, 1, Nk_p)
        bias = _pad_axis(bias, 2, Nk_p, _MASK_PAD)
        if has_nb:
            nonbatched_bias = _pad_axis(nonbatched_bias, 1, Nk_p, 0.0)
    if Nq_p != Nq:
        q_data = _pad_axis(q_data, 1, Nq_p)
        bias = _pad_axis(bias, 1, Nq_p, 0.0)
        if has_nb:
            nonbatched_bias = _pad_axis(nonbatched_bias, 0, Nq_p, 0.0)

    # Fused weight slabs (host-side, weights only); bias streams in compute dtype.
    wqg = jnp.concatenate([params['query_w'].reshape(Cq, hk),
                           params['gating_w'].reshape(Cq, hv)], axis=1).astype(cdt)
    wkv = jnp.concatenate([params['key_w'].reshape(Cm, hk),
                           params['value_w'].reshape(Cm, hv)], axis=1).astype(cdt)
    gb = params['gating_b'].reshape(1, hv).astype(jnp.float32)
    wo = params['output_w'].astype(cdt)                      # (H, value_dim, out_dim)
    ob = params['output_b'].reshape(1, out_dim).astype(jnp.float32)
    bias = bias.astype(cdt)
    if has_nb:
        nonbatched_bias = nonbatched_bias.astype(cdt)

    # VMEM-budgeted batch tile (generation-aware); set vmem_limit_bytes to match.
    cap = _vmem_capacity_bytes()
    budget = int(0.75 * cap)
    in_isz = jnp.dtype(q_data.dtype).itemsize
    bias_isz = cdt.itemsize
    est = functools.partial(
        _estimate_vmem_bytes, n_q=Nq_p, n_k=Nk_p, c_q=Cq, c_m=Cm, num_head=H,
        kd=key_dim, vd=value_dim, out_dim=out_dim, in_itemsize=in_isz,
        bias_itemsize=bias_isz, c_itemsize=cdt.itemsize, has_nb=has_nb,
        single_buffer_consts=True)
    if block_b is None:
        block_b = _pick_block_b(B, lambda d: est(d) <= budget)
    assert B % block_b == 0, "batch must be divisible by block_b"
    grid = (B // block_b, H)
    vmem_limit = int(min(0.9 * cap, max(2 * est(block_b), 32 << 20)))

    # Cost estimate so XLA can schedule the surrounding graph around this custom call.
    flops = (2 * B * Nq_p * Cq * (hk + hv) + 2 * B * Nk_p * Cm * (hk + hv)
             + 2 * B * H * Nq_p * Nk_p * (key_dim + value_dim)
             + 2 * B * Nq_p * hv * out_dim)
    transcendentals = B * H * Nq_p * Nk_p + B * Nq_p * hv
    bytes_accessed = (q_data.size * in_isz + m_data.size * in_isz
                      + bias.size * bias_isz
                      + (wqg.size + wkv.size + wo.size) * cdt.itemsize
                      + (gb.size + ob.size) * 4
                      + (nonbatched_bias.size * bias_isz if has_nb else 0)
                      + B * Nq_p * out_dim * 4)
    cost = pl.CostEstimate(flops=int(flops), transcendentals=int(transcendentals),
                           bytes_accessed=int(bytes_accessed))

    kernel = functools.partial(
        _attention_kernel, num_head=H, key_dim=key_dim, value_dim=value_dim,
        key_scale=key_scale, has_nb=has_nb, compute_dtype=cdt)

    inputs = [q_data, m_data, bias]
    if has_nb:
        inputs.append(nonbatched_bias)
    inputs += [wqg, wkv, gb, wo, ob]

    def build_and_run(single_buffer_consts):
        const_kw = dict(pipeline_mode=pl.Buffered(1)) if single_buffer_consts else {}

        def const_spec(shape):
            nd = len(shape)
            return pl.BlockSpec(shape, lambda b, h: (0,) * nd, **const_kw)

        in_specs = [
            pl.BlockSpec((block_b, Nq_p, Cq), lambda b, h: (b, 0, 0)),    # q_data
            pl.BlockSpec((block_b, Nk_p, Cm), lambda b, h: (b, 0, 0)),    # m_data
            pl.BlockSpec((block_b, Nq_p, Nk_p), lambda b, h: (b, 0, 0)),  # bias
        ]
        if has_nb:
            in_specs.append(const_spec((Nq_p, Nk_p)))                     # nonbatched bias
        in_specs += [
            const_spec((Cq, hk + hv)),                                    # Wq | Wg
            const_spec((Cm, hk + hv)),                                    # Wk | Wv
            const_spec((1, hv)),                                          # gating bias
            pl.BlockSpec((1, value_dim, out_dim), lambda b, h: (h, 0, 0)),  # Wo (per head)
            const_spec((1, out_dim)),                                     # output bias
        ]
        return pl.pallas_call(
            kernel,
            out_shape=jax.ShapeDtypeStruct((B, Nq_p, out_dim), jnp.float32),
            grid=grid,
            in_specs=in_specs,
            out_specs=pl.BlockSpec((block_b, Nq_p, out_dim), lambda b, h: (b, 0, 0)),
            scratch_shapes=[
                pltpu.VMEM((H, block_b, Nq_p, key_dim), cdt),             # q per head
                pltpu.VMEM((H, block_b, Nk_p, key_dim), cdt),             # k per head
                pltpu.VMEM((H, block_b, Nk_p, value_dim), cdt),           # v per head
                pltpu.VMEM((H, block_b, Nq_p, value_dim), jnp.float32),   # gate per head
            ],
            compiler_params=pltpu.CompilerParams(
                dimension_semantics=("parallel", "arbitrary"),
                vmem_limit_bytes=vmem_limit),
            cost_estimate=cost,
        )(*inputs)

    try:
        out = build_and_run(True)
    except Exception:
        # pipeline_mode=pl.Buffered(1) not supported on this JAX build -> default buffering.
        out = build_and_run(False)

    return out[:, :Nq, :] if Nq_p != Nq else out


def reference_attention(q_data, m_data, bias, params, num_head, nonbatched_bias=None):
    """Pure-JAX mirror of the PyTorch Attention.forward, for verification."""
    hi = 'highest'
    key_dim = params['query_w'].shape[-1]
    key_scale = float(key_dim) ** (-0.5)
    q = jnp.einsum('bqa,ahc->bqhc', q_data, params['query_w'], precision=hi) * key_scale
    k = jnp.einsum('bka,ahc->bkhc', m_data, params['key_w'], precision=hi)
    v = jnp.einsum('bka,ahc->bkhc', m_data, params['value_w'], precision=hi)
    logits = jnp.einsum('bqhc,bkhc->bhqk', q, k, precision=hi) + bias[:, None, :, :]
    if nonbatched_bias is not None:
        logits = logits + nonbatched_bias[None, None, :, :]
    weights = jax.nn.softmax(logits, axis=-1)
    wa = jnp.einsum('bhqk,bkhc->bqhc', weights, v, precision=hi)
    gate = jax.nn.sigmoid(
        jnp.einsum('bqc,chv->bqhv', q_data, params['gating_w'], precision=hi)
        + params['gating_b'])
    wa = wa * gate
    out = jnp.einsum('bqhc,hco->bqo', wa, params['output_w'], precision=hi) + params['output_b']
    return out


if __name__ == "__main__":
    def run_case(B, Nq, Nk, q_dim, m_dim, H, out_dim, seed, compute_dtype, tol):
        key_dim = q_dim // H
        value_dim = m_dim // H
        keys = jax.random.split(jax.random.PRNGKey(seed), 10)
        q_data = jax.random.normal(keys[0], (B, Nq, q_dim), jnp.float32)
        m_data = jax.random.normal(keys[1], (B, Nk, m_dim), jnp.float32)
        mask = (jax.random.uniform(keys[2], (B, Nq, Nk)) > 0.2).astype(jnp.float32)
        bias = 1e9 * (mask - 1.0)                           # attention mask bias
        nb = 0.5 * jax.random.normal(keys[3], (Nq, Nk), jnp.float32)
        params = dict(
            query_w=0.05 * jax.random.normal(keys[4], (q_dim, H, key_dim), jnp.float32),
            key_w=0.05 * jax.random.normal(keys[5], (m_dim, H, key_dim), jnp.float32),
            value_w=0.05 * jax.random.normal(keys[6], (m_dim, H, value_dim), jnp.float32),
            gating_w=0.05 * jax.random.normal(keys[7], (q_dim, H, value_dim), jnp.float32),
            gating_b=jnp.ones((H, value_dim), jnp.float32),  # torch init: ones
            output_w=0.05 * jax.random.normal(keys[8], (H, value_dim, out_dim), jnp.float32),
            output_b=0.02 * jax.random.normal(keys[9], (out_dim,), jnp.float32),
        )
        ref = reference_attention(q_data, m_data, bias, params, H, nonbatched_bias=nb)
        out = attention_forward(q_data, m_data, bias, params, H, nonbatched_bias=nb,
                                compute_dtype=compute_dtype)
        out = jax.block_until_ready(out)
        np.testing.assert_allclose(np.asarray(out), np.asarray(ref), rtol=tol, atol=tol)

    # f32 compute path, aligned shapes.
    run_case(B=4, Nq=8, Nk=8, q_dim=32, m_dim=32, H=4, out_dim=32,
             seed=0, compute_dtype=jnp.float32, tol=2e-3)
    # bf16 compute path (default; f32 softmax stats + accumulation), aligned shapes.
    run_case(B=4, Nq=8, Nk=8, q_dim=32, m_dim=32, H=4, out_dim=32,
             seed=0, compute_dtype=jnp.bfloat16, tol=2e-2)
    # f32 compute path, non-multiple-of-8 Nq/Nk (exercises the wrapper padding).
    run_case(B=2, Nq=10, Nk=12, q_dim=32, m_dim=32, H=4, out_dim=32,
             seed=1, compute_dtype=jnp.float32, tol=2e-3)

    print("KERNEL_OK")
</pallas_src>

<mosaic_0001>
module attributes {stable_mosaic.version = 11 : i64} {
  func.func @_attention_kernel(%arg0: i32, %arg1: i32, %arg2: memref<2x8x32xf32, #tpu.memory_space<vmem>>, %arg3: memref<2x8x32xf32, #tpu.memory_space<vmem>>, %arg4: memref<2x8x8xf32, #tpu.memory_space<vmem>>, %arg5: memref<8x8xf32, #tpu.memory_space<vmem>>, %arg6: memref<32x64xf32, #tpu.memory_space<vmem>>, %arg7: memref<32x64xf32, #tpu.memory_space<vmem>>, %arg8: memref<1x32xf32, #tpu.memory_space<vmem>>, %arg9: memref<1x8x32xf32, #tpu.memory_space<vmem>>, %arg10: memref<1x32xf32, #tpu.memory_space<vmem>>, %arg11: memref<2x8x32xf32, #tpu.memory_space<vmem>>, %arg12: memref<4x2x8x8xf32, #tpu.memory_space<vmem>>, %arg13: memref<4x2x8x8xf32, #tpu.memory_space<vmem>>, %arg14: memref<4x2x8x8xf32, #tpu.memory_space<vmem>>, %arg15: memref<4x2x8x8xf32, #tpu.memory_space<vmem>>) attributes {dimension_semantics = [#tpu.dimension_semantics<parallel>, #tpu.dimension_semantics<arbitrary>], iteration_bounds = array<i64: 2, 4>, scalar_prefetch = 0 : i64, scratch_operands = 4 : i64, tpu.core_type = #tpu.core_type<tc>, window_params = [{transform_indices = @transform_0, window_bounds = array<i64: 2, 8, 32>}, {transform_indices = @transform_1, window_bounds = array<i64: 2, 8, 32>}, {transform_indices = @transform_2, window_bounds = array<i64: 2, 8, 8>}, {pipeline_mode = #tpu.pipeline_mode<synchronous>, transform_indices = @transform_3, window_bounds = array<i64: 8, 8>}, {pipeline_mode = #tpu.pipeline_mode<synchronous>, transform_indices = @transform_4, window_bounds = array<i64: 32, 64>}, {pipeline_mode = #tpu.pipeline_mode<synchronous>, transform_indices = @transform_5, window_bounds = array<i64: 32, 64>}, {pipeline_mode = #tpu.pipeline_mode<synchronous>, transform_indices = @transform_6, window_bounds = array<i64: 1, 32>}, {transform_indices = @transform_7, window_bounds = array<i64: 1, 8, 32>}, {pipeline_mode = #tpu.pipeline_mode<synchronous>, transform_indices = @transform_8, window_bounds = array<i64: 1, 32>}, {transform_indices = @transform_9, window_bounds = array<i64: 2, 8, 32>}]} {
    %c0_i32 = arith.constant 0 : i32
    %0 = arith.cmpi eq, %arg1, %c0_i32 : i32
    %1 = arith.extui %0 : i1 to i32
    %c0_i32_0 = arith.constant 0 : i32
    %2 = arith.cmpi ne, %1, %c0_i32_0 : i32
    scf.if %2 {
      %c0_30 = arith.constant 0 : index
      %c0_31 = arith.constant 0 : index
      %c0_32 = arith.constant 0 : index
      %42 = vector.load %arg2[%c0_30, %c0_31, %c0_32] : memref<2x8x32xf32, #tpu.memory_space<vmem>>, vector<2x8x32xf32>
      %43 = vector.shape_cast %42 : vector<2x8x32xf32> to vector<16x32xf32>
      %c0_33 = arith.constant 0 : index
      %c0_34 = arith.constant 0 : index
      %c0_35 = arith.constant 0 : index
      %44 = vector.load %arg3[%c0_33, %c0_34, %c0_35] : memref<2x8x32xf32, #tpu.memory_space<vmem>>, vector<2x8x32xf32>
      %45 = vector.shape_cast %44 : vector<2x8x32xf32> to vector<16x32xf32>
      %c0_36 = arith.constant 0 : index
      %c0_37 = arith.constant 0 : index
      %46 = vector.load %arg6[%c0_36, %c0_37] : memref<32x64xf32, #tpu.memory_space<vmem>>, vector<32x64xf32>
      %cst_38 = arith.constant dense<0.000000e+00> : vector<16x64xf32>
      %47 = tpu.matmul %43, %46, %cst_38 {dimension_numbers = #tpu.dot_dimension_numbers<[1], [0], [0], [1], [0, 0, 1, 1], [], []>} : vector<16x32xf32>, vector<32x64xf32>, vector<16x64xf32> -> vector<16x64xf32>
      %c0_39 = arith.constant 0 : index
      %c0_40 = arith.constant 0 : index
      %48 = vector.load %arg7[%c0_39, %c0_40] : memref<32x64xf32, #tpu.memory_space<vmem>>, vector<32x64xf32>
      %cst_41 = arith.constant dense<0.000000e+00> : vector<16x64xf32>
      %49 = tpu.matmul %45, %48, %cst_41 {dimension_numbers = #tpu.dot_dimension_numbers<[1], [0], [0], [1], [0, 0, 1, 1], [], []>} : vector<16x32xf32>, vector<32x64xf32>, vector<16x64xf32> -> vector<16x64xf32>
      %50 = vector.extract_strided_slice %47 {offsets = [0, 32], sizes = [16, 32], strides = [1, 1]} : vector<16x64xf32> to vector<16x32xf32>
      %c0_42 = arith.constant 0 : index
      %c0_43 = arith.constant 0 : index
      %51 = vector.load %arg8[%c0_42, %c0_43] : memref<1x32xf32, #tpu.memory_space<vmem>>, vector<1x32xf32>
      %52 = vector.shape_cast %51 : vector<1x32xf32> to vector<32xf32>
      %53 = vector.shape_cast %52 : vector<32xf32> to vector<1x32xf32>
      %54 = vector.broadcast %53 : vector<1x32xf32> to vector<16x32xf32>
      %55 = arith.addf %50, %54 : vector<16x32xf32>
      %56 = arith.negf %55 : vector<16x32xf32>
      %57 = math.exp %56 : vector<16x32xf32>
      %cst_44 = arith.constant 1.000000e+00 : f32
      %58 = vector.broadcast %cst_44 : f32 to vector<16x32xf32>
      %59 = arith.addf %58, %57 : vector<16x32xf32>
      %60 = arith.divf %58, %59 : vector<16x32xf32>
      %61 = vector.extract_strided_slice %47 {offsets = [0, 0], sizes = [16, 8], strides = [1, 1]} : vector<16x64xf32> to vector<16x8xf32>
      %cst_45 = arith.constant 0.353553385 : f32
      %62 = vector.broadcast %cst_45 : f32 to vector<16x8xf32>
      %63 = arith.mulf %61, %62 : vector<16x8xf32>
      %64 = vector.shape_cast %63 : vector<16x8xf32> to vector<2x8x8xf32>
      %c0_46 = arith.constant 0 : index
      %c0_47 = arith.constant 0 : index
      %c0_48 = arith.constant 0 : index
      %c0_49 = arith.constant 0 : index
      %65 = vector.load %arg12[%c0_46, %c0_47, %c0_48, %c0_49] : memref<4x2x8x8xf32, #tpu.memory_space<vmem>>, vector<1x2x8x8xf32>
      %66 = vector.shape_cast %65 : vector<1x2x8x8xf32> to vector<2x8x8xf32>
      %67 = vector.shape_cast %64 : vector<2x8x8xf32> to vector<1x2x8x8xf32>
      tpu.vector_store %arg12[%c0_46, %c0_47, %c0_48, %c0_49], %67 {strides = array<i32>} : memref<4x2x8x8xf32, #tpu.memory_space<vmem>>, vector<1x2x8x8xf32>,
      %68 = vector.extract_strided_slice %49 {offsets = [0, 0], sizes = [16, 8], strides = [1, 1]} : vector<16x64xf32> to vector<16x8xf32>
      %69 = vector.shape_cast %68 : vector<16x8xf32> to vector<2x8x8xf32>
      %c0_50 = arith.constant 0 : index
      %c0_51 = arith.constant 0 : index
      %c0_52 = arith.constant 0 : index
      %c0_53 = arith.constant 0 : index
      %70 = vector.load %arg13[%c0_50, %c0_51, %c0_52, %c0_53] : memref<4x2x8x8xf32, #tpu.memory_space<vmem>>, vector<1x2x8x8xf32>
      %71 = vector.shape_cast %70 : vector<1x2x8x8xf32> to vector<2x8x8xf32>
      %72 = vector.shape_cast %69 : vector<2x8x8xf32> to vector<1x2x8x8xf32>
      tpu.vector_store %arg13[%c0_50, %c0_51, %c0_52, %c0_53], %72 {strides = array<i32>} : memref<4x2x8x8xf32, #tpu.memory_space<vmem>>, vector<1x2x8x8xf32>,
      %73 = vector.extract_strided_slice %49 {offsets = [0, 32], sizes = [16, 8], strides = [1, 1]} : vector<16x64xf32> to vector<16x8xf32>
      %74 = vector.shape_cast %73 : vector<16x8xf32> to vector<2x8x8xf32>
      %c0_54 = arith.constant 0 : index
      %c0_55 = arith.constant 0 : index
      %c0_56 = arith.constant 0 : index
      %c0_57 = arith.constant 0 : index
      %75 = vector.load %arg14[%c0_54, %c0_55, %c0_56, %c0_57] : memref<4x2x8x8xf32, #tpu.memory_space<vmem>>, vector<1x2x8x8xf32>
      %76 = vector.shape_cast %75 : vector<1x2x8x8xf32> to vector<2x8x8xf32>
      %77 = vector.shape_cast %74 : vector<2x8x8xf32> to vector<1x2x8x8xf32>
      tpu.vector_store %arg14[%c0_54, %c0_55, %c0_56, %c0_57], %77 {strides = array<i32>} : memref<4x2x8x8xf32, #tpu.memory_space<vmem>>, vector<1x2x8x8xf32>,
      %78 = vector.extract_strided_slice %60 {offsets = [0, 0], sizes = [16, 8], strides = [1, 1]} : vector<16x32xf32> to vector<16x8xf32>
      %79 = vector.shape_cast %78 : vector<16x8xf32> to vector<2x8x8xf32>
      %c0_58 = arith.constant 0 : index
      %c0_59 = arith.constant 0 : index
      %c0_60 = arith.constant 0 : index
      %c0_61 = arith.constant 0 : index
      %80 = vector.load %arg15[%c0_58, %c0_59, %c0_60, %c0_61] : memref<4x2x8x8xf32, #tpu.memory_space<vmem>>, vector<1x2x8x8xf32>
      %81 = vector.shape_cast %80 : vector<1x2x8x8xf32> to vector<2x8x8xf32>
      %82 = vector.shape_cast %79 : vector<2x8x8xf32> to vector<1x2x8x8xf32>
      tpu.vector_store %arg15[%c0_58, %c0_59, %c0_60, %c0_61], %82 {strides = array<i32>} : memref<4x2x8x8xf32, #tpu.memory_space<vmem>>, vector<1x2x8x8xf32>,
      %83 = vector.extract_strided_slice %47 {offsets = [0, 8], sizes = [16, 8], strides = [1, 1]} : vector<16x64xf32> to vector<16x8xf32>
      %cst_62 = arith.constant 0.353553385 : f32
      %84 = vector.broadcast %cst_62 : f32 to vector<16x8xf32>
      %85 = arith.mulf %83, %84 : vector<16x8xf32>
      %86 = vector.shape_cast %85 : vector<16x8xf32> to vector<2x8x8xf32>
      %c1 = arith.constant 1 : index
      %c0_63 = arith.constant 0 : index
      %c0_64 = arith.constant 0 : index
      %c0_65 = arith.constant 0 : index
      %87 = vector.load %arg12[%c1, %c0_63, %c0_64, %c0_65] : memref<4x2x8x8xf32, #tpu.memory_space<vmem>>, vector<1x2x8x8xf32>
      %88 = vector.shape_cast %87 : vector<1x2x8x8xf32> to vector<2x8x8xf32>
      %89 = vector.shape_cast %86 : vector<2x8x8xf32> to vector<1x2x8x8xf32>
      tpu.vector_store %arg12[%c1, %c0_63, %c0_64, %c0_65], %89 {strides = array<i32>} : memref<4x2x8x8xf32, #tpu.memory_space<vmem>>, vector<1x2x8x8xf32>,
      %90 = vector.extract_strided_slice %49 {offsets = [0, 8], sizes = [16, 8], strides = [1, 1]} : vector<16x64xf32> to vector<16x8xf32>
      %91 = vector.shape_cast %90 : vector<16x8xf32> to vector<2x8x8xf32>
      %c1_66 = arith.constant 1 : index
      %c0_67 = arith.constant 0 : index
      %c0_68 = arith.constant 0 : index
      %c0_69 = arith.constant 0 : index
      %92 = vector.load %arg13[%c1_66, %c0_67, %c0_68, %c0_69] : memref<4x2x8x8xf32, #tpu.memory_space<vmem>>, vector<1x2x8x8xf32>
      %93 = vector.shape_cast %92 : vector<1x2x8x8xf32> to vector<2x8x8xf32>
      %94 = vector.shape_cast %91 : vector<2x8x8xf32> to vector<1x2x8x8xf32>
      tpu.vector_store %arg13[%c1_66, %c0_67, %c0_68, %c0_69], %94 {strides = array<i32>} : memref<4x2x8x8xf32, #tpu.memory_space<vmem>>, vector<1x2x8x8xf32>,
      %95 = vector.extract_strided_slice %49 {offsets = [0, 40], sizes = [16, 8], strides = [1, 1]} : vector<16x64xf32> to vector<16x8xf32>
      %96 = vector.shape_cast %95 : vector<16x8xf32> to vector<2x8x8xf32>
      %c1_70 = arith.constant 1 : index
      %c0_71 = arith.constant 0 : index
      %c0_72 = arith.constant 0 : index
      %c0_73 = arith.constant 0 : index
      %97 = vector.load %arg14[%c1_70, %c0_71, %c0_72, %c0_73] : memref<4x2x8x8xf32, #tpu.memory_space<vmem>>, vector<1x2x8x8xf32>
      %98 = vector.shape_cast %97 : vector<1x2x8x8xf32> to vector<2x8x8xf32>
      %99 = vector.shape_cast %96 : vector<2x8x8xf32> to vector<1x2x8x8xf32>
      tpu.vector_store %arg14[%c1_70, %c0_71, %c0_72, %c0_73], %99 {strides = array<i32>} : memref<4x2x8x8xf32, #tpu.memory_space<vmem>>, vector<1x2x8x8xf32>,
      %100 = vector.extract_strided_slice %60 {offsets = [0, 8], sizes = [16, 8], strides = [1, 1]} : vector<16x32xf32> to vector<16x8xf32>
      %101 = vector.shape_cast %100 : vector<16x8xf32> to vector<2x8x8xf32>
      %c1_74 = arith.constant 1 : index
      %c0_75 = arith.constant 0 : index
      %c0_76 = arith.constant 0 : index
      %c0_77 = arith.constant 0 : index
      %102 = vector.load %arg15[%c1_74, %c0_75, %c0_76, %c0_77] : memref<4x2x8x8xf32, #tpu.memory_space<vmem>>, vector<1x2x8x8xf32>
      %103 = vector.shape_cast %102 : vector<1x2x8x8xf32> to vector<2x8x8xf32>
      %104 = vector.shape_cast %101 : vector<2x8x8xf32> to vector<1x2x8x8xf32>
      tpu.vector_store %arg15[%c1_74, %c0_75, %c0_76, %c0_77], %104 {strides = array<i32>} : memref<4x2x8x8xf32, #tpu.memory_space<vmem>>, vector<1x2x8x8xf32>,
      %105 = vector.extract_strided_slice %47 {offsets = [0, 16], sizes = [16, 8], strides = [1, 1]} : vector<16x64xf32> to vector<16x8xf32>
      %cst_78 = arith.constant 0.353553385 : f32
      %106 = vector.broadcast %cst_78 : f32 to vector<16x8xf32>
      %107 = arith.mulf %105, %106 : vector<16x8xf32>
      %108 = vector.shape_cast %107 : vector<16x8xf32> to vector<2x8x8xf32>
      %c2 = arith.constant 2 : index
      %c0_79 = arith.constant 0 : index
      %c0_80 = arith.constant 0 : index
      %c0_81 = arith.constant 0 : index
      %109 = vector.load %arg12[%c2, %c0_79, %c0_80, %c0_81] : memref<4x2x8x8xf32, #tpu.memory_space<vmem>>, vector<1x2x8x8xf32>
      %110 = vector.shape_cast %109 : vector<1x2x8x8xf32> to vector<2x8x8xf32>
      %111 = vector.shape_cast %108 : vector<2x8x8xf32> to vector<1x2x8x8xf32>
      tpu.vector_store %arg12[%c2, %c0_79, %c0_80, %c0_81], %111 {strides = array<i32>} : memref<4x2x8x8xf32, #tpu.memory_space<vmem>>, vector<1x2x8x8xf32>,
      %112 = vector.extract_strided_slice %49 {offsets = [0, 16], sizes = [16, 8], strides = [1, 1]} : vector<16x64xf32> to vector<16x8xf32>
      %113 = vector.shape_cast %112 : vector<16x8xf32> to vector<2x8x8xf32>
      %c2_82 = arith.constant 2 : index
      %c0_83 = arith.constant 0 : index
      %c0_84 = arith.constant 0 : index
      %c0_85 = arith.constant 0 : index
      %114 = vector.load %arg13[%c2_82, %c0_83, %c0_84, %c0_85] : memref<4x2x8x8xf32, #tpu.memory_space<vmem>>, vector<1x2x8x8xf32>
      %115 = vector.shape_cast %114 : vector<1x2x8x8xf32> to vector<2x8x8xf32>
      %116 = vector.shape_cast %113 : vector<2x8x8xf32> to vector<1x2x8x8xf32>
      tpu.vector_store %arg13[%c2_82, %c0_83, %c0_84, %c0_85], %116 {strides = array<i32>} : memref<4x2x8x8xf32, #tpu.memory_space<vmem>>, vector<1x2x8x8xf32>,
      %117 = vector.extract_strided_slice %49 {offsets = [0, 48], sizes = [16, 8], strides = [1, 1]} : vector<16x64xf32> to vector<16x8xf32>
      %118 = vector.shape_cast %117 : vector<16x8xf32> to vector<2x8x8xf32>
      %c2_86 = arith.constant 2 : index
      %c0_87 = arith.constant 0 : index
      %c0_88 = arith.constant 0 : index
      %c0_89 = arith.constant 0 : index
      %119 = vector.load %arg14[%c2_86, %c0_87, %c0_88, %c0_89] : memref<4x2x8x8xf32, #tpu.memory_space<vmem>>, vector<1x2x8x8xf32>
      %120 = vector.shape_cast %119 : vector<1x2x8x8xf32> to vector<2x8x8xf32>
      %121 = vector.shape_cast %118 : vector<2x8x8xf32> to vector<1x2x8x8xf32>
      tpu.vector_store %arg14[%c2_86, %c0_87, %c0_88, %c0_89], %121 {strides = array<i32>} : memref<4x2x8x8xf32, #tpu.memory_space<vmem>>, vector<1x2x8x8xf32>,
      %122 = vector.extract_strided_slice %60 {offsets = [0, 16], sizes = [16, 8], strides = [1, 1]} : vector<16x32xf32> to vector<16x8xf32>
      %123 = vector.shape_cast %122 : vector<16x8xf32> to vector<2x8x8xf32>
      %c2_90 = arith.constant 2 : index
      %c0_91 = arith.constant 0 : index
      %c0_92 = arith.constant 0 : index
      %c0_93 = arith.constant 0 : index
      %124 = vector.load %arg15[%c2_90, %c0_91, %c0_92, %c0_93] : memref<4x2x8x8xf32, #tpu.memory_space<vmem>>, vector<1x2x8x8xf32>
      %125 = vector.shape_cast %124 : vector<1x2x8x8xf32> to vector<2x8x8xf32>
      %126 = vector.shape_cast %123 : vector<2x8x8xf32> to vector<1x2x8x8xf32>
      tpu.vector_store %arg15[%c2_90, %c0_91, %c0_92, %c0_93], %126 {strides = array<i32>} : memref<4x2x8x8xf32, #tpu.memory_space<vmem>>, vector<1x2x8x8xf32>,
      %127 = vector.extract_strided_slice %47 {offsets = [0, 24], sizes = [16, 8], strides = [1, 1]} : vector<16x64xf32> to vector<16x8xf32>
      %cst_94 = arith.constant 0.353553385 : f32
      %128 = vector.broadcast %cst_94 : f32 to vector<16x8xf32>
      %129 = arith.mulf %127, %128 : vector<16x8xf32>
      %130 = vector.shape_cast %129 : vector<16x8xf32> to vector<2x8x8xf32>
      %c3 = arith.constant 3 : index
      %c0_95 = arith.constant 0 : index
      %c0_96 = arith.constant 0 : index
      %c0_97 = arith.constant 0 : index
      %131 = vector.load %arg12[%c3, %c0_95, %c0_96, %c0_97] : memref<4x2x8x8xf32, #tpu.memory_space<vmem>>, vector<1x2x8x8xf32>
      %132 = vector.shape_cast %131 : vector<1x2x8x8xf32> to vector<2x8x8xf32>
      %133 = vector.shape_cast %130 : vector<2x8x8xf32> to vector<1x2x8x8xf32>
      tpu.vector_store %arg12[%c3, %c0_95, %c0_96, %c0_97], %133 {strides = array<i32>} : memref<4x2x8x8xf32, #tpu.memory_space<vmem>>, vector<1x2x8x8xf32>,
      %134 = vector.extract_strided_slice %49 {offsets = [0, 24], sizes = [16, 8], strides = [1, 1]} : vector<16x64xf32> to vector<16x8xf32>
      %135 = vector.shape_cast %134 : vector<16x8xf32> to vector<2x8x8xf32>
      %c3_98 = arith.constant 3 : index
      %c0_99 = arith.constant 0 : index
      %c0_100 = arith.constant 0 : index
      %c0_101 = arith.constant 0 : index
      %136 = vector.load %arg13[%c3_98, %c0_99, %c0_100, %c0_101] : memref<4x2x8x8xf32, #tpu.memory_space<vmem>>, vector<1x2x8x8xf32>
      %137 = vector.shape_cast %136 : vector<1x2x8x8xf32> to vector<2x8x8xf32>
      %138 = vector.shape_cast %135 : vector<2x8x8xf32> to vector<1x2x8x8xf32>
      tpu.vector_store %arg13[%c3_98, %c0_99, %c0_100, %c0_101], %138 {strides = array<i32>} : memref<4x2x8x8xf32, #tpu.memory_space<vmem>>, vector<1x2x8x8xf32>,
      %139 = vector.extract_strided_slice %49 {offsets = [0, 56], sizes = [16, 8], strides = [1, 1]} : vector<16x64xf32> to vector<16x8xf32>
      %140 = vector.shape_cast %139 : vector<16x8xf32> to vector<2x8x8xf32>
      %c3_102 = arith.constant 3 : index
      %c0_103 = arith.constant 0 : index
      %c0_104 = arith.constant 0 : index
      %c0_105 = arith.constant 0 : index
      %141 = vector.load %arg14[%c3_102, %c0_103, %c0_104, %c0_105] : memref<4x2x8x8xf32, #tpu.memory_space<vmem>>, vector<1x2x8x8xf32>
      %142 = vector.shape_cast %141 : vector<1x2x8x8xf32> to vector<2x8x8xf32>
      %143 = vector.shape_cast %140 : vector<2x8x8xf32> to vector<1x2x8x8xf32>
      tpu.vector_store %arg14[%c3_102, %c0_103, %c0_104, %c0_105], %143 {strides = array<i32>} : memref<4x2x8x8xf32, #tpu.memory_space<vmem>>, vector<1x2x8x8xf32>,
      %144 = vector.extract_strided_slice %60 {offsets = [0, 24], sizes = [16, 8], strides = [1, 1]} : vector<16x32xf32> to vector<16x8xf32>
      %145 = vector.shape_cast %144 : vector<16x8xf32> to vector<2x8x8xf32>
      %c3_106 = arith.constant 3 : index
      %c0_107 = arith.constant 0 : index
      %c0_108 = arith.constant 0 : index
      %c0_109 = arith.constant 0 : index
      %146 = vector.load %arg15[%c3_106, %c0_107, %c0_108, %c0_109] : memref<4x2x8x8xf32, #tpu.memory_space<vmem>>, vector<1x2x8x8xf32>
      %147 = vector.shape_cast %146 : vector<1x2x8x8xf32> to vector<2x8x8xf32>
      %148 = vector.shape_cast %145 : vector<2x8x8xf32> to vector<1x2x8x8xf32>
      tpu.vector_store %arg15[%c3_106, %c0_107, %c0_108, %c0_109], %148 {strides = array<i32>} : memref<4x2x8x8xf32, #tpu.memory_space<vmem>>, vector<1x2x8x8xf32>,
      %cst_110 = arith.constant 0.000000e+00 : f32
      %149 = vector.broadcast %cst_110 : f32 to vector<2x8x32xf32>
      %c0_111 = arith.constant 0 : index
      %c0_112 = arith.constant 0 : index
      %150 = vector.load %arg10[%c0_111, %c0_112] : memref<1x32xf32, #tpu.memory_space<vmem>>, vector<1x32xf32>
      %151 = vector.shape_cast %150 : vector<1x32xf32> to vector<1x1x32xf32>
      %152 = vector.broadcast %151 : vector<1x1x32xf32> to vector<2x8x32xf32>
      %153 = arith.addf %149, %152 : vector<2x8x32xf32>
      %c0_113 = arith.constant 0 : index
      %c0_114 = arith.constant 0 : index
      %c0_115 = arith.constant 0 : index
      %154 = vector.load %arg11[%c0_113, %c0_114, %c0_115] : memref<2x8x32xf32, #tpu.memory_space<vmem>>, vector<2x8x32xf32>
      tpu.vector_store %arg11[%c0_113, %c0_114, %c0_115], %153 {strides = array<i32>} : memref<2x8x32xf32, #tpu.memory_space<vmem>>, vector<2x8x32xf32>,
    } else {
    }
    %3 = arith.index_cast %arg1 : i32 to index
    %c0 = arith.constant 0 : index
    %c0_1 = arith.constant 0 : index
    %c0_2 = arith.constant 0 : index
    %4 = vector.load %arg12[%3, %c0, %c0_1, %c0_2] : memref<4x2x8x8xf32, #tpu.memory_space<vmem>>, vector<1x2x8x8xf32>
    %5 = vector.shape_cast %4 : vector<1x2x8x8xf32> to vector<2x8x8xf32>
    %6 = arith.index_cast %arg1 : i32 to index
    %c0_3 = arith.constant 0 : index
    %c0_4 = arith.constant 0 : index
    %c0_5 = arith.constant 0 : index
    %7 = vector.load %arg13[%6, %c0_3, %c0_4, %c0_5] : memref<4x2x8x8xf32, #tpu.memory_space<vmem>>, vector<1x2x8x8xf32>
    %8 = vector.shape_cast %7 : vector<1x2x8x8xf32> to vector<2x8x8xf32>
    %9 = arith.index_cast %arg1 : i32 to index
    %c0_6 = arith.constant 0 : index
    %c0_7 = arith.constant 0 : index
    %c0_8 = arith.constant 0 : index
    %10 = vector.load %arg14[%9, %c0_6, %c0_7, %c0_8] : memref<4x2x8x8xf32, #tpu.memory_space<vmem>>, vector<1x2x8x8xf32>
    %11 = vector.shape_cast %10 : vector<1x2x8x8xf32> to vector<2x8x8xf32>
    %12 = arith.index_cast %arg1 : i32 to index
    %c0_9 = arith.constant 0 : index
    %c0_10 = arith.constant 0 : index
    %c0_11 = arith.constant 0 : index
    %13 = vector.load %arg15[%12, %c0_9, %c0_10, %c0_11] : memref<4x2x8x8xf32, #tpu.memory_space<vmem>>, vector<1x2x8x8xf32>
    %14 = vector.shape_cast %13 : vector<1x2x8x8xf32> to vector<2x8x8xf32>
    %c0_12 = arith.constant 0 : index
    %c0_13 = arith.constant 0 : index
    %c0_14 = arith.constant 0 : index
    %15 = vector.load %arg4[%c0_12, %c0_13, %c0_14] : memref<2x8x8xf32, #tpu.memory_space<vmem>>, vector<2x8x8xf32>
    %c0_15 = arith.constant 0 : index
    %c0_16 = arith.constant 0 : index
    %16 = vector.load %arg5[%c0_15, %c0_16] : memref<8x8xf32, #tpu.memory_space<vmem>>, vector<8x8xf32>
    %17 = vector.shape_cast %16 : vector<8x8xf32> to vector<1x8x8xf32>
    %18 = vector.broadcast %17 : vector<1x8x8xf32> to vector<2x8x8xf32>
    %19 = arith.addf %15, %18 : vector<2x8x8xf32>
    "tpu.trace_start"() <{level = 10 : i32, message = "bqd,bkd->bqk"}> : () -> ()
    %cst = arith.constant dense<0.000000e+00> : vector<2x8x8xf32>
    %20 = tpu.matmul %5, %8, %cst {dimension_numbers = #tpu.dot_dimension_numbers<[2], [2], [1], [1], [0, 0, 0, 1, 1, 1], [0], [0]>} : vector<2x8x8xf32>, vector<2x8x8xf32>, vector<2x8x8xf32> -> vector<2x8x8xf32>
    "tpu.trace_stop"() : () -> ()
    %21 = arith.addf %20, %19 : vector<2x8x8xf32>
    %cst_17 = arith.constant dense<0xFF800000> : vector<2x8xf32>
    %22 = vector.multi_reduction <maximumf>, %21, %cst_17 [2] : vector<2x8x8xf32> to vector<2x8xf32>
    %23 = vector.shape_cast %22 : vector<2x8xf32> to vector<2x8x1xf32>
    %24 = vector.broadcast %23 : vector<2x8x1xf32> to vector<2x8x8xf32>
    %25 = arith.subf %21, %24 : vector<2x8x8xf32>
    %26 = math.exp %25 : vector<2x8x8xf32>
    %cst_18 = arith.constant dense<0.000000e+00> : vector<2x8xf32>
    %27 = vector.multi_reduction <add>, %26, %cst_18 [2] : vector<2x8x8xf32> to vector<2x8xf32>
    %28 = vector.shape_cast %27 : vector<2x8xf32> to vector<2x8x1xf32>
    "tpu.trace_start"() <{level = 10 : i32, message = "bqk,bkd->bqd"}> : () -> ()
    %cst_19 = arith.constant dense<0.000000e+00> : vector<2x8x8xf32>
    %29 = tpu.matmul %26, %11, %cst_19 {dimension_numbers = #tpu.dot_dimension_numbers<[2], [1], [1], [2], [0, 0, 0, 1, 1, 2], [0], [0]>} : vector<2x8x8xf32>, vector<2x8x8xf32>, vector<2x8x8xf32> -> vector<2x8x8xf32>
    "tpu.trace_stop"() : () -> ()
    %30 = tpu.reciprocal %28 {approx = true} : vector<2x8x1xf32> -> vector<2x8x1xf32>
    %31 = vector.broadcast %30 : vector<2x8x1xf32> to vector<2x8x8xf32>
    %32 = arith.mulf %29, %31 : vector<2x8x8xf32>
    %33 = arith.mulf %32, %14 : vector<2x8x8xf32>
    %34 = vector.shape_cast %33 : vector<2x8x8xf32> to vector<16x8xf32>
    %c0_20 = arith.constant 0 : index
    %c0_21 = arith.constant 0 : index
    %c0_22 = arith.constant 0 : index
    %35 = vector.load %arg9[%c0_20, %c0_21, %c0_22] : memref<1x8x32xf32, #tpu.memory_space<vmem>>, vector<1x8x32xf32>
    %36 = vector.shape_cast %35 : vector<1x8x32xf32> to vector<8x32xf32>
    %cst_23 = arith.constant dense<0.000000e+00> : vector<16x32xf32>
    %37 = tpu.matmul %34, %36, %cst_23 {dimension_numbers = #tpu.dot_dimension_numbers<[1], [0], [0], [1], [0, 0, 1, 1], [], []>} : vector<16x8xf32>, vector<8x32xf32>, vector<16x32xf32> -> vector<16x32xf32>
    %c0_24 = arith.constant 0 : index
    %c0_25 = arith.constant 0 : index
    %c0_26 = arith.constant 0 : index
    %38 = vector.load %arg11[%c0_24, %c0_25, %c0_26] : memref<2x8x32xf32, #tpu.memory_space<vmem>>, vector<2x8x32xf32>
    %39 = vector.shape_cast %37 : vector<16x32xf32> to vector<2x8x32xf32>
    %40 = arith.addf %38, %39 : vector<2x8x32xf32>
    %c0_27 = arith.constant 0 : index
    %c0_28 = arith.constant 0 : index
    %c0_29 = arith.constant 0 : index
    %41 = vector.load %arg11[%c0_27, %c0_28, %c0_29] : memref<2x8x32xf32, #tpu.memory_space<vmem>>, vector<2x8x32xf32>
    tpu.vector_store %arg11[%c0_27, %c0_28, %c0_29], %40 {strides = array<i32>} : memref<2x8x32xf32, #tpu.memory_space<vmem>>, vector<2x8x32xf32>,
    return
  }
  func.func @transform_0(%arg0: i32, %arg1: i32) -> (i32, i32, i32) {
    %c0_i32 = arith.constant 0 : i32
    %c0_i32_0 = arith.constant 0 : i32
    %c0_i32_1 = arith.constant 0 : i32
    return %arg0, %c0_i32, %c0_i32_0 : i32, i32, i32
  }
  func.func @transform_1(%arg0: i32, %arg1: i32) -> (i32, i32, i32) {
    %c0_i32 = arith.constant 0 : i32
    %c0_i32_0 = arith.constant 0 : i32
    %c0_i32_1 = arith.constant 0 : i32
    return %arg0, %c0_i32, %c0_i32_0 : i32, i32, i32
  }
  func.func @transform_2(%arg0: i32, %arg1: i32) -> (i32, i32, i32) {
    %c0_i32 = arith.constant 0 : i32
    %c0_i32_0 = arith.constant 0 : i32
    %c0_i32_1 = arith.constant 0 : i32
    return %arg0, %c0_i32, %c0_i32_0 : i32, i32, i32
  }
  func.func @transform_3(%arg0: i32, %arg1: i32) -> (i32, i32) {
    %c0_i32 = arith.constant 0 : i32
    %c0_i32_0 = arith.constant 0 : i32
    %c0_i32_1 = arith.constant 0 : i32
    return %c0_i32, %c0_i32_0 : i32, i32
  }
  func.func @transform_4(%arg0: i32, %arg1: i32) -> (i32, i32) {
    %c0_i32 = arith.constant 0 : i32
    %c0_i32_0 = arith.constant 0 : i32
    %c0_i32_1 = arith.constant 0 : i32
    return %c0_i32, %c0_i32_0 : i32, i32
  }
  func.func @transform_5(%arg0: i32, %arg1: i32) -> (i32, i32) {
    %c0_i32 = arith.constant 0 : i32
    %c0_i32_0 = arith.constant 0 : i32
    %c0_i32_1 = arith.constant 0 : i32
    return %c0_i32, %c0_i32_0 : i32, i32
  }
  func.func @transform_6(%arg0: i32, %arg1: i32) -> (i32, i32) {
    %c0_i32 = arith.constant 0 : i32
    %c0_i32_0 = arith.constant 0 : i32
    %c0_i32_1 = arith.constant 0 : i32
    return %c0_i32, %c0_i32_0 : i32, i32
  }
  func.func @transform_7(%arg0: i32, %arg1: i32) -> (i32, i32, i32) {
    %c0_i32 = arith.constant 0 : i32
    %c0_i32_0 = arith.constant 0 : i32
    %c0_i32_1 = arith.constant 0 : i32
    return %arg1, %c0_i32, %c0_i32_0 : i32, i32, i32
  }
  func.func @transform_8(%arg0: i32, %arg1: i32) -> (i32, i32) {
    %c0_i32 = arith.constant 0 : i32
    %c0_i32_0 = arith.constant 0 : i32
    %c0_i32_1 = arith.constant 0 : i32
    return %c0_i32, %c0_i32_0 : i32, i32
  }
  func.func @transform_9(%arg0: i32, %arg1: i32) -> (i32, i32, i32) {
    %c0_i32 = arith.constant 0 : i32
    %c0_i32_0 = arith.constant 0 : i32
    %c0_i32_1 = arith.constant 0 : i32
    return %arg0, %c0_i32, %c0_i32_0 : i32, i32, i32
  }
}

module attributes {stable_mosaic.version = 11 : i64} {
  func.func @_attention_kernel(%arg0: i32, %arg1: i32, %arg2: memref<2x8x32xf32, #tpu.memory_space<vmem>>, %arg3: memref<2x8x32xf32, #tpu.memory_space<vmem>>, %arg4: memref<2x8x8xf32, #tpu.memory_space<vmem>>, %arg5: memref<8x8xf32, #tpu.memory_space<vmem>>, %arg6: memref<32x64xf32, #tpu.memory_space<vmem>>, %arg7: memref<32x64xf32, #tpu.memory_space<vmem>>, %arg8: memref<1x32xf32, #tpu.memory_space<vmem>>, %arg9: memref<1x8x32xf32, #tpu.memory_space<vmem>>, %arg10: memref<1x32xf32, #tpu.memory_space<vmem>>, %arg11: memref<2x8x32xf32, #tpu.memory_space<vmem>>, %arg12: memref<4x2x8x8xf32, #tpu.memory_space<vmem>>, %arg13: memref<4x2x8x8xf32, #tpu.memory_space<vmem>>, %arg14: memref<4x2x8x8xf32, #tpu.memory_space<vmem>>, %arg15: memref<4x2x8x8xf32, #tpu.memory_space<vmem>>) attributes {dimension_semantics = [#tpu.dimension_semantics<parallel>, #tpu.dimension_semantics<arbitrary>], iteration_bounds = array<i64: 2, 4>, scalar_prefetch = 0 : i64, scratch_operands = 4 : i64, tpu.core_type = #tpu.core_type<tc>, window_params = [{transform_indices = @transform_0, window_bounds = array<i64: 2, 8, 32>}, {transform_indices = @transform_1, window_bounds = array<i64: 2, 8, 32>}, {transform_indices = @transform_2, window_bounds = array<i64: 2, 8, 8>}, {pipeline_mode = #tpu.pipeline_mode<synchronous>, transform_indices = @transform_3, window_bounds = array<i64: 8, 8>}, {pipeline_mode = #tpu.pipeline_mode<synchronous>, transform_indices = @transform_4, window_bounds = array<i64: 32, 64>}, {pipeline_mode = #tpu.pipeline_mode<synchronous>, transform_indices = @transform_5, window_bounds = array<i64: 32, 64>}, {pipeline_mode = #tpu.pipeline_mode<synchronous>, transform_indices = @transform_6, window_bounds = array<i64: 1, 32>}, {transform_indices = @transform_7, window_bounds = array<i64: 1, 8, 32>}, {pipeline_mode = #tpu.pipeline_mode<synchronous>, transform_indices = @transform_8, window_bounds = array<i64: 1, 32>}, {transform_indices = @transform_9, window_bounds = array<i64: 2, 8, 32>}]} {
    %c0_i32 = arith.constant 0 : i32
    %0 = arith.cmpi eq, %arg1, %c0_i32 : i32
    %1 = arith.extui %0 : i1 to i32
    %c0_i32_0 = arith.constant 0 : i32
    %2 = arith.cmpi ne, %1, %c0_i32_0 : i32
    scf.if %2 {
      %c0_30 = arith.constant 0 : index
      %c0_31 = arith.constant 0 : index
      %c0_32 = arith.constant 0 : index
      %42 = vector.load %arg2[%c0_30, %c0_31, %c0_32] : memref<2x8x32xf32, #tpu.memory_space<vmem>>, vector<2x8x32xf32>
      %43 = vector.shape_cast %42 : vector<2x8x32xf32> to vector<16x32xf32>
      %c0_33 = arith.constant 0 : index
      %c0_34 = arith.constant 0 : index
      %c0_35 = arith.constant 0 : index
      %44 = vector.load %arg3[%c0_33, %c0_34, %c0_35] : memref<2x8x32xf32, #tpu.memory_space<vmem>>, vector<2x8x32xf32>
      %45 = vector.shape_cast %44 : vector<2x8x32xf32> to vector<16x32xf32>
      %c0_36 = arith.constant 0 : index
      %c0_37 = arith.constant 0 : index
      %46 = vector.load %arg6[%c0_36, %c0_37] : memref<32x64xf32, #tpu.memory_space<vmem>>, vector<32x64xf32>
      %cst_38 = arith.constant dense<0.000000e+00> : vector<16x64xf32>
      %47 = tpu.matmul %43, %46, %cst_38 {dimension_numbers = #tpu.dot_dimension_numbers<[1], [0], [0], [1], [0, 0, 1, 1], [], []>} : vector<16x32xf32>, vector<32x64xf32>, vector<16x64xf32> -> vector<16x64xf32>
      %c0_39 = arith.constant 0 : index
      %c0_40 = arith.constant 0 : index
      %48 = vector.load %arg7[%c0_39, %c0_40] : memref<32x64xf32, #tpu.memory_space<vmem>>, vector<32x64xf32>
      %cst_41 = arith.constant dense<0.000000e+00> : vector<16x64xf32>
      %49 = tpu.matmul %45, %48, %cst_41 {dimension_numbers = #tpu.dot_dimension_numbers<[1], [0], [0], [1], [0, 0, 1, 1], [], []>} : vector<16x32xf32>, vector<32x64xf32>, vector<16x64xf32> -> vector<16x64xf32>
      %50 = vector.extract_strided_slice %47 {offsets = [0, 32], sizes = [16, 32], strides = [1, 1]} : vector<16x64xf32> to vector<16x32xf32>
      %c0_42 = arith.constant 0 : index
      %c0_43 = arith.constant 0 : index
      %51 = vector.load %arg8[%c0_42, %c0_43] : memref<1x32xf32, #tpu.memory_space<vmem>>, vector<1x32xf32>
      %52 = vector.shape_cast %51 : vector<1x32xf32> to vector<32xf32>
      %53 = vector.shape_cast %52 : vector<32xf32> to vector<1x32xf32>
      %54 = vector.broadcast %53 : vector<1x32xf32> to vector<16x32xf32>
      %55 = arith.addf %50, %54 : vector<16x32xf32>
      %56 = arith.negf %55 : vector<16x32xf32>
      %57 = math.exp %56 : vector<16x32xf32>
      %cst_44 = arith.constant 1.000000e+00 : f32
      %58 = vector.broadcast %cst_44 : f32 to vector<16x32xf32>
      %59 = arith.addf %58, %57 : vector<16x32xf32>
      %60 = arith.divf %58, %59 : vector<16x32xf32>
      %61 = vector.extract_strided_slice %47 {offsets = [0, 0], sizes = [16, 8], strides = [1, 1]} : vector<16x64xf32> to vector<16x8xf32>
      %cst_45 = arith.constant 0.353553385 : f32
      %62 = vector.broadcast %cst_45 : f32 to vector<16x8xf32>
      %63 = arith.mulf %61, %62 : vector<16x8xf32>
      %64 = vector.shape_cast %63 : vector<16x8xf32> to vector<2x8x8xf32>
      %c0_46 = arith.constant 0 : index
      %c0_47 = arith.constant 0 : index
      %c0_48 = arith.constant 0 : index
      %c0_49 = arith.constant 0 : index
      %65 = vector.load %arg12[%c0_46, %c0_47, %c0_48, %c0_49] : memref<4x2x8x8xf32, #tpu.memory_space<vmem>>, vector<1x2x8x8xf32>
      %66 = vector.shape_cast %65 : vector<1x2x8x8xf32> to vector<2x8x8xf32>
      %67 = vector.shape_cast %64 : vector<2x8x8xf32> to vector<1x2x8x8xf32>
      tpu.vector_store %arg12[%c0_46, %c0_47, %c0_48, %c0_49], %67 {strides = array<i32>} : memref<4x2x8x8xf32, #tpu.memory_space<vmem>>, vector<1x2x8x8xf32>,
      %68 = vector.extract_strided_slice %49 {offsets = [0, 0], sizes = [16, 8], strides = [1, 1]} : vector<16x64xf32> to vector<16x8xf32>
      %69 = vector.shape_cast %68 : vector<16x8xf32> to vector<2x8x8xf32>
      %c0_50 = arith.constant 0 : index
      %c0_51 = arith.constant 0 : index
      %c0_52 = arith.constant 0 : index
      %c0_53 = arith.constant 0 : index
      %70 = vector.load %arg13[%c0_50, %c0_51, %c0_52, %c0_53] : memref<4x2x8x8xf32, #tpu.memory_space<vmem>>, vector<1x2x8x8xf32>
      %71 = vector.shape_cast %70 : vector<1x2x8x8xf32> to vector<2x8x8xf32>
      %72 = vector.shape_cast %69 : vector<2x8x8xf32> to vector<1x2x8x8xf32>
      tpu.vector_store %arg13[%c0_50, %c0_51, %c0_52, %c0_53], %72 {strides = array<i32>} : memref<4x2x8x8xf32, #tpu.memory_space<vmem>>, vector<1x2x8x8xf32>,
      %73 = vector.extract_strided_slice %49 {offsets = [0, 32], sizes = [16, 8], strides = [1, 1]} : vector<16x64xf32> to vector<16x8xf32>
      %74 = vector.shape_cast %73 : vector<16x8xf32> to vector<2x8x8xf32>
      %c0_54 = arith.constant 0 : index
      %c0_55 = arith.constant 0 : index
      %c0_56 = arith.constant 0 : index
      %c0_57 = arith.constant 0 : index
      %75 = vector.load %arg14[%c0_54, %c0_55, %c0_56, %c0_57] : memref<4x2x8x8xf32, #tpu.memory_space<vmem>>, vector<1x2x8x8xf32>
      %76 = vector.shape_cast %75 : vector<1x2x8x8xf32> to vector<2x8x8xf32>
      %77 = vector.shape_cast %74 : vector<2x8x8xf32> to vector<1x2x8x8xf32>
      tpu.vector_store %arg14[%c0_54, %c0_55, %c0_56, %c0_57], %77 {strides = array<i32>} : memref<4x2x8x8xf32, #tpu.memory_space<vmem>>, vector<1x2x8x8xf32>,
      %78 = vector.extract_strided_slice %60 {offsets = [0, 0], sizes = [16, 8], strides = [1, 1]} : vector<16x32xf32> to vector<16x8xf32>
      %79 = vector.shape_cast %78 : vector<16x8xf32> to vector<2x8x8xf32>
      %c0_58 = arith.constant 0 : index
      %c0_59 = arith.constant 0 : index
      %c0_60 = arith.constant 0 : index
      %c0_61 = arith.constant 0 : index
      %80 = vector.load %arg15[%c0_58, %c0_59, %c0_60, %c0_61] : memref<4x2x8x8xf32, #tpu.memory_space<vmem>>, vector<1x2x8x8xf32>
      %81 = vector.shape_cast %80 : vector<1x2x8x8xf32> to vector<2x8x8xf32>
      %82 = vector.shape_cast %79 : vector<2x8x8xf32> to vector<1x2x8x8xf32>
      tpu.vector_store %arg15[%c0_58, %c0_59, %c0_60, %c0_61], %82 {strides = array<i32>} : memref<4x2x8x8xf32, #tpu.memory_space<vmem>>, vector<1x2x8x8xf32>,
      %83 = vector.extract_strided_slice %47 {offsets = [0, 8], sizes = [16, 8], strides = [1, 1]} : vector<16x64xf32> to vector<16x8xf32>
      %cst_62 = arith.constant 0.353553385 : f32
      %84 = vector.broadcast %cst_62 : f32 to vector<16x8xf32>
      %85 = arith.mulf %83, %84 : vector<16x8xf32>
      %86 = vector.shape_cast %85 : vector<16x8xf32> to vector<2x8x8xf32>
      %c1 = arith.constant 1 : index
      %c0_63 = arith.constant 0 : index
      %c0_64 = arith.constant 0 : index
      %c0_65 = arith.constant 0 : index
      %87 = vector.load %arg12[%c1, %c0_63, %c0_64, %c0_65] : memref<4x2x8x8xf32, #tpu.memory_space<vmem>>, vector<1x2x8x8xf32>
      %88 = vector.shape_cast %87 : vector<1x2x8x8xf32> to vector<2x8x8xf32>
      %89 = vector.shape_cast %86 : vector<2x8x8xf32> to vector<1x2x8x8xf32>
      tpu.vector_store %arg12[%c1, %c0_63, %c0_64, %c0_65], %89 {strides = array<i32>} : memref<4x2x8x8xf32, #tpu.memory_space<vmem>>, vector<1x2x8x8xf32>,
      %90 = vector.extract_strided_slice %49 {offsets = [0, 8], sizes = [16, 8], strides = [1, 1]} : vector<16x64xf32> to vector<16x8xf32>
      %91 = vector.shape_cast %90 : vector<16x8xf32> to vector<2x8x8xf32>
      %c1_66 = arith.constant 1 : index
      %c0_67 = arith.constant 0 : index
      %c0_68 = arith.constant 0 : index
      %c0_69 = arith.constant 0 : index
      %92 = vector.load %arg13[%c1_66, %c0_67, %c0_68, %c0_69] : memref<4x2x8x8xf32, #tpu.memory_space<vmem>>, vector<1x2x8x8xf32>
      %93 = vector.shape_cast %92 : vector<1x2x8x8xf32> to vector<2x8x8xf32>
      %94 = vector.shape_cast %91 : vector<2x8x8xf32> to vector<1x2x8x8xf32>
      tpu.vector_store %arg13[%c1_66, %c0_67, %c0_68, %c0_69], %94 {strides = array<i32>} : memref<4x2x8x8xf32, #tpu.memory_space<vmem>>, vector<1x2x8x8xf32>,
      %95 = vector.extract_strided_slice %49 {offsets = [0, 40], sizes = [16, 8], strides = [1, 1]} : vector<16x64xf32> to vector<16x8xf32>
      %96 = vector.shape_cast %95 : vector<16x8xf32> to vector<2x8x8xf32>
      %c1_70 = arith.constant 1 : index
      %c0_71 = arith.constant 0 : index
      %c0_72 = arith.constant 0 : index
      %c0_73 = arith.constant 0 : index
      %97 = vector.load %arg14[%c1_70, %c0_71, %c0_72, %c0_73] : memref<4x2x8x8xf32, #tpu.memory_space<vmem>>, vector<1x2x8x8xf32>
      %98 = vector.shape_cast %97 : vector<1x2x8x8xf32> to vector<2x8x8xf32>
      %99 = vector.shape_cast %96 : vector<2x8x8xf32> to vector<1x2x8x8xf32>
      tpu.vector_store %arg14[%c1_70, %c0_71, %c0_72, %c0_73], %99 {strides = array<i32>} : memref<4x2x8x8xf32, #tpu.memory_space<vmem>>, vector<1x2x8x8xf32>,
      %100 = vector.extract_strided_slice %60 {offsets = [0, 8], sizes = [16, 8], strides = [1, 1]} : vector<16x32xf32> to vector<16x8xf32>
      %101 = vector.shape_cast %100 : vector<16x8xf32> to vector<2x8x8xf32>
      %c1_74 = arith.constant 1 : index
      %c0_75 = arith.constant 0 : index
      %c0_76 = arith.constant 0 : index
      %c0_77 = arith.constant 0 : index
      %102 = vector.load %arg15[%c1_74, %c0_75, %c0_76, %c0_77] : memref<4x2x8x8xf32, #tpu.memory_space<vmem>>, vector<1x2x8x8xf32>
      %103 = vector.shape_cast %102 : vector<1x2x8x8xf32> to vector<2x8x8xf32>
      %104 = vector.shape_cast %101 : vector<2x8x8xf32> to vector<1x2x8x8xf32>
      tpu.vector_store %arg15[%c1_74, %c0_75, %c0_76, %c0_77], %104 {strides = array<i32>} : memref<4x2x8x8xf32, #tpu.memory_space<vmem>>, vector<1x2x8x8xf32>,
      %105 = vector.extract_strided_slice %47 {offsets = [0, 16], sizes = [16, 8], strides = [1, 1]} : vector<16x64xf32> to vector<16x8xf32>
      %cst_78 = arith.constant 0.353553385 : f32
      %106 = vector.broadcast %cst_78 : f32 to vector<16x8xf32>
      %107 = arith.mulf %105, %106 : vector<16x8xf32>
      %108 = vector.shape_cast %107 : vector<16x8xf32> to vector<2x8x8xf32>
      %c2 = arith.constant 2 : index
      %c0_79 = arith.constant 0 : index
      %c0_80 = arith.constant 0 : index
      %c0_81 = arith.constant 0 : index
      %109 = vector.load %arg12[%c2, %c0_79, %c0_80, %c0_81] : memref<4x2x8x8xf32, #tpu.memory_space<vmem>>, vector<1x2x8x8xf32>
      %110 = vector.shape_cast %109 : vector<1x2x8x8xf32> to vector<2x8x8xf32>
      %111 = vector.shape_cast %108 : vector<2x8x8xf32> to vector<1x2x8x8xf32>
      tpu.vector_store %arg12[%c2, %c0_79, %c0_80, %c0_81], %111 {strides = array<i32>} : memref<4x2x8x8xf32, #tpu.memory_space<vmem>>, vector<1x2x8x8xf32>,
      %112 = vector.extract_strided_slice %49 {offsets = [0, 16], sizes = [16, 8], strides = [1, 1]} : vector<16x64xf32> to vector<16x8xf32>
      %113 = vector.shape_cast %112 : vector<16x8xf32> to vector<2x8x8xf32>
      %c2_82 = arith.constant 2 : index
      %c0_83 = arith.constant 0 : index
      %c0_84 = arith.constant 0 : index
      %c0_85 = arith.constant 0 : index
      %114 = vector.load %arg13[%c2_82, %c0_83, %c0_84, %c0_85] : memref<4x2x8x8xf32, #tpu.memory_space<vmem>>, vector<1x2x8x8xf32>
      %115 = vector.shape_cast %114 : vector<1x2x8x8xf32> to vector<2x8x8xf32>
      %116 = vector.shape_cast %113 : vector<2x8x8xf32> to vector<1x2x8x8xf32>
      tpu.vector_store %arg13[%c2_82, %c0_83, %c0_84, %c0_85], %116 {strides = array<i32>} : memref<4x2x8x8xf32, #tpu.memory_space<vmem>>, vector<1x2x8x8xf32>,
      %117 = vector.extract_strided_slice %49 {offsets = [0, 48], sizes = [16, 8], strides = [1, 1]} : vector<16x64xf32> to vector<16x8xf32>
      %118 = vector.shape_cast %117 : vector<16x8xf32> to vector<2x8x8xf32>
      %c2_86 = arith.constant 2 : index
      %c0_87 = arith.constant 0 : index
      %c0_88 = arith.constant 0 : index
      %c0_89 = arith.constant 0 : index
      %119 = vector.load %arg14[%c2_86, %c0_87, %c0_88, %c0_89] : memref<4x2x8x8xf32, #tpu.memory_space<vmem>>, vector<1x2x8x8xf32>
      %120 = vector.shape_cast %119 : vector<1x2x8x8xf32> to vector<2x8x8xf32>
      %121 = vector.shape_cast %118 : vector<2x8x8xf32> to vector<1x2x8x8xf32>
      tpu.vector_store %arg14[%c2_86, %c0_87, %c0_88, %c0_89], %121 {strides = array<i32>} : memref<4x2x8x8xf32, #tpu.memory_space<vmem>>, vector<1x2x8x8xf32>,
      %122 = vector.extract_strided_slice %60 {offsets = [0, 16], sizes = [16, 8], strides = [1, 1]} : vector<16x32xf32> to vector<16x8xf32>
      %123 = vector.shape_cast %122 : vector<16x8xf32> to vector<2x8x8xf32>
      %c2_90 = arith.constant 2 : index
      %c0_91 = arith.constant 0 : index
      %c0_92 = arith.constant 0 : index
      %c0_93 = arith.constant 0 : index
      %124 = vector.load %arg15[%c2_90, %c0_91, %c0_92, %c0_93] : memref<4x2x8x8xf32, #tpu.memory_space<vmem>>, vector<1x2x8x8xf32>
      %125 = vector.shape_cast %124 : vector<1x2x8x8xf32> to vector<2x8x8xf32>
      %126 = vector.shape_cast %123 : vector<2x8x8xf32> to vector<1x2x8x8xf32>
      tpu.vector_store %arg15[%c2_90, %c0_91, %c0_92, %c0_93], %126 {strides = array<i32>} : memref<4x2x8x8xf32, #tpu.memory_space<vmem>>, vector<1x2x8x8xf32>,
      %127 = vector.extract_strided_slice %47 {offsets = [0, 24], sizes = [16, 8], strides = [1, 1]} : vector<16x64xf32> to vector<16x8xf32>
      %cst_94 = arith.constant 0.353553385 : f32
      %128 = vector.broadcast %cst_94 : f32 to vector<16x8xf32>
      %129 = arith.mulf %127, %128 : vector<16x8xf32>
      %130 = vector.shape_cast %129 : vector<16x8xf32> to vector<2x8x8xf32>
      %c3 = arith.constant 3 : index
      %c0_95 = arith.constant 0 : index
      %c0_96 = arith.constant 0 : index
      %c0_97 = arith.constant 0 : index
      %131 = vector.load %arg12[%c3, %c0_95, %c0_96, %c0_97] : memref<4x2x8x8xf32, #tpu.memory_space<vmem>>, vector<1x2x8x8xf32>
      %132 = vector.shape_cast %131 : vector<1x2x8x8xf32> to vector<2x8x8xf32>
      %133 = vector.shape_cast %130 : vector<2x8x8xf32> to vector<1x2x8x8xf32>
      tpu.vector_store %arg12[%c3, %c0_95, %c0_96, %c0_97], %133 {strides = array<i32>} : memref<4x2x8x8xf32, #tpu.memory_space<vmem>>, vector<1x2x8x8xf32>,
      %134 = vector.extract_strided_slice %49 {offsets = [0, 24], sizes = [16, 8], strides = [1, 1]} : vector<16x64xf32> to vector<16x8xf32>
      %135 = vector.shape_cast %134 : vector<16x8xf32> to vector<2x8x8xf32>
      %c3_98 = arith.constant 3 : index
      %c0_99 = arith.constant 0 : index
      %c0_100 = arith.constant 0 : index
      %c0_101 = arith.constant 0 : index
      %136 = vector.load %arg13[%c3_98, %c0_99, %c0_100, %c0_101] : memref<4x2x8x8xf32, #tpu.memory_space<vmem>>, vector<1x2x8x8xf32>
      %137 = vector.shape_cast %136 : vector<1x2x8x8xf32> to vector<2x8x8xf32>
      %138 = vector.shape_cast %135 : vector<2x8x8xf32> to vector<1x2x8x8xf32>
      tpu.vector_store %arg13[%c3_98, %c0_99, %c0_100, %c0_101], %138 {strides = array<i32>} : memref<4x2x8x8xf32, #tpu.memory_space<vmem>>, vector<1x2x8x8xf32>,
      %139 = vector.extract_strided_slice %49 {offsets = [0, 56], sizes = [16, 8], strides = [1, 1]} : vector<16x64xf32> to vector<16x8xf32>
      %140 = vector.shape_cast %139 : vector<16x8xf32> to vector<2x8x8xf32>
      %c3_102 = arith.constant 3 : index
      %c0_103 = arith.constant 0 : index
      %c0_104 = arith.constant 0 : index
      %c0_105 = arith.constant 0 : index
      %141 = vector.load %arg14[%c3_102, %c0_103, %c0_104, %c0_105] : memref<4x2x8x8xf32, #tpu.memory_space<vmem>>, vector<1x2x8x8xf32>
      %142 = vector.shape_cast %141 : vector<1x2x8x8xf32> to vector<2x8x8xf32>
      %143 = vector.shape_cast %140 : vector<2x8x8xf32> to vector<1x2x8x8xf32>
      tpu.vector_store %arg14[%c3_102, %c0_103, %c0_104, %c0_105], %143 {strides = array<i32>} : memref<4x2x8x8xf32, #tpu.memory_space<vmem>>, vector<1x2x8x8xf32>,
      %144 = vector.extract_strided_slice %60 {offsets = [0, 24], sizes = [16, 8], strides = [1, 1]} : vector<16x32xf32> to vector<16x8xf32>
      %145 = vector.shape_cast %144 : vector<16x8xf32> to vector<2x8x8xf32>
      %c3_106 = arith.constant 3 : index
      %c0_107 = arith.constant 0 : index
      %c0_108 = arith.constant 0 : index
      %c0_109 = arith.constant 0 : index
      %146 = vector.load %arg15[%c3_106, %c0_107, %c0_108, %c0_109] : memref<4x2x8x8xf32, #tpu.memory_space<vmem>>, vector<1x2x8x8xf32>
      %147 = vector.shape_cast %146 : vector<1x2x8x8xf32> to vector<2x8x8xf32>
      %148 = vector.shape_cast %145 : vector<2x8x8xf32> to vector<1x2x8x8xf32>
      tpu.vector_store %arg15[%c3_106, %c0_107, %c0_108, %c0_109], %148 {strides = array<i32>} : memref<4x2x8x8xf32, #tpu.memory_space<vmem>>, vector<1x2x8x8xf32>,
      %cst_110 = arith.constant 0.000000e+00 : f32
      %149 = vector.broadcast %cst_110 : f32 to vector<2x8x32xf32>
      %c0_111 = arith.constant 0 : index
      %c0_112 = arith.constant 0 : index
      %150 = vector.load %arg10[%c0_111, %c0_112] : memref<1x32xf32, #tpu.memory_space<vmem>>, vector<1x32xf32>
      %151 = vector.shape_cast %150 : vector<1x32xf32> to vector<1x1x32xf32>
      %152 = vector.broadcast %151 : vector<1x1x32xf32> to vector<2x8x32xf32>
      %153 = arith.addf %149, %152 : vector<2x8x32xf32>
      %c0_113 = arith.constant 0 : index
      %c0_114 = arith.constant 0 : index
      %c0_115 = arith.constant 0 : index
      %154 = vector.load %arg11[%c0_113, %c0_114, %c0_115] : memref<2x8x32xf32, #tpu.memory_space<vmem>>, vector<2x8x32xf32>
      tpu.vector_store %arg11[%c0_113, %c0_114, %c0_115], %153 {strides = array<i32>} : memref<2x8x32xf32, #tpu.memory_space<vmem>>, vector<2x8x32xf32>,
    } else {
    }
    %3 = arith.index_cast %arg1 : i32 to index
    %c0 = arith.constant 0 : index
    %c0_1 = arith.constant 0 : index
    %c0_2 = arith.constant 0 : index
    %4 = vector.load %arg12[%3, %c0, %c0_1, %c0_2] : memref<4x2x8x8xf32, #tpu.memory_space<vmem>>, vector<1x2x8x8xf32>
    %5 = vector.shape_cast %4 : vector<1x2x8x8xf32> to vector<2x8x8xf32>
    %6 = arith.index_cast %arg1 : i32 to index
    %c0_3 = arith.constant 0 : index
    %c0_4 = arith.constant 0 : index
    %c0_5 = arith.constant 0 : index
    %7 = vector.load %arg13[%6, %c0_3, %c0_4, %c0_5] : memref<4x2x8x8xf32, #tpu.memory_space<vmem>>, vector<1x2x8x8xf32>
    %8 = vector.shape_cast %7 : vector<1x2x8x8xf32> to vector<2x8x8xf32>
    %9 = arith.index_cast %arg1 : i32 to index
    %c0_6 = arith.constant 0 : index
    %c0_7 = arith.constant 0 : index
    %c0_8 = arith.constant 0 : index
    %10 = vector.load %arg14[%9, %c0_6, %c0_7, %c0_8] : memref<4x2x8x8xf32, #tpu.memory_space<vmem>>, vector<1x2x8x8xf32>
    %11 = vector.shape_cast %10 : vector<1x2x8x8xf32> to vector<2x8x8xf32>
    %12 = arith.index_cast %arg1 : i32 to index
    %c0_9 = arith.constant 0 : index
    %c0_10 = arith.constant 0 : index
    %c0_11 = arith.constant 0 : index
    %13 = vector.load %arg15[%12, %c0_9, %c0_10, %c0_11] : memref<4x2x8x8xf32, #tpu.memory_space<vmem>>, vector<1x2x8x8xf32>
    %14 = vector.shape_cast %13 : vector<1x2x8x8xf32> to vector<2x8x8xf32>
    %c0_12 = arith.constant 0 : index
    %c0_13 = arith.constant 0 : index
    %c0_14 = arith.constant 0 : index
    %15 = vector.load %arg4[%c0_12, %c0_13, %c0_14] : memref<2x8x8xf32, #tpu.memory_space<vmem>>, vector<2x8x8xf32>
    %c0_15 = arith.constant 0 : index
    %c0_16 = arith.constant 0 : index
    %16 = vector.load %arg5[%c0_15, %c0_16] : memref<8x8xf32, #tpu.memory_space<vmem>>, vector<8x8xf32>
    %17 = vector.shape_cast %16 : vector<8x8xf32> to vector<1x8x8xf32>
    %18 = vector.broadcast %17 : vector<1x8x8xf32> to vector<2x8x8xf32>
    %19 = arith.addf %15, %18 : vector<2x8x8xf32>
    "tpu.trace_start"() <{level = 10 : i32, message = "bqd,bkd->bqk"}> : () -> ()
    %cst = arith.constant dense<0.000000e+00> : vector<2x8x8xf32>
    %20 = tpu.matmul %5, %8, %cst {dimension_numbers = #tpu.dot_dimension_numbers<[2], [2], [1], [1], [0, 0, 0, 1, 1, 1], [0], [0]>} : vector<2x8x8xf32>, vector<2x8x8xf32>, vector<2x8x8xf32> -> vector<2x8x8xf32>
    "tpu.trace_stop"() : () -> ()
    %21 = arith.addf %20, %19 : vector<2x8x8xf32>
    %cst_17 = arith.constant dense<0xFF800000> : vector<2x8xf32>
    %22 = vector.multi_reduction <maximumf>, %21, %cst_17 [2] : vector<2x8x8xf32> to vector<2x8xf32>
    %23 = vector.shape_cast %22 : vector<2x8xf32> to vector<2x8x1xf32>
    %24 = vector.broadcast %23 : vector<2x8x1xf32> to vector<2x8x8xf32>
    %25 = arith.subf %21, %24 : vector<2x8x8xf32>
    %26 = math.exp %25 : vector<2x8x8xf32>
    %cst_18 = arith.constant dense<0.000000e+00> : vector<2x8xf32>
    %27 = vector.multi_reduction <add>, %26, %cst_18 [2] : vector<2x8x8xf32> to vector<2x8xf32>
    %28 = vector.shape_cast %27 : vector<2x8xf32> to vector<2x8x1xf32>
    "tpu.trace_start"() <{level = 10 : i32, message = "bqk,bkd->bqd"}> : () -> ()
    %cst_19 = arith.constant dense<0.000000e+00> : vector<2x8x8xf32>
    %29 = tpu.matmul %26, %11, %cst_19 {dimension_numbers = #tpu.dot_dimension_numbers<[2], [1], [1], [2], [0, 0, 0, 1, 1, 2], [0], [0]>} : vector<2x8x8xf32>, vector<2x8x8xf32>, vector<2x8x8xf32> -> vector<2x8x8xf32>
    "tpu.trace_stop"() : () -> ()
    %30 = tpu.reciprocal %28 {approx = true} : vector<2x8x1xf32> -> vector<2x8x1xf32>
    %31 = vector.broadcast %30 : vector<2x8x1xf32> to vector<2x8x8xf32>
    %32 = arith.mulf %29, %31 : vector<2x8x8xf32>
    %33 = arith.mulf %32, %14 : vector<2x8x8xf32>
    %34 = vector.shape_cast %33 : vector<2x8x8xf32> to vector<16x8xf32>
    %c0_20 = arith.constant 0 : index
    %c0_21 = arith.constant 0 : index
    %c0_22 = arith.constant 0 : index
    %35 = vector.load %arg9[%c0_20, %c0_21, %c0_22] : memref<1x8x32xf32, #tpu.memory_space<vmem>>, vector<1x8x32xf32>
    %36 = vector.shape_cast %35 : vector<1x8x32xf32> to vector<8x32xf32>
    %cst_23 = arith.constant dense<0.000000e+00> : vector<16x32xf32>
    %37 = tpu.matmul %34, %36, %cst_23 {dimension_numbers = #tpu.dot_dimension_numbers<[1], [0], [0], [1], [0, 0, 1, 1], [], []>} : vector<16x8xf32>, vector<8x32xf32>, vector<16x32xf32> -> vector<16x32xf32>
    %c0_24 = arith.constant 0 : index
    %c0_25 = arith.constant 0 : index
    %c0_26 = arith.constant 0 : index
    %38 = vector.load %arg11[%c0_24, %c0_25, %c0_26] : memref<2x8x32xf32, #tpu.memory_space<vmem>>, vector<2x8x32xf32>
    %39 = vector.shape_cast %37 : vector<16x32xf32> to vector<2x8x32xf32>
    %40 = arith.addf %38, %39 : vector<2x8x32xf32>
    %c0_27 = arith.constant 0 : index
    %c0_28 = arith.constant 0 : index
    %c0_29 = arith.constant 0 : index
    %41 = vector.load %arg11[%c0_27, %c0_28, %c0_29] : memref<2x8x32xf32, #tpu.memory_space<vmem>>, vector<2x8x32xf32>
    tpu.vector_store %arg11[%c0_27, %c0_28, %c0_29], %40 {strides = array<i32>} : memref<2x8x32xf32, #tpu.memory_space<vmem>>, vector<2x8x32xf32>,
    return
  }
  func.func @transform_0(%arg0: i32, %arg1: i32) -> (i32, i32, i32) {
    %c0_i32 = arith.constant 0 : i32
    %c0_i32_0 = arith.constant 0 : i32
    %c0_i32_1 = arith.constant 0 : i32
    return %arg0, %c0_i32, %c0_i32_0 : i32, i32, i32
  }
  func.func @transform_1(%arg0: i32, %arg1: i32) -> (i32, i32, i32) {
    %c0_i32 = arith.constant 0 : i32
    %c0_i32_0 = arith.constant 0 : i32
    %c0_i32_1 = arith.constant 0 : i32
    return %arg0, %c0_i32, %c0_i32_0 : i32, i32, i32
  }
  func.func @transform_2(%arg0: i32, %arg1: i32) -> (i32, i32, i32) {
    %c0_i32 = arith.constant 0 : i32
    %c0_i32_0 = arith.constant 0 : i32
    %c0_i32_1 = arith.constant 0 : i32
    return %arg0, %c0_i32, %c0_i32_0 : i32, i32, i32
  }
  func.func @transform_3(%arg0: i32, %arg1: i32) -> (i32, i32) {
    %c0_i32 = arith.constant 0 : i32
    %c0_i32_0 = arith.constant 0 : i32
    %c0_i32_1 = arith.constant 0 : i32
    return %c0_i32, %c0_i32_0 : i32, i32
  }
  func.func @transform_4(%arg0: i32, %arg1: i32) -> (i32, i32) {
    %c0_i32 = arith.constant 0 : i32
    %c0_i32_0 = arith.constant 0 : i32
    %c0_i32_1 = arith.constant 0 : i32
    return %c0_i32, %c0_i32_0 : i32, i32
  }
  func.func @transform_5(%arg0: i32, %arg1: i32) -> (i32, i32) {
    %c0_i32 = arith.constant 0 : i32
    %c0_i32_0 = arith.constant 0 : i32
    %c0_i32_1 = arith.constant 0 : i32
    return %c0_i32, %c0_i32_0 : i32, i32
  }
  func.func @transform_6(%arg0: i32, %arg1: i32) -> (i32, i32) {
    %c0_i32 = arith.constant 0 : i32
    %c0_i32_0 = arith.constant 0 : i32
    %c0_i32_1 = arith.constant 0 : i32
    return %c0_i32, %c0_i32_0 : i32, i32
  }
  func.func @transform_7(%arg0: i32, %arg1: i32) -> (i32, i32, i32) {
    %c0_i32 = arith.constant 0 : i32
    %c0_i32_0 = arith.constant 0 : i32
    %c0_i32_1 = arith.constant 0 : i32
    return %arg1, %c0_i32, %c0_i32_0 : i32, i32, i32
  }
  func.func @transform_8(%arg0: i32, %arg1: i32) -> (i32, i32) {
    %c0_i32 = arith.constant 0 : i32
    %c0_i32_0 = arith.constant 0 : i32
    %c0_i32_1 = arith.constant 0 : i32
    return %c0_i32, %c0_i32_0 : i32, i32
  }
  func.func @transform_9(%arg0: i32, %arg1: i32) -> (i32, i32, i32) {
    %c0_i32 = arith.constant 0 : i32
    %c0_i32_0 = arith.constant 0 : i32
    %c0_i32_1 = arith.constant 0 : i32
    return %arg0, %c0_i32, %c0_i32_0 : i32, i32, i32
  }
}

</mosaic_0001>

<bundles_post_ra>
// kernel: tpu_custom_call.1
= control target key start
LH: loop header
LB: loop body
LE: loop exit
PB: predicated region body
PF: predicated region fallthrough
CT: control target
= control target key end

     0   :  { %s2736_s0 = inlined_call_operand.hbm [shape: f32[4,8,32], index: 0, kind: input, shape index: {}]   ;;  %s2737_s1 = inlined_call_operand.hbm [shape: f32[4,8,32], index: 1, kind: input, shape index: {}]   ;;  %s2738_s2 = inlined_call_operand.hbm [shape: f32[4,8,8], index: 2, kind: input, shape index: {}]   ;;  %s2739_s3 = inlined_call_operand.vmem [shape: f32[8,8], index: 3, kind: input, shape index: {}]   ;;  %s2740_s4 = inlined_call_operand.hbm [shape: f32[32,64], index: 4, kind: input, shape index: {}]   ;;  %s2741_s5 = inlined_call_operand.hbm [shape: f32[32,64], index: 5, kind: input, shape index: {}]   ;;  %s2742_s6 = inlined_call_operand.vmem [shape: f32[1,32], index: 6, kind: input, shape index: {}]   ;;  %s2743_s7 = inlined_call_operand.hbm [shape: f32[4,8,32], index: 7, kind: input, shape index: {}]   ;;  %s2744_s8 = inlined_call_operand.vmem [shape: f32[1,32], index: 8, kind: input, shape index: {}]   ;;  %s2745_s9 = inlined_call_operand.hbm [shape: f32[4,8,32], index: 9, kind: output, shape index: {}]  }
   0x1   :  { %2773 = sst [smem:[#allocation31_spill]] %s2737_s1 }
   0x2   :  { %2774 = sst [smem:[#allocation32_spill]] %s2739_s3 }
   0x3   :  { %2775 = sst [smem:[#allocation33_spill]] %s2740_s4 }
   0x4   :  { %2776 = sst [smem:[#allocation34_spill]] %s2741_s5 }
   0x5   :  { %2777 = sst [smem:[#allocation35_spill]] %s2742_s6 }
   0x6   :  { %2778 = sst [smem:[#allocation36_spill]] %s2744_s8 }
   0x7   :  { %2779 = sst [smem:[#allocation37_spill]] %s2745_s9 }
   0x8   :  { %14 = vsyncpa [#allocation7], 0 }
   0x9   :  { %16 = vsyncpa [#allocation7 + $0x1], 0 }
   0xa   :  { %17 = vsyncpa [#allocation10], 0 }
   0xb   :  { %19 = vsyncpa [#allocation10 + $0x1], 0 }
   0xc   :  { %20 = vsyncpa [#allocation13], 0 }
   0xd   :  { %21 = vsyncpa [#allocation16], 0 }
   0xe   :  { %23 = vsyncpa [#allocation16 + $0x1], 0 }
   0xf   :  { %24 = vsyncpa [#allocation8], 0 }
  0x10   :  { %26 = vsyncpa [#allocation8 + $0x1], 0  ;;  %s2169_s30 = smov 0   ;;  %s2171_s10 = smov 0  }
  0x11   :  { %s2173_s11 = smov 0   ;;  %s2175_s12 = smov 0  }
  0x12   :  { %s2177_s13 = smov 0   ;;  %s2179_s14 = smov 0  }
  0x13   :  { %s2181_s15 = smov 0   ;;  %s2183_s16 = smov 0  }
  0x14   :  { %s2185_s17 = smov 0   ;;  %s2187_s18 = smov 0  }
  0x15   :  { %s2189_s19 = smov 0  }
  0x16 LB: > { %2780 = sst [smem:[#allocation23_spill]] %s2068_s12  ;;  %s2225_s20 = sadd.s32 4294967295, %s2096_s19   ;;  %s2096_s19 = sphi %s2189_s19, %s32_s19   ;;  %s2092_s18 = sphi %s2187_s18, %s2844_s18   ;;  %s2088_s17 = sphi %s2185_s17, %s2843_s17   ;;  %s2084_s16 = sphi %s2183_s16, %s2842_s16   ;;  %s2080_s15 = sphi %s2181_s15, %s2841_s15   ;;  %s2076_s14 = sphi %s2179_s14, %s2840_s14   ;;  %s2072_s13 = sphi %s2177_s13, %s2839_s13   ;;  %s2068_s12 = sphi %s2175_s12, %s2838_s12   ;;  %s2064_s11 = sphi %s2173_s11, %s2837_s11   ;;  %s2060_s10 = sphi %s2171_s10, %s2836_s10   ;;  %s2056_s30 = sphi %s2169_s30, %s2835_s30  }
  0x17   : > { %2781 = sst [smem:[#allocation24_spill]] %s2072_s13  ;;  %s1481_s21 = sadd.s32 4294967294, %s2096_s19  }
  0x18   : > { %2782 = sst [smem:[#allocation25_spill]] %s2080_s15  ;;  %p64_p0 = scmp.ne.s32.totalorder %s2072_s13, %s2068_s12 }
  0x19   : > { %2783 = sst [smem:[#allocation26_spill]] %s2084_s16  ;;  %p2749_p1 = scmp.eq.s32.totalorder %s2225_s20, 0 }
  0x1a   : > { %p277_p3 = scmp.eq.s32.totalorder %s1481_s21, 7  ;;  %p1482_p5 = scmp.ge.s32.totalorder %s2096_s19, 1 }
  0x1b   : > { %p2234_p4 = por %p2749_p1, %p64_p0  ;;  %p284_p7 = scmp.lt.s32.totalorder %s2096_s19, 9 }
  0x1c   : > { %p2239_p6 = por %p277_p3, %p64_p0  ;;  %s2098_s25 = smov [#allocation12]  }
  0x1d   : > { %s2784_s22 = scalar_select %p2234_p4, 1, 0 }
  0x1e   : > { %s2786_s23 = scalar_select %p2239_p6, 1, 0 }
  0x1f   : > { %2785 = sst [smem:[#allocation27_spill]] %s2784_s22  ;;  %p2244_p8 = pnand %p1482_p5, %p284_p7 }
  0x20   : > { %2787 = sst [smem:[#allocation28_spill]] %s2786_s23  ;;  %s299_s26 = sshll.u32 %s2098_s25, 4  ;;  %s300_s26 = int_to_ptr.vmem [resolvable:$true] %s299_s26 }
  0x21   : > { %s2788_s24 = scalar_select %p2244_p8, 1, 0 }
  0x22   : > { %p1636_p9 = pneg %p2244_p8  ;;  %s2791_s4 = sld [smem:[#allocation33_spill]] }
  0x23   : > { %2789 = sst [smem:[#allocation29_spill]] %s2788_s24 }
  0x24   : > { %p2252_p10 = pnand %p1636_p9, %p2749_p1 }
  0x26   : > { %s2790_s27 = scalar_select %p2252_p10, 1, 0 }
  0x27   : > { %p2763_p12 = pneg %p2252_p10 }
  0x28   : > { %s1786_s23 = scalar_lea.hbm %s2791_s4, 512 }
  0x29   : > { %p1787_p11 = scmp.ne.s32.totalorder %s2791_s4, %s1786_s23  ;;  %p1793_p3 = scmp.lt.u32.totalorder %s1786_s23, %s2791_s4 }
  0x2b   : > { %p1789_p13 = pnand %p2763_p12, %p1787_p11 }
  0x2d   : > { %p1790_p0 = pneg %p1789_p13 }
  0x2f   : > { %p1795_p5 = pnand %p1793_p3, %p1790_p0 }
  0x31   : > { %1798 = shalt.err (!%p1795_p5)
}
  0x32   : > { %s1799_s28 = scalar_lea.vmem %s300_s26, 512  ;;  %p1807_p2 = scmp.lt.s32.totalorder %s300_s26, %s300_s26 }
  0x33   : > { %p1800_p7 = scmp.ne.s32.totalorder %s300_s26, %s1799_s28  ;;  %p1808_p6 = scmp.lt.s32.totalorder %s1799_s28, %s1799_s28 }
  0x35   : > { %p1802_p9 = pnand %p1800_p7, %p2763_p12  ;;  %p1809_p4 = por %p1808_p6, %p1807_p2 }
  0x37   : > { %p1803_p1 = pneg %p1802_p9 }
  0x39   : > { %p1810_p8 = pnand %p1809_p4, %p1803_p1 }
  0x3b   : > { %1813 = shalt.err (!%p1810_p8)
}
  0x3c   : > { %s2752_s9 = smov 128   ;;  %s2754_s12 = smov 8  }
  0x3d   : > { %1639 = dma.hbm_to_vmem [thread:$0]  (!%p2252_p10), %s2791_s4, 512, %s300_s26, [#allocation13], %s2752_s9, %s2752_s9, %s2754_s12  }
  0x3e   : > { %p58_p1 = scmp.ne.s32.totalorder %s2076_s14, %s2072_s13  ;;  %p2762_p2 = scmp.eq.s32.totalorder %s2096_s19, 0 }
  0x3f   : > { %p2761_p4 = scmp.lt.s32.totalorder %s2096_s19, 8  ;;  %s2756_s28 = sand.u32 1, %s2076_s14  }
  0x40   : > { %p60_p6 = por %p2762_p2, %p58_p1  ;;  %p2792_p8 = scmp.eq.s32.totalorder %s2225_s20, 7 }
  0x41   : > { %s2297_s21 = sshll.u32 %s2756_s28, 4  ;;  %s2300_s25 = sshll.u32 %s2092_s18, 8 }
  0x42   : > { %p2291_p11 = por %p2792_p8, %p58_p1  ;;  %p2304_p13 = pnand %p2761_p4, %p60_p6 }
  0x43   : > { %s353_s16 = sand.u32 1, %s2096_s19   ;;  %s2796_s1 = sld [smem:[#allocation31_spill]] }
  0x44   : > { %s2793_s29 = scalar_select %p2291_p11, 1, 0 }
  0x45   : > { %s2795_s26 = scalar_select %p2304_p13, 1, 0 }
  0x46   : > { %2794 = sst [smem:[#allocation30_spill]] %s2793_s29  ;;  %s357_s28 = scalar_lea.vmem [#allocation9], %s2297_s21 }
  0x47   : > { %s364_s4 = sshll.u32 %s357_s28, 4  ;;  %s2101_s29 = smov [#allocation14]   ;;  %s2316_s4 = int_to_ptr.vmem [resolvable:$true] %s364_s4 }
  0x48   : > { %s2318_s3 = sshll.u32 %s2101_s29, 4  ;;  %s2320_s6 = scalar_lea.sflag [#allocation10], %s353_s16  ;;  %s313_s3 = int_to_ptr.vmem [resolvable:$true] %s2318_s3 }
  0x49   : > { %s2313_s12 = scalar_lea.hbm %s2796_s1, %s2300_s25  ;;  %p2326_p3 = pneg %p2304_p13 }
  0x4a   : > { %s1814_s8 = scalar_lea.hbm %s2313_s12, 256  ;;  %s1819_s15 = scalar_lea.hbm %s2796_s1, 512 }
  0x4b   : > { %p1815_p0 = scmp.ne.s32.totalorder %s2313_s12, %s1814_s8  ;;  %p1820_p9 = scmp.lt.u32.totalorder %s2313_s12, %s2796_s1 }
  0x4c   : > { %s2797_s9 = scalar_select %p2326_p3, 1, 0 }
  0x4d   : > { %p1817_p5 = pnand %p2326_p3, %p1815_p0  ;;  %p1821_p1 = scmp.lt.u32.totalorder %s1819_s15, %s1814_s8 }
  0x4e   : > { %p1823_p8 = scmp.lt.u32.totalorder %s1814_s8, %s2313_s12 }
  0x4f   : > { %p1818_p7 = pneg %p1817_p5  ;;  %p1822_p6 = por %p1821_p1, %p1820_p9 }
  0x51   : > { %p1824_p4 = por %p1823_p8, %p1822_p6 }
  0x53   : > { %p1825_p2 = pnand %p1824_p4, %p1818_p7 }
  0x55   : > { %1828 = shalt.err (!%p1825_p2)
}
  0x56   : > { %s1829_s16 = scalar_lea.vmem %s2316_s4, 256  ;;  %s2102_s23 = smov [#allocation9]  }
  0x57   : > { %p1830_p0 = scmp.ne.s32.totalorder %s2316_s4, %s1829_s16  ;;  %s1834_s28 = sshll.u32 %s2102_s23, 4  ;;  %s1835_s28 = int_to_ptr.vmem [resolvable:$false] %s1834_s28 }
  0x58   : > { %s1836_s22 = scalar_lea.vmem %s1835_s28, 512  ;;  %p1837_p11 = scmp.lt.s32.totalorder %s2316_s4, %s1835_s28 }
  0x59   : > { %p1832_p5 = pnand %p1830_p0, %p2326_p3  ;;  %p1838_p10 = scmp.lt.s32.totalorder %s1836_s22, %s1829_s16 }
  0x5b   : > { %p1833_p12 = pneg %p1832_p5  ;;  %p1839_p9 = por %p1838_p10, %p1837_p11 }
  0x5d   : > { %p1840_p1 = pnand %p1839_p9, %p1833_p12 }
  0x5f   : > { %1843 = shalt.err (!%p1840_p1)
}
  0x60   : > { %s2798_s8 = smov 8   ;;  %s2799_s15 = smov 128  }
  0x61   : > { %1649 = dma.hbm_to_vmem [thread:$0]  (!%p2304_p13), %s2313_s12, 256, %s2316_s4, %s2320_s6, %s2799_s15, %s2799_s15, %s2798_s8  }
  0x62   : > { %s2800_s5 = sld [smem:[#allocation34_spill]]  ;;  %p2801_p12 = scmp.ne.s32.totalorder %s2790_s27, 0 }
  0x64   : > { %p2802_p2 = pneg %p2801_p12 }
  0x68   : > { %s1844_s28 = scalar_lea.hbm %s2800_s5, 512 }
  0x69   : > { %p1845_p10 = scmp.ne.s32.totalorder %s2800_s5, %s1844_s28  ;;  %p1851_p7 = scmp.lt.u32.totalorder %s1844_s28, %s2800_s5 }
  0x6b   : > { %p1847_p4 = pnand %p1845_p10, %p2802_p2 }
  0x6d   : > { %p1848_p11 = pneg %p1847_p4 }
  0x6f   : > { %p1853_p6 = pnand %p1851_p7, %p1848_p11 }
  0x71   : > { %1856 = shalt.err (!%p1853_p6)
}
  0x72   : > { %s1857_s4 = scalar_lea.vmem %s313_s3, 512  ;;  %p2803_p0 = pmov %p2802_p2 }
  0x73   : > { %p1858_p8 = scmp.ne.s32.totalorder %s313_s3, %s1857_s4  ;;  %p1865_p1 = scmp.lt.s32.totalorder %s313_s3, %s313_s3 }
  0x74   : > { %p1866_p13 = scmp.lt.s32.totalorder %s1857_s4, %s1857_s4 }
  0x75   : > { %p1860_p5 = pnand %p1858_p8, %p2803_p0 }
  0x76   : > { %p1867_p3 = por %p1866_p13, %p1865_p1 }
  0x77   : > { %p1861_p9 = pneg %p1860_p5 }
  0x79   : > { %p1868_p2 = pnand %p1867_p3, %p1861_p9 }
  0x7b   : > { %1871 = shalt.err (!%p1868_p2)
}
  0x7c   : > { %1642 = dma.hbm_to_vmem [thread:$0]  (!%p2801_p12), %s2800_s5, 512, %s313_s3, [#allocation13], %s2799_s15, %s2799_s15, %s2798_s8  }
  0x7d   : > { %s2381_s23 = scalar_lea.hbm %s2736_s0, %s2300_s25  ;;  %s336_s27 = scalar_lea.vmem [#allocation6], %s2297_s21 }
  0x7e   : > { %s343_s28 = sshll.u32 %s336_s27, 4  ;;  %s2390_s4 = scalar_lea.hbm %s2738_s2, %s2300_s25  ;;  %s2384_s28 = int_to_ptr.vmem [resolvable:$true] %s343_s28 }
  0x7f   : > { %s2804_s1 = sand.u32 1, %s2076_s14   ;;  %s1872_s13 = scalar_lea.hbm %s2381_s23, 256 }
  0x80   : > { %s2394_s3 = scalar_lea.sflag [#allocation7], %s2804_s1  ;;  %p1873_p13 = scmp.ne.s32.totalorder %s2381_s23, %s1872_s13 }
  0x81   : > { %p2805_p3 = scmp.ne.s32.totalorder %s2797_s9, 0  ;;  %s1877_s5 = scalar_lea.hbm %s2736_s0, 512 }
  0x82   : > { %p1878_p4 = scmp.lt.u32.totalorder %s2381_s23, %s2736_s0  ;;  %p1879_p11 = scmp.lt.u32.totalorder %s1877_s5, %s1872_s13 }
  0x83   : > { %p1875_p10 = pnand %p1873_p13, %p2805_p3  ;;  %p1881_p6 = scmp.lt.u32.totalorder %s1872_s13, %s2381_s23 }
  0x84   : > { %p1880_p7 = por %p1879_p11, %p1878_p4 }
  0x85   : > { %p1876_p12 = pneg %p1875_p10 }
  0x86   : > { %p1882_p8 = por %p1881_p6, %p1880_p7 }
  0x88   : > { %p1883_p0 = pnand %p1882_p8, %p1876_p12 }
  0x8a   : > { %1886 = shalt.err (!%p1883_p0)
}
  0x8b   : > { %s1887_s25 = scalar_lea.vmem %s2384_s28, 256  ;;  %s2103_s16 = smov [#allocation6]  }
  0x8c   : > { %p1888_p5 = scmp.ne.s32.totalorder %s2384_s28, %s1887_s25  ;;  %s1892_s22 = sshll.u32 %s2103_s16, 4  ;;  %s1893_s22 = int_to_ptr.vmem [resolvable:$false] %s1892_s22 }
  0x8d   : > { %s1894_s24 = scalar_lea.vmem %s1893_s22, 512  ;;  %p1895_p2 = scmp.lt.s32.totalorder %s2384_s28, %s1893_s22 }
  0x8e   : > { %p1890_p9 = pnand %p1888_p5, %p2805_p3  ;;  %p1896_p13 = scmp.lt.s32.totalorder %s1894_s24, %s1887_s25 }
  0x90   : > { %p1891_p1 = pneg %p1890_p9  ;;  %p1897_p10 = por %p1896_p13, %p1895_p2 }
  0x92   : > { %p1898_p4 = pnand %p1897_p10, %p1891_p1 }
  0x94   : > { %1901 = shalt.err (!%p1898_p4)
}
  0x95   : > { %p2806_p12 = scmp.ne.s32.totalorder %s2795_s26, 0  ;;  %s378_s5 = scalar_lea.vmem [#allocation11], %s2297_s21 }
  0x96   : > { %s385_s1 = sshll.u32 %s378_s5, 4  ;;  %s1902_s13 = scalar_lea.hbm %s2390_s4, 256  ;;  %s2422_s1 = int_to_ptr.vmem [resolvable:$true] %s385_s1 }
  0x97   : > { %1646 = dma.hbm_to_vmem [thread:$0]  (!%p2806_p12), %s2381_s23, 256, %s2384_s28, %s2394_s3, %s2799_s15, %s2799_s15, %s2798_s8  }
  0x98   : > { %p1903_p11 = scmp.ne.s32.totalorder %s2390_s4, %s1902_s13  ;;  %s1907_s27 = scalar_lea.hbm %s2738_s2, 512 }
  0x99   : > { %p1908_p8 = scmp.lt.u32.totalorder %s2390_s4, %s2738_s2  ;;  %p1909_p0 = scmp.lt.u32.totalorder %s1907_s27, %s1902_s13 }
  0x9a   : > { %p1905_p7 = pnand %p1903_p11, %p2805_p3  ;;  %p1911_p9 = scmp.lt.u32.totalorder %s1902_s13, %s2390_s4 }
  0x9b   : > { %p1910_p5 = por %p1909_p0, %p1908_p8 }
  0x9c   : > { %p1906_p6 = pneg %p1905_p7 }
  0x9d   : > { %p1912_p1 = por %p1911_p9, %p1910_p5 }
  0x9f   : > { %p1913_p2 = pnand %p1912_p1, %p1906_p6 }
  0xa1   : > { %1916 = shalt.err (!%p1913_p2)
}
  0xa2   : > { %s1917_s21 = scalar_lea.vmem %s2422_s1, 256  ;;  %s2104_s23 = smov [#allocation11]  }
  0xa3   : > { %p1918_p13 = scmp.ne.s32.totalorder %s2422_s1, %s1917_s21  ;;  %s1922_s28 = sshll.u32 %s2104_s23, 4  ;;  %s1923_s28 = int_to_ptr.vmem [resolvable:$false] %s1922_s28 }
  0xa4   : > { %s1924_s3 = scalar_lea.vmem %s1923_s28, 512  ;;  %p1925_p11 = scmp.lt.s32.totalorder %s2422_s1, %s1923_s28 }
  0xa5   : > { %p1920_p10 = pnand %p1918_p13, %p2805_p3  ;;  %p1926_p7 = scmp.lt.s32.totalorder %s1924_s3, %s1917_s21 }
  0xa7   : > { %p1921_p4 = pneg %p1920_p10  ;;  %p1927_p8 = por %p1926_p7, %p1925_p11 }
  0xa9   : > { %p1928_p0 = pnand %p1927_p8, %p1921_p4 }
  0xab   : > { %1931 = shalt.err (!%p1928_p0)
}
  0xac   : > { %1652 = dma.hbm_to_vmem [thread:$0]  (!%p2806_p12), %s2390_s4, 256, %s2422_s1, %s2320_s6, %s2799_s15, %s2799_s15, %s2798_s8  }
  0xad   : > { %s41_s26 = sadd.s32 1, %s2088_s17  ;;  %s44_s9 = sadd.s32 1, %s2092_s18 }
  0xae   : > { %p42_p3 = scmp.ge.s32.totalorder %s41_s26, 4  ;;  %s213_s22 = sadd.s32 1, %s2064_s11 }
  0xaf   : > { %p220_p6 = scmp.ne.s32.totalorder %s2064_s11, %s2060_s10  ;;  %p226_p5 = scmp.ne.s32.totalorder %s2060_s10, %s2056_s30 }
  0xb0   : > { %s2846_s26 = smov (%p42_p3, %s41_s26), 0  ;;  %s2848_s9 = smov (!%p42_p3, %s44_s9), %s2092_s18 }
  0xb1   : > { %s210_s24 = ssub.s32 %s2088_s17, %s2846_s26  ;;  %p2807_p9 = scmp.eq.s32.totalorder %s2096_s19, 0 }
  0xb2   : > { %p46_p12 = scmp.ge.s32.totalorder %s2848_s9, 2  ;;  %p211_p2 = scmp.eq.s32.totalorder %s210_s24, 0 }
  0xb3   : > { %p2463_p1 = por %p220_p6, %p2807_p9  ;;  %p2809_p13 = scmp.eq.s32.totalorder %s2225_s20, 0 }
  0xb4   : > { %s395_s30 = sand.u32 1, %s2064_s11   ;;  %s2850_s9 = smov (%p46_p12, %s2848_s9), 0 }
  0xb5   : > { %p2469_p10 = por %p226_p5, %p2809_p13  ;;  %s48_s15 = ssub.s32 %s2092_s18, %s2850_s9 }
  0xb6   : > { %s2477_s8 = scalar_select %p211_p2, %s2064_s11, %s213_s22  }
  0xb7   : > { %p49_p4 = scmp.eq.s32.totalorder %s48_s15, 0  ;;  %s1495_s4 = sshll.u32 %s395_s30, 3 }
  0xb8   : > { %s1496_s1 = sshll.u32 %s2088_s17, 7  ;;  %s2811_s13 = sadd.s32 1, %s2076_s14 }
  0xb9   : > { %s2485_s12 = scalar_select %p49_p4, %s2076_s14, %s2811_s13  }
  0xba   : > { %s2490_s25 = scalar_lea.hbm %s2743_s7, %s1496_s1  ;;  %s399_s16 = scalar_lea.vmem [#allocation15], %s1495_s4 }
  0xbb   : > { %s406_s21 = sshll.u32 %s399_s16, 4  ;;  %p2812_p11 = scmp.lt.s32.totalorder %s2096_s19, 8  ;;  %s2492_s21 = int_to_ptr.vmem [resolvable:$true] %s406_s21 }
  0xbc   : > { %s396_s28 = scalar_lea.sflag [#allocation16], %s395_s30  ;;  %s1932_s3 = scalar_lea.hbm %s2490_s25, 128 }
  0xbd   : > { %p2498_p7 = pnand %p2812_p11, %p2463_p1  ;;  %p1933_p8 = scmp.ne.s32.totalorder %s2490_s25, %s1932_s3 }
  0xbe   : > { %s1937_s5 = scalar_lea.hbm %s2743_s7, 512  ;;  %p1938_p5 = scmp.lt.u32.totalorder %s2490_s25, %s2743_s7 }
  0xbf   : > { %p1934_p0 = pneg %p2498_p7  ;;  %p1939_p9 = scmp.lt.u32.totalorder %s1937_s5, %s1932_s3 }
  0xc0   : > { %p1941_p12 = scmp.lt.u32.totalorder %s1932_s3, %s2490_s25 }
  0xc1   : > { %p1935_p3 = pnand %p1934_p0, %p1933_p8  ;;  %p1940_p1 = por %p1939_p9, %p1938_p5 }
  0xc3   : > { %p1936_p6 = pneg %p1935_p3  ;;  %p1942_p2 = por %p1941_p12, %p1940_p1 }
  0xc5   : > { %p1943_p13 = pnand %p1942_p2, %p1936_p6 }
  0xc7   : > { %1946 = shalt.err (!%p1943_p13)
}
  0xc8   : > { %s1947_s30 = scalar_lea.vmem %s2492_s21, 128  ;;  %s2105_s1 = smov [#allocation15]  }
  0xc9   : > { %p1948_p4 = scmp.ne.s32.totalorder %s2492_s21, %s1947_s30  ;;  %s1952_s13 = sshll.u32 %s2105_s1, 4  ;;  %s1953_s13 = int_to_ptr.vmem [resolvable:$false] %s1952_s13 }
  0xca   : > { %s1954_s29 = scalar_lea.vmem %s1953_s13, 256  ;;  %p1955_p3 = scmp.lt.s32.totalorder %s2492_s21, %s1953_s13 }
  0xcb   : > { %p1950_p11 = pnand %p1948_p4, %p1934_p0  ;;  %p1956_p5 = scmp.lt.s32.totalorder %s1954_s29, %s1947_s30 }
  0xcd   : > { %p1951_p8 = pneg %p1950_p11  ;;  %p1957_p9 = por %p1956_p5, %p1955_p3 }
  0xcf   : > { %p1958_p1 = pnand %p1957_p9, %p1951_p8 }
  0xd1   : > { %1961 = shalt.err (!%p1958_p1)
}
  0xd2   : > { %1655 = dma.hbm_to_vmem [thread:$0]  (!%p2498_p7), %s2490_s25, 128, %s2492_s21, %s396_s28  }
  0xd3   : > { %s2814_s27 = sld [smem:[#allocation29_spill]] }
  0xd9   : > { %p2815_p6 = scmp.ne.s32.totalorder %s2814_s27, 0 }
  0xda   : > { %s2816_s16 = sld [smem:[#allocation24_spill]] (!%p2815_p6)  ;;  %s2817_s3 = sld [smem:[#allocation27_spill]] (!%p2815_p6) }
  0xdb   : > { %415 = sbr.rel (%p2815_p6) target bundleno = 1470 (0x5be), region = 56 }
  0xe0   : > { %s2530_s22 = sand.u32 (!%p2815_p6), 1, %s2816_s16   ;;  %p2818_p0 = scmp.ne.s32.totalorder (!%p2815_p6), %s2817_s3, 0 }
  0xe1   : > { %s2533_s24 = sshll.u32 (!%p2815_p6), %s2530_s22, 4  ;;  %s418_s5 = scalar_lea.sflag (!%p2815_p6), [#allocation7], %s2530_s22 }
  0xe2   : > { %s421_s15 = scalar_lea.vmem [#allocation6], %s2533_s24 }
  0xe3   : > { %2035 = dma.done.wait (%p2818_p0), %s418_s5, 256  }
  0xe4   : > { %2037 = vsyncadd (%p2818_p0), %s418_s5, 4294967040  ;;  %s426_s25 = sand.u32 1, %s2225_s20   ;;  %s430_s23 = scalar_lea.vmem [#allocation9], %s2533_s24 }
  0xe5   : > { %s427_s21 = scalar_lea.sflag [#allocation10], %s426_s25 }
  0xe6   : > { %2039 = dma.done.wait (%p2818_p0), %s427_s21, 512  }
  0xe7   : > { %2041 = vsyncadd (%p2818_p0), %s427_s21, 4294966784  ;;  %s439_s28 = scalar_lea.vmem [#allocation11], %s2533_s24  ;;  %p2819_p7 = scmp.eq.s32.totalorder %s2225_s20, 0 }
  0xe9   : > { %2043 = dma.done.wait (%p2819_p7), [#allocation13], 1024   ;;  %p2820_p12 = pmov %p2819_p7 }
  0xea   : > { %s452_s4 = sand.u32 1, %s2060_s10  }
  0xeb   : > { %2045 = vsyncadd (%p2820_p12), [#allocation13], 4294966272  ;;  %s2553_s30 = sshll.u32 %s452_s4, 3  ;;  %s453_s1 = scalar_lea.sflag [#allocation16], %s452_s4 }
  0xec   : > { %s456_s13 = scalar_lea.vmem [#allocation15], %s2553_s30 }
  0xed   : > { %2047 = dma.done.wait (%p2469_p10), %s453_s1, 128  }
  0xee   : > { %2049 = vsyncadd (%p2469_p10), %s453_s1, 4294967168  ;;  %s2561_s29 = scalar_lea.vmem [#allocation17], %s2533_s24  ;;  %s2821_s27 = sld [smem:[#allocation25_spill]] }
  0xf4   : > { %p1505_p2 = scmp.ne.s32.totalorder %s2821_s27, 0 }
  0xf5   : > { %v604_v0 = vld [vmem:[#allocation14] sm:$0xff] (!%p1505_p2)  ;;  %v605_v1 = vld [vmem:[#allocation14 + $0x8] sm:$0xff] (!%p1505_p2)  ;;  %v606_v2 = vld [vmem:[#allocation14 + $0x10] sm:$0xff] (!%p1505_p2)  ;;  %vm522_vm0 = vcmask (!%p1505_p2), 261120   ;;  %s2822_s16 = sld [smem:[#allocation36_spill]] (!%p1505_p2)  ;;  %s2823_s25 = sld [smem:[#allocation35_spill]] (!%p1505_p2) }
  0xf6   : > { %513 = sbr.rel (%p1505_p2) target bundleno = 636 (0x27c), region = 84  ;;  %v1610_v3 = vpack.c.bf16 (!%p1505_p2), %v605_v1, %v604_v0  ;;  %v607_v4 = vld [vmem:[#allocation14 + $0x18] sm:$0xff] (!%p1505_p2)  ;;  %v516_v5 = vld [vmem:[%s430_s23] sm:$0xff] (!%p1505_p2)  ;;  %v519_v9 = vld [vmem:[#allocation12 + $0x8] sm:$0xff] (!%p1505_p2)  ;;  %s2106_s21 = smov (!%p1505_p2), 32   ;;  %vm714_vm1 = vcmask (!%p1505_p2), 64512  }
  0xf7   : > { %v1614_v7 = vpack.c.bf16 (!%p1505_p2), %v607_v4, %v606_v2  ;;  %1574 = vmatprep.mubr.msk.f32.mxu1 (!%p1505_p2), %vm522_vm0, %v516_v5  ;;  %v518_v8 = vld [vmem:[#allocation12] sm:$0xff] (!%p1505_p2)  ;;  %v520_v11 = vld [vmem:[#allocation12 + $0x10] sm:$0xff] (!%p1505_p2)  ;;  %v521_v12 = vld [vmem:[#allocation12 + $0x18] sm:$0xff] (!%p1505_p2)  ;;  %s2107_s4 = smov (!%p1505_p2), 120   ;;  %s2108_s1 = smov (!%p1505_p2), 96  }
  0xf8   : > { %1611 = vmatprep.subr.bf16.mxu1 (!%p1505_p2), %v1610_v3  ;;  %v1602_v10 = vpack.c.bf16 (!%p1505_p2), %v519_v9, %v518_v8  ;;  %v514_v13 = vld [vmem:[%s421_s15] sm:$0xff] (!%p1505_p2)  ;;  %v1606_v14 = vpack.c.bf16 (!%p1505_p2), %v521_v12, %v520_v11  ;;  %v517_v16 = vld [vmem:[%s430_s23 + $0x8] sm:$0xff] (!%p1505_p2)  ;;  %s2110_s23 = smov (!%p1505_p2), 112   ;;  %s2111_s27 = smov (!%p1505_p2), 80  }
  0xf9   : > { %1613 = vmatpush3.bf16.msra.mxu1 (!%p1505_p2), %v1610_v3  ;;  %1563 = vmatprep.mubr.msk.f32.mxu0 (!%p1505_p2), %vm522_vm0, %v514_v13  ;;  %v515_v17 = vld [vmem:[%s421_s15 + $0x8] sm:$0xff] (!%p1505_p2)  ;;  %s2109_s15 = smov (!%p1505_p2), 88   ;;  %s2112_s20 = smov (!%p1505_p2), 104  }
  0xfa   : > { %1615 = vmatprep.subr.bf16.mxu1 (!%p1505_p2), %v1614_v7  ;;  %1603 = vmatprep.subr.bf16.mxu0 (!%p1505_p2), %v1602_v10  ;;  %s2113_s6 = smov (!%p1505_p2), 72  }
  0xfb   : > { %v1513_v6 = vld [vmem:[%s2822_s16] ss:$0 sm:$0xff] (!%p1505_p2)  ;;  %1605 = vmatpush3.bf16.msra.mxu0 (!%p1505_p2), %v1602_v10 }
  0xfc   : > { %857 = vst.msk [vmem:[%s2561_s29] sm:$0xff] (!%p1505_p2), %vm522_vm0, %v1513_v6  ;;  %858 = vst.msk [vmem:[%s2561_s29 + $0x8] sm:$0xff] (!%p1505_p2), %vm522_vm0, %v1513_v6  ;;  %v1510_v15 = vld [vmem:[%s2823_s25] ss:$0 sm:$0xff] (!%p1505_p2)  ;;  %1607 = vmatprep.subr.bf16.mxu0 (!%p1505_p2), %v1606_v14 }
  0xfd   : > { %695 = vrot.lane.b32.xlu0 %v1510_v15, %s2106_s21  ;;  %1617 = vmatpush3.bf16.msra.mxu1 %v1614_v7 }
  0xff   : > { %1609 = vmatpush3.bf16.msra.mxu0 %v1606_v14 }
 0x100   : > { %1575 = vmatmul.mubr.msk.f32.vlgmr.msra.gmra.mrb[0].mxu1 %vm522_vm0, %v517_v16 }
 0x102   : > { %1564 = vmatmul.mubr.msk.f32.vlgmr.msra.gmra.mrb[0].mxu0 %vm522_vm0, %v515_v17 }
 0x16f   : > { %v696_v19 = vpop.permute.xlu0 %695 }
 0x1d3   : > { %v1576_v18 = vpop.f32.mrb[0].mxu1 }
 0x1d4   : > { %718 = vst.msk [vmem:[#allocation3 + $0x8] sm:$0xff] %vm714_vm1, %v1576_v18  ;;  %752 = vrot.lane.b32.xlu0 %v1576_v18, %s2107_s4  ;;  %723 = vrot.lane.b32.xlu1 %v1576_v18, %s2108_s1  ;;  %v680_v20 = vpop.f32.mrb[1].mxu1 }
 0x1d5   : > { %717 = vst.msk [vmem:[#allocation3] sm:$0xff] %vm714_vm1, %v680_v20  ;;  %v1565_v21 = vpop.f32.mrb[0].mxu0 }
 0x1d6   : > { %v713_v22 = vmul.f32 0.35355338, %v1565_v21  ;;  %v699_v23 = vadd.f32 %v1565_v21, %v696_v19  ;;  %v595_v24 = vpop.f32.mrb[1].mxu0 }
 0x1d7   : > { %v698_v25 = vadd.f32 %v696_v19, %v595_v24  ;;  %v712_v26 = vmul.f32 0.35355338, %v595_v24 }
 0x1d8   : > { %761 = vrot.lane.b32.xlu0 %v1576_v18, %s2109_s15  ;;  %750 = vrot.lane.b32.xlu1 %v680_v20, %s2107_s4  ;;  %716 = vst.msk [vmem:[#allocation2 + $0x8] sm:$0xff] %vm714_vm1, %v713_v22  ;;  %v1512_v27 = vmul.f32 -1.442695, %v699_v23 }
 0x1d9   : > { %715 = vst.msk [vmem:[#allocation2] sm:$0xff] %vm714_vm1, %v712_v26  ;;  %v1511_v28 = vmul.f32 -1.442695, %v698_v25 }
 0x1da   : > { %1770 = vpow2.f32 %v1512_v27 }
 0x1db   : > { %1772 = vpow2.f32 %v1511_v28 }
 0x1dc   : > { %788 = vrot.lane.b32.xlu0 %v1576_v18, %s2110_s23  ;;  %759 = vrot.lane.b32.xlu1 %v680_v20, %s2109_s15 }
 0x1e0   : > { %797 = vrot.lane.b32.xlu0 %v1576_v18, %s2111_s27  ;;  %786 = vrot.lane.b32.xlu1 %v680_v20, %s2110_s23 }
 0x1e4   : > { %824 = vrot.lane.b32.xlu0 %v1576_v18, %s2112_s20  ;;  %795 = vrot.lane.b32.xlu1 %v680_v20, %s2111_s27  ;;  %v1771_v29 = vpop.eup %1770 }
 0x1e5   : > { %v1773_v30 = vpop.eup %1772  ;;  %v707_v31 = vadd.f32 1.0, %v1771_v29 }
 0x1e6   : > { %v706_v32 = vadd.f32 1.0, %v1773_v30 }
 0x1e7   : > { %1774 = vrcp.f32 %v707_v31 }
 0x1e8   : > { %833 = vrot.lane.b32.xlu0 %v1576_v18, %s2113_s6  ;;  %822 = vrot.lane.b32.xlu1 %v680_v20, %s2112_s20  ;;  %1776 = vrcp.f32 %v706_v32 }
 0x1ec   : > { %831 = vrot.lane.b32.xlu1 %v680_v20, %s2113_s6  ;;  %721 = vrot.lane.b32.xlu0 %v680_v20, %s2108_s1 }
 0x1f0   : > { %743 = vrot.lane.b32.xlu0 %v713_v22, %s2107_s4  ;;  %741 = vrot.lane.b32.xlu1 %v712_v26, %s2107_s4 }
 0x1f1   : > { %v1775_v33 = vpop.eup %1774 }
 0x1f2   : > { %v1777_v34 = vpop.eup %1776 }
 0x1f4   : > { %779 = vrot.lane.b32.xlu0 %v713_v22, %s2110_s23  ;;  %777 = vrot.lane.b32.xlu1 %v712_v26, %s2110_s23 }
 0x1f8   : > { %815 = vrot.lane.b32.xlu0 %v713_v22, %s2112_s20  ;;  %813 = vrot.lane.b32.xlu1 %v712_v26, %s2112_s20 }
 0x1fc   : > { %733 = vrot.lane.b32.xlu0 %v1775_v33, %s2108_s1  ;;  %731 = vrot.lane.b32.xlu1 %v1777_v34, %s2108_s1 }
 0x200   : > { %770 = vrot.lane.b32.xlu0 %v1775_v33, %s2109_s15  ;;  %768 = vrot.lane.b32.xlu1 %v1777_v34, %s2109_s15 }
 0x204   : > { %806 = vrot.lane.b32.xlu0 %v1775_v33, %s2111_s27  ;;  %804 = vrot.lane.b32.xlu1 %v1777_v34, %s2111_s27 }
 0x208   : > { %842 = vrot.lane.b32.xlu0 %v1775_v33, %s2113_s6  ;;  %840 = vrot.lane.b32.xlu1 %v1777_v34, %s2113_s6 }
 0x246   : > { %v753_v35 = vpop.permute.xlu0 %752  ;;  %v724_v36 = vpop.permute.xlu1 %723 }
 0x247   : > { %758 = vst.msk [vmem:[#allocation3 + $0x18] sm:$0xff] %vm714_vm1, %v753_v35  ;;  %728 = vst.msk [vmem:[#allocation4 + $0x8] sm:$0xff] %vm714_vm1, %v724_v36 }
 0x24a   : > { %v762_v37 = vpop.permute.xlu0 %761  ;;  %v751_v38 = vpop.permute.xlu1 %750 }
 0x24b   : > { %767 = vst.msk [vmem:[#allocation4 + $0x18] sm:$0xff] %vm714_vm1, %v762_v37  ;;  %757 = vst.msk [vmem:[#allocation3 + $0x10] sm:$0xff] %vm714_vm1, %v751_v38 }
 0x24e   : > { %v789_v39 = vpop.permute.xlu0 %788  ;;  %v760_v40 = vpop.permute.xlu1 %759 }
 0x24f   : > { %794 = vst.msk [vmem:[#allocation3 + $0x28] sm:$0xff] %vm714_vm1, %v789_v39  ;;  %766 = vst.msk [vmem:[#allocation4 + $0x10] sm:$0xff] %vm714_vm1, %v760_v40 }
 0x252   : > { %v798_v41 = vpop.permute.xlu0 %797  ;;  %v787_v42 = vpop.permute.xlu1 %786 }
 0x253   : > { %803 = vst.msk [vmem:[#allocation4 + $0x28] sm:$0xff] %vm714_vm1, %v798_v41  ;;  %793 = vst.msk [vmem:[#allocation3 + $0x20] sm:$0xff] %vm714_vm1, %v787_v42 }
 0x256   : > { %v825_v43 = vpop.permute.xlu0 %824  ;;  %v796_v44 = vpop.permute.xlu1 %795 }
 0x257   : > { %830 = vst.msk [vmem:[#allocation3 + $0x38] sm:$0xff] %vm714_vm1, %v825_v43  ;;  %802 = vst.msk [vmem:[#allocation4 + $0x20] sm:$0xff] %vm714_vm1, %v796_v44 }
 0x25a   : > { %v834_v45 = vpop.permute.xlu0 %833  ;;  %v823_v46 = vpop.permute.xlu1 %822 }
 0x25b   : > { %839 = vst.msk [vmem:[#allocation4 + $0x38] sm:$0xff] %vm714_vm1, %v834_v45  ;;  %829 = vst.msk [vmem:[#allocation3 + $0x30] sm:$0xff] %vm714_vm1, %v823_v46 }
 0x25e   : > { %v832_v47 = vpop.permute.xlu1 %831  ;;  %v722_v48 = vpop.permute.xlu0 %721 }
 0x25f   : > { %838 = vst.msk [vmem:[#allocation4 + $0x30] sm:$0xff] %vm714_vm1, %v832_v47  ;;  %727 = vst.msk [vmem:[#allocation4] sm:$0xff] %vm714_vm1, %v722_v48 }
 0x262   : > { %v744_v49 = vpop.permute.xlu0 %743  ;;  %v742_v50 = vpop.permute.xlu1 %741 }
 0x263   : > { %749 = vst.msk [vmem:[#allocation2 + $0x18] sm:$0xff] %vm714_vm1, %v744_v49  ;;  %748 = vst.msk [vmem:[#allocation2 + $0x10] sm:$0xff] %vm714_vm1, %v742_v50 }
 0x266   : > { %v780_v51 = vpop.permute.xlu0 %779  ;;  %v778_v52 = vpop.permute.xlu1 %777 }
 0x267   : > { %785 = vst.msk [vmem:[#allocation2 + $0x28] sm:$0xff] %vm714_vm1, %v780_v51  ;;  %784 = vst.msk [vmem:[#allocation2 + $0x20] sm:$0xff] %vm714_vm1, %v778_v52 }
 0x26a   : > { %v816_v53 = vpop.permute.xlu0 %815  ;;  %v814_v54 = vpop.permute.xlu1 %813 }
 0x26b   : > { %821 = vst.msk [vmem:[#allocation2 + $0x38] sm:$0xff] %vm714_vm1, %v816_v53  ;;  %820 = vst.msk [vmem:[#allocation2 + $0x30] sm:$0xff] %vm714_vm1, %v814_v54 }
 0x26e   : > { %v734_v55 = vpop.permute.xlu0 %733  ;;  %v732_v56 = vpop.permute.xlu1 %731 }
 0x26f   : > { %738 = vst.msk [vmem:[#allocation5 + $0x8] sm:$0xff] %vm714_vm1, %v734_v55  ;;  %737 = vst.msk [vmem:[#allocation5] sm:$0xff] %vm714_vm1, %v732_v56 }
 0x272   : > { %v771_v57 = vpop.permute.xlu0 %770  ;;  %v769_v58 = vpop.permute.xlu1 %768 }
 0x273   : > { %776 = vst.msk [vmem:[#allocation5 + $0x18] sm:$0xff] %vm714_vm1, %v771_v57  ;;  %775 = vst.msk [vmem:[#allocation5 + $0x10] sm:$0xff] %vm714_vm1, %v769_v58 }
 0x276   : > { %v807_v59 = vpop.permute.xlu0 %806  ;;  %v805_v60 = vpop.permute.xlu1 %804 }
 0x277   : > { %812 = vst.msk [vmem:[#allocation5 + $0x28] sm:$0xff] %vm714_vm1, %v807_v59  ;;  %811 = vst.msk [vmem:[#allocation5 + $0x20] sm:$0xff] %vm714_vm1, %v805_v60 }
 0x27a   : > { %v843_v61 = vpop.permute.xlu0 %842  ;;  %v841_v62 = vpop.permute.xlu1 %840 }
 0x27b   : > { %848 = vst.msk [vmem:[#allocation5 + $0x38] sm:$0xff] %vm714_vm1, %v843_v61  ;;  %847 = vst.msk [vmem:[#allocation5 + $0x30] sm:$0xff] %vm714_vm1, %v841_v62 }
 0x27c PF: > { %s2824_s16 = sld [smem:[#allocation25_spill]]  ;;  %vm877_vm2 = vcmask 64512   ;;  %v2114_v63 = vmov 0.0   ;;  %vm2115_vm3 = vmmov 0   ;;  %v872_v4 = vld [vmem:[%s439_s28] sm:$0xff]  ;;  %v873_v6 = vld [vmem:[%s439_s28 + $0x8] sm:$0xff] }
 0x27d   : > { %1577 = vmatprep.subr.mxu0 %v2114_v63  ;;  %1579 = vmatprep.mubr.msk.f32.mxu0 %vm2115_vm3, %v2114_v63  ;;  %s2825_s1 = sld [smem:[#allocation32_spill]]  ;;  %v1200_v29 = vld [vmem:[%s456_s13] sm:$0xff]  ;;  %s2826_s24 = sld [smem:[#allocation26_spill]]  ;;  %vm1286_vm4 = vcmask 261120  }
 0x27e   : > { %1582 = vmatprep.subr.mxu1 %v2114_v63  ;;  %1584 = vmatprep.mubr.msk.f32.mxu1 %vm2115_vm3, %v2114_v63  ;;  %s2827_s30 = sld [smem:[#allocation30_spill]]  ;;  %s1303_s23 = sshll.u32 %s2561_s29, 4  ;;  %s2671_s23 = int_to_ptr.vmem [resolvable:$true] %s1303_s23 }
 0x27f   : > { %s2828_s6 = sld [smem:[#allocation37_spill]] }
 0x282   : > { %s2631_s3 = sshll.u32 %s2824_s16, 4  ;;  %v1283_v44 = vld [vmem:[%s2561_s29 + $0x8] sm:$0xff]  ;;  %v1282_v45 = vld [vmem:[%s2561_s29] sm:$0xff] }
 0x283   : > { %s863_s5 = scalar_lea.vmem [#allocation3], %s2631_s3  ;;  %s860_s25 = scalar_lea.vmem [#allocation2], %s2631_s3  ;;  %v874_v5 = vld [vmem:[%s2825_s1] sm:$0xff] }
 0x284   : > { %v864_v0 = vld [vmem:[%s863_s5] sm:$0xff]  ;;  %v865_v1 = vld [vmem:[%s863_s5 + $0x8] sm:$0xff]  ;;  %v875_v7 = vadd.f32 %v874_v5, %v872_v4  ;;  %v876_v8 = vadd.f32 %v874_v5, %v873_v6  ;;  %s866_s15 = scalar_lea.vmem [#allocation4], %s2631_s3  ;;  %s869_s28 = scalar_lea.vmem [#allocation5], %s2631_s3 }
 0x285   : > { %1578 = vmatpush3.xpose.msk.msra.mxu0 %vm877_vm2, %v864_v0  ;;  %v861_v2 = vld [vmem:[%s860_s25] sm:$0xff]  ;;  %1583 = vmatpush3.xpose.msk.msra.mxu1 %vm877_vm2, %v865_v1  ;;  %v862_v3 = vld [vmem:[%s860_s25 + $0x8] sm:$0xff]  ;;  %s1531_s13 = sshll.u32 %s2826_s24, 8  ;;  %s1290_s3 = scalar_lea.sflag [#allocation8], %s2530_s22 }
 0x286   : > { %1587 = vmatprep.subr.mxu0 %v2114_v63  ;;  %1592 = vmatprep.subr.mxu1 %v2114_v63  ;;  %v867_v17 = vld [vmem:[%s866_s15] sm:$0xff]  ;;  %v868_v18 = vld [vmem:[%s866_s15 + $0x8] sm:$0xff]  ;;  %s2669_s16 = scalar_lea.hbm %s2828_s6, %s1531_s13  ;;  %s1962_s5 = scalar_lea.vmem %s2671_s23, 256 }
 0x287   : > { %v870_v33 = vld [vmem:[%s869_s28] sm:$0xff]  ;;  %v871_v39 = vld [vmem:[%s869_s28 + $0x8] sm:$0xff]  ;;  %p1963_p10 = scmp.ne.s32.totalorder %s2671_s23, %s1962_s5  ;;  %p2829_p13 = scmp.ne.s32.totalorder %s2827_s30, 0 }
 0x288   : > { %1580 = vmatmul.mubr.msk.f32.vlgmr.msra.gmra.mrb[0].mxu0 %vm877_vm2, %v861_v2  ;;  %1585 = vmatmul.mubr.msk.f32.vlgmr.msra.gmra.mrb[0].mxu1 %vm877_vm2, %v862_v3  ;;  %s2116_s25 = smov [#allocation17]  }
 0x289   : > { %1589 = vmatprep.mubr.msk.f32.mxu0 %vm2115_vm3, %v2114_v63  ;;  %1594 = vmatprep.mubr.msk.f32.mxu1 %vm2115_vm3, %v2114_v63  ;;  %p1964_p4 = pnand %p1963_p10, %p2829_p13  ;;  %s1966_s21 = sshll.u32 %s2116_s25, 4  ;;  %s1967_s21 = int_to_ptr.vmem [resolvable:$false] %s1966_s21 }
 0x28a   : > { %1588 = vmatpush3.msra.mxu0 %v867_v17  ;;  %1593 = vmatpush3.msra.mxu1 %v868_v18  ;;  %s1968_s4 = scalar_lea.vmem %s1967_s21, 512  ;;  %p1969_p8 = scmp.lt.s32.totalorder %s2671_s23, %s1967_s21 }
 0x28b   : > { %1597 = vmatprep.subr.mxu0 %v1200_v29  ;;  %p1965_p11 = pneg %p1964_p4  ;;  %p1970_p3 = scmp.lt.s32.totalorder %s1968_s4, %s1962_s5 }
 0x28d   : > { %p1971_p5 = por %p1970_p3, %p1969_p8 }
 0x28f   : > { %p1972_p9 = pnand %p1971_p5, %p1965_p11 }
 0x35b   : > { %v950_v9 = vpop.f32.mrb[0].mxu0  ;;  %v1026_v10 = vpop.f32.mrb[0].mxu1 }
 0x35c   : > { %v951_v11 = vadd.f32 %v950_v9, %v875_v7  ;;  %v1581_v12 = vpop.f32.mrb[1].mxu0  ;;  %v1027_v13 = vadd.f32 %v1026_v10, %v876_v8  ;;  %v1586_v14 = vpop.f32.mrb[1].mxu1 }
 0x35e   : > { %v1030_v15 = vsel %vm877_vm2, %v951_v11, -inf  ;;  %v1033_v16 = vsel %vm877_vm2, %v1027_v13, -inf }
 0x35f   : > { %1031 = vmax.xlane.f32.xlu0 %v1030_v15 }
 0x363   : > { %1034 = vmax.xlane.f32.xlu0 %v1033_v16 }
 0x3ec   : > { %v1032_v19 = vpop.xlane.xlu0 %1031 }
 0x3ed   : > { %v1036_v20 = vsub.f32 %v951_v11, %v1032_v19 }
 0x3ef   : > { %v1038_v21 = vmul.f32 1.442695, %v1036_v20 }
 0x3f0   : > { %v1035_v22 = vpop.xlane.xlu0 %1034 }
 0x3f1   : > { %1778 = vpow2.f32 %v1038_v21  ;;  %v1037_v23 = vsub.f32 %v1027_v13, %v1035_v22 }
 0x3f3   : > { %v1040_v24 = vmul.f32 1.442695, %v1037_v23 }
 0x3f5   : > { %1780 = vpow2.f32 %v1040_v24 }
 0x3fb   : > { %v1779_v25 = vpop.eup %1778 }
 0x3fc   : > { %1590 = vmatmul.mubr.msk.f32.vlgmr.msra.gmra.mrb[2].mxu0 %vm877_vm2, %v1779_v25  ;;  %v1042_v26 = vsel %vm877_vm2, %v1779_v25, 0.0 }
 0x3fd   : > { %1043 = vadd.xlane.f32.xlu1 %v1042_v26  ;;  %1598 = vmatpush3.msra.mxu0 %v1200_v29 }
 0x3ff   : > { %v1781_v27 = vpop.eup %1780 }
 0x400   : > { %1595 = vmatmul.mubr.msk.f32.vlgmr.msra.gmra.mrb[2].mxu1 %vm877_vm2, %v1781_v27  ;;  %v1045_v28 = vsel %vm877_vm2, %v1781_v27, 0.0 }
 0x401   : > { %1046 = vadd.xlane.f32.xlu1 %v1045_v28 }
 0x48a   : > { %v1044_v30 = vpop.xlane.xlu1 %1043 }
 0x48b   : > { %1782 = vrcp.f32 %v1044_v30 }
 0x48e   : > { %v1047_v31 = vpop.xlane.xlu1 %1046 }
 0x48f   : > { %1784 = vrcp.f32 %v1047_v31 }
 0x495   : > { %v1783_v32 = vpop.eup %1782 }
 0x499   : > { %v1785_v38 = vpop.eup %1784 }
 0x4cf   : > { %v1117_v34 = vpop.f32.mrb[2].mxu0 }
 0x4d0   : > { %v1196_v35 = vmul.f32 %v1783_v32, %v1117_v34  ;;  %v1591_v36 = vpop.f32.mrb[3].mxu0 }
 0x4d2   : > { %v1198_v37 = vmul.f32 %v1196_v35, %v870_v33 }
 0x4d3   : > { %v1190_v40 = vpop.f32.mrb[2].mxu1 }
 0x4d4   : > { %v1197_v41 = vmul.f32 %v1785_v38, %v1190_v40  ;;  %v1596_v42 = vpop.f32.mrb[3].mxu1  ;;  %1599 = vmatprep.mubr.msk.f32.mxu0 %vm877_vm2, %v1198_v37 }
 0x4d6   : > { %v1199_v43 = vmul.f32 %v1197_v41, %v871_v39 }
 0x4d8   : > { %1600 = vmatmul.mubr.msk.f32.vlgmr.msra.gmra.mrb[4].mxu0 %vm877_vm2, %v1199_v43 }
 0x5ab   : > { %v1601_v46 = vpop.f32.mrb[4].mxu0 }
 0x5ac   : > { %v1285_v47 = vadd.f32 %v1601_v46, %v1283_v44  ;;  %v1273_v48 = vpop.f32.mrb[5].mxu0 }
 0x5ad   : > { %v1284_v49 = vadd.f32 %v1282_v45, %v1273_v48 }
 0x5ae   : > { %1288 = vst.msk [vmem:[%s2561_s29 + $0x8] sm:$0xff] %vm1286_vm4, %v1285_v47 }
 0x5af   : > { %1287 = vst.msk [vmem:[%s2561_s29] sm:$0xff] %vm1286_vm4, %v1284_v49 }
 0x5b0   : > { %1975 = shalt.err (!%p1972_p9)
}
 0x5b1   : > { %s1976_s29 = scalar_lea.hbm %s2669_s16, 256  ;;  %s1980_s24 = scalar_lea.hbm %s2828_s6, 512 }
 0x5b2   : > { %p1977_p1 = scmp.ne.s32.totalorder %s2669_s16, %s1976_s29  ;;  %p1981_p7 = scmp.lt.u32.totalorder %s2669_s16, %s2828_s6 }
 0x5b3   : > { %p1982_p12 = scmp.lt.u32.totalorder %s1980_s24, %s1976_s29  ;;  %p1984_p10 = scmp.lt.u32.totalorder %s1976_s29, %s2669_s16 }
 0x5b4   : > { %p1978_p6 = pnand %p1977_p1, %p2829_p13 }
 0x5b5   : > { %p1983_p2 = por %p1982_p12, %p1981_p7 }
 0x5b6   : > { %p1979_p0 = pneg %p1978_p6 }
 0x5b7   : > { %p1985_p4 = por %p1984_p10, %p1983_p2 }
 0x5b9   : > { %p1986_p11 = pnand %p1985_p4, %p1979_p0 }
 0x5bb   : > { %1989 = shalt.err (!%p1986_p11)
}
 0x5bc   : > { %s2117_s27 = smov 128   ;;  %s2118_s20 = smov 8  }
 0x5bd   : > { %1634 = dma.vmem_to_hbm [thread:$0]  (%p2829_p13), %s2671_s23, 256, %s2669_s16, %s1290_s3, %s2117_s27, %s2117_s27, %s2118_s20  }
 0x5be PF: > { %s2830_s5 = sld [smem:[#allocation23_spill]]  ;;  %s2831_s25 = sld [smem:[#allocation28_spill]] }
 0x5bf   : > { %p1665_p8 = scmp.ge.s32.totalorder %s2096_s19, 2 }
 0x5c4   : > { %s1318_s21 = sand.u32 1, %s2830_s5   ;;  %p2832_p3 = scmp.ne.s32.totalorder %s2831_s25, 0 }
 0x5c5   : > { %s1319_s4 = scalar_lea.sflag [#allocation8], %s1318_s21 }
 0x5c6   : > { %p1657_p5 = pnand %p1665_p8, %p2832_p3 }
 0x5c8   : > { %2051 = dma.done.wait (!%p1657_p5), %s1319_s4, 256  }
 0x5c9   : > { %2053 = vsyncadd (!%p1657_p5), %s1319_s4, 4294967040  ;;  %s32_s19 = sadd.s32 1, %s2096_s19   ;;  %s2833_s29 = sld [smem:[#allocation24_spill]] }
 0x5ca   : > { %p29_p9 = scmp.ge.s32.totalorder %s32_s19, 10   ;;  %s2834_s22 = smov %s2485_s12 }
 0x5cb   : > { %s2835_s30 = smov %s2060_s10  ;;  %s2836_s10 = smov %s2064_s11 }
 0x5cc   : > { %s2837_s11 = smov %s2477_s8  ;;  %s2839_s13 = smov %s2076_s14 }
 0x5cd   : > { %s2840_s14 = smov %s2834_s22  ;;  %s2841_s15 = smov %s2088_s17 }
 0x5ce   : > { %s2842_s16 = smov %s2092_s18  ;;  %s2843_s17 = smov %s2846_s26 }
 0x5cf   : > { %s2838_s12 = smov %s2833_s29  ;;  %s2844_s18 = smov %s2850_s9 }
 0x5d0   :  { %31 = sbr.rel (!%p29_p9) target bundleno = 22 (0x16), region = 166 }
 0x5d7   :  { %1324 = vsyncpa [#allocation7], 1 }
 0x5d8   :  { %1326 = vsyncpa [#allocation7 + $0x1], 1 }
 0x5d9   :  { %1327 = vsyncpa [#allocation10], 1 }
 0x5da   :  { %1329 = vsyncpa [#allocation10 + $0x1], 1 }
 0x5db   :  { %1330 = vsyncpa [#allocation13], 1 }
 0x5dc   :  { %1331 = vsyncpa [#allocation16], 1 }
 0x5dd   :  { %1333 = vsyncpa [#allocation16 + $0x1], 1 }
 0x5de   :  { %1334 = vsyncpa [#allocation8], 1 }
 0x5df   :  { %1336 = vsyncpa [#allocation8 + $0x1], 1 }

// kernel: tpu_custom_call.1
= control target key start
LH: loop header
LB: loop body
LE: loop exit
PB: predicated region body
PF: predicated region fallthrough
CT: control target
= control target key end

     0   :  { %s2736_s0 = inlined_call_operand.hbm [shape: f32[4,8,32], index: 0, kind: input, shape index: {}]   ;;  %s2737_s1 = inlined_call_operand.hbm [shape: f32[4,8,32], index: 1, kind: input, shape index: {}]   ;;  %s2738_s2 = inlined_call_operand.hbm [shape: f32[4,8,8], index: 2, kind: input, shape index: {}]   ;;  %s2739_s3 = inlined_call_operand.vmem [shape: f32[8,8], index: 3, kind: input, shape index: {}]   ;;  %s2740_s4 = inlined_call_operand.hbm [shape: f32[32,64], index: 4, kind: input, shape index: {}]   ;;  %s2741_s5 = inlined_call_operand.hbm [shape: f32[32,64], index: 5, kind: input, shape index: {}]   ;;  %s2742_s6 = inlined_call_operand.vmem [shape: f32[1,32], index: 6, kind: input, shape index: {}]   ;;  %s2743_s7 = inlined_call_operand.hbm [shape: f32[4,8,32], index: 7, kind: input, shape index: {}]   ;;  %s2744_s8 = inlined_call_operand.vmem [shape: f32[1,32], index: 8, kind: input, shape index: {}]   ;;  %s2745_s9 = inlined_call_operand.hbm [shape: f32[4,8,32], index: 9, kind: output, shape index: {}]  }
   0x1   :  { %2773 = sst [smem:[#allocation31_spill]] %s2737_s1 }
   0x2   :  { %2774 = sst [smem:[#allocation32_spill]] %s2739_s3 }
   0x3   :  { %2775 = sst [smem:[#allocation33_spill]] %s2740_s4 }
   0x4   :  { %2776 = sst [smem:[#allocation34_spill]] %s2741_s5 }
   0x5   :  { %2777 = sst [smem:[#allocation35_spill]] %s2742_s6 }
   0x6   :  { %2778 = sst [smem:[#allocation36_spill]] %s2744_s8 }
   0x7   :  { %2779 = sst [smem:[#allocation37_spill]] %s2745_s9 }
   0x8   :  { %14 = vsyncpa [#allocation7], 0 }
   0x9   :  { %16 = vsyncpa [#allocation7 + $0x1], 0 }
   0xa   :  { %17 = vsyncpa [#allocation10], 0 }
   0xb   :  { %19 = vsyncpa [#allocation10 + $0x1], 0 }
   0xc   :  { %20 = vsyncpa [#allocation13], 0 }
   0xd   :  { %21 = vsyncpa [#allocation16], 0 }
   0xe   :  { %23 = vsyncpa [#allocation16 + $0x1], 0 }
   0xf   :  { %24 = vsyncpa [#allocation8], 0 }
  0x10   :  { %26 = vsyncpa [#allocation8 + $0x1], 0  ;;  %s2169_s30 = smov 0   ;;  %s2171_s10 = smov 0  }
  0x11   :  { %s2173_s11 = smov 0   ;;  %s2175_s12 = smov 0  }
  0x12   :  { %s2177_s13 = smov 0   ;;  %s2179_s14 = smov 0  }
  0x13   :  { %s2181_s15 = smov 0   ;;  %s2183_s16 = smov 0  }
  0x14   :  { %s2185_s17 = smov 0   ;;  %s2187_s18 = smov 0  }
  0x15   :  { %s2189_s19 = smov 0  }
  0x16 LB: > { %2780 = sst [smem:[#allocation23_spill]] %s2068_s12  ;;  %s2225_s20 = sadd.s32 4294967295, %s2096_s19   ;;  %s2096_s19 = sphi %s2189_s19, %s32_s19   ;;  %s2092_s18 = sphi %s2187_s18, %s2844_s18   ;;  %s2088_s17 = sphi %s2185_s17, %s2843_s17   ;;  %s2084_s16 = sphi %s2183_s16, %s2842_s16   ;;  %s2080_s15 = sphi %s2181_s15, %s2841_s15   ;;  %s2076_s14 = sphi %s2179_s14, %s2840_s14   ;;  %s2072_s13 = sphi %s2177_s13, %s2839_s13   ;;  %s2068_s12 = sphi %s2175_s12, %s2838_s12   ;;  %s2064_s11 = sphi %s2173_s11, %s2837_s11   ;;  %s2060_s10 = sphi %s2171_s10, %s2836_s10   ;;  %s2056_s30 = sphi %s2169_s30, %s2835_s30  }
  0x17   : > { %2781 = sst [smem:[#allocation24_spill]] %s2072_s13  ;;  %s1481_s21 = sadd.s32 4294967294, %s2096_s19  }
  0x18   : > { %2782 = sst [smem:[#allocation25_spill]] %s2080_s15  ;;  %p64_p0 = scmp.ne.s32.totalorder %s2072_s13, %s2068_s12 }
  0x19   : > { %2783 = sst [smem:[#allocation26_spill]] %s2084_s16  ;;  %p2749_p1 = scmp.eq.s32.totalorder %s2225_s20, 0 }
  0x1a   : > { %p277_p3 = scmp.eq.s32.totalorder %s1481_s21, 7  ;;  %p1482_p5 = scmp.ge.s32.totalorder %s2096_s19, 1 }
  0x1b   : > { %p2234_p4 = por %p2749_p1, %p64_p0  ;;  %p284_p7 = scmp.lt.s32.totalorder %s2096_s19, 9 }
  0x1c   : > { %p2239_p6 = por %p277_p3, %p64_p0  ;;  %s2098_s25 = smov [#allocation12]  }
  0x1d   : > { %s2784_s22 = scalar_select %p2234_p4, 1, 0 }
  0x1e   : > { %s2786_s23 = scalar_select %p2239_p6, 1, 0 }
  0x1f   : > { %2785 = sst [smem:[#allocation27_spill]] %s2784_s22  ;;  %p2244_p8 = pnand %p1482_p5, %p284_p7 }
  0x20   : > { %2787 = sst [smem:[#allocation28_spill]] %s2786_s23  ;;  %s299_s26 = sshll.u32 %s2098_s25, 4  ;;  %s300_s26 = int_to_ptr.vmem [resolvable:$true] %s299_s26 }
  0x21   : > { %s2788_s24 = scalar_select %p2244_p8, 1, 0 }
  0x22   : > { %p1636_p9 = pneg %p2244_p8  ;;  %s2791_s4 = sld [smem:[#allocation33_spill]] }
  0x23   : > { %2789 = sst [smem:[#allocation29_spill]] %s2788_s24 }
  0x24   : > { %p2252_p10 = pnand %p1636_p9, %p2749_p1 }
  0x26   : > { %s2790_s27 = scalar_select %p2252_p10, 1, 0 }
  0x27   : > { %p2763_p12 = pneg %p2252_p10 }
  0x28   : > { %s1786_s23 = scalar_lea.hbm %s2791_s4, 512 }
  0x29   : > { %p1787_p11 = scmp.ne.s32.totalorder %s2791_s4, %s1786_s23  ;;  %p1793_p3 = scmp.lt.u32.totalorder %s1786_s23, %s2791_s4 }
  0x2b   : > { %p1789_p13 = pnand %p2763_p12, %p1787_p11 }
  0x2d   : > { %p1790_p0 = pneg %p1789_p13 }
  0x2f   : > { %p1795_p5 = pnand %p1793_p3, %p1790_p0 }
  0x31   : > { %1798 = shalt.err (!%p1795_p5)
}
  0x32   : > { %s1799_s28 = scalar_lea.vmem %s300_s26, 512  ;;  %p1807_p2 = scmp.lt.s32.totalorder %s300_s26, %s300_s26 }
  0x33   : > { %p1800_p7 = scmp.ne.s32.totalorder %s300_s26, %s1799_s28  ;;  %p1808_p6 = scmp.lt.s32.totalorder %s1799_s28, %s1799_s28 }
  0x35   : > { %p1802_p9 = pnand %p1800_p7, %p2763_p12  ;;  %p1809_p4 = por %p1808_p6, %p1807_p2 }
  0x37   : > { %p1803_p1 = pneg %p1802_p9 }
  0x39   : > { %p1810_p8 = pnand %p1809_p4, %p1803_p1 }
  0x3b   : > { %1813 = shalt.err (!%p1810_p8)
}
  0x3c   : > { %s2752_s9 = smov 128   ;;  %s2754_s12 = smov 8  }
  0x3d   : > { %1639 = dma.hbm_to_vmem [thread:$0]  (!%p2252_p10), %s2791_s4, 512, %s300_s26, [#allocation13], %s2752_s9, %s2752_s9, %s2754_s12  }
  0x3e   : > { %p58_p1 = scmp.ne.s32.totalorder %s2076_s14, %s2072_s13  ;;  %p2762_p2 = scmp.eq.s32.totalorder %s2096_s19, 0 }
  0x3f   : > { %p2761_p4 = scmp.lt.s32.totalorder %s2096_s19, 8  ;;  %s2756_s28 = sand.u32 1, %s2076_s14  }
  0x40   : > { %p60_p6 = por %p2762_p2, %p58_p1  ;;  %p2792_p8 = scmp.eq.s32.totalorder %s2225_s20, 7 }
  0x41   : > { %s2297_s21 = sshll.u32 %s2756_s28, 4  ;;  %s2300_s25 = sshll.u32 %s2092_s18, 8 }
  0x42   : > { %p2291_p11 = por %p2792_p8, %p58_p1  ;;  %p2304_p13 = pnand %p2761_p4, %p60_p6 }
  0x43   : > { %s353_s16 = sand.u32 1, %s2096_s19   ;;  %s2796_s1 = sld [smem:[#allocation31_spill]] }
  0x44   : > { %s2793_s29 = scalar_select %p2291_p11, 1, 0 }
  0x45   : > { %s2795_s26 = scalar_select %p2304_p13, 1, 0 }
  0x46   : > { %2794 = sst [smem:[#allocation30_spill]] %s2793_s29  ;;  %s357_s28 = scalar_lea.vmem [#allocation9], %s2297_s21 }
  0x47   : > { %s364_s4 = sshll.u32 %s357_s28, 4  ;;  %s2101_s29 = smov [#allocation14]   ;;  %s2316_s4 = int_to_ptr.vmem [resolvable:$true] %s364_s4 }
  0x48   : > { %s2318_s3 = sshll.u32 %s2101_s29, 4  ;;  %s2320_s6 = scalar_lea.sflag [#allocation10], %s353_s16  ;;  %s313_s3 = int_to_ptr.vmem [resolvable:$true] %s2318_s3 }
  0x49   : > { %s2313_s12 = scalar_lea.hbm %s2796_s1, %s2300_s25  ;;  %p2326_p3 = pneg %p2304_p13 }
  0x4a   : > { %s1814_s8 = scalar_lea.hbm %s2313_s12, 256  ;;  %s1819_s15 = scalar_lea.hbm %s2796_s1, 512 }
  0x4b   : > { %p1815_p0 = scmp.ne.s32.totalorder %s2313_s12, %s1814_s8  ;;  %p1820_p9 = scmp.lt.u32.totalorder %s2313_s12, %s2796_s1 }
  0x4c   : > { %s2797_s9 = scalar_select %p2326_p3, 1, 0 }
  0x4d   : > { %p1817_p5 = pnand %p2326_p3, %p1815_p0  ;;  %p1821_p1 = scmp.lt.u32.totalorder %s1819_s15, %s1814_s8 }
  0x4e   : > { %p1823_p8 = scmp.lt.u32.totalorder %s1814_s8, %s2313_s12 }
  0x4f   : > { %p1818_p7 = pneg %p1817_p5  ;;  %p1822_p6 = por %p1821_p1, %p1820_p9 }
  0x51   : > { %p1824_p4 = por %p1823_p8, %p1822_p6 }
  0x53   : > { %p1825_p2 = pnand %p1824_p4, %p1818_p7 }
  0x55   : > { %1828 = shalt.err (!%p1825_p2)
}
  0x56   : > { %s1829_s16 = scalar_lea.vmem %s2316_s4, 256  ;;  %s2102_s23 = smov [#allocation9]  }
  0x57   : > { %p1830_p0 = scmp.ne.s32.totalorder %s2316_s4, %s1829_s16  ;;  %s1834_s28 = sshll.u32 %s2102_s23, 4  ;;  %s1835_s28 = int_to_ptr.vmem [resolvable:$false] %s1834_s28 }
  0x58   : > { %s1836_s22 = scalar_lea.vmem %s1835_s28, 512  ;;  %p1837_p11 = scmp.lt.s32.totalorder %s2316_s4, %s1835_s28 }
  0x59   : > { %p1832_p5 = pnand %p1830_p0, %p2326_p3  ;;  %p1838_p10 = scmp.lt.s32.totalorder %s1836_s22, %s1829_s16 }
  0x5b   : > { %p1833_p12 = pneg %p1832_p5  ;;  %p1839_p9 = por %p1838_p10, %p1837_p11 }
  0x5d   : > { %p1840_p1 = pnand %p1839_p9, %p1833_p12 }
  0x5f   : > { %1843 = shalt.err (!%p1840_p1)
}
  0x60   : > { %s2798_s8 = smov 8   ;;  %s2799_s15 = smov 128  }
  0x61   : > { %1649 = dma.hbm_to_vmem [thread:$0]  (!%p2304_p13), %s2313_s12, 256, %s2316_s4, %s2320_s6, %s2799_s15, %s2799_s15, %s2798_s8  }
  0x62   : > { %s2800_s5 = sld [smem:[#allocation34_spill]]  ;;  %p2801_p12 = scmp.ne.s32.totalorder %s2790_s27, 0 }
  0x64   : > { %p2802_p2 = pneg %p2801_p12 }
  0x68   : > { %s1844_s28 = scalar_lea.hbm %s2800_s5, 512 }
  0x69   : > { %p1845_p10 = scmp.ne.s32.totalorder %s2800_s5, %s1844_s28  ;;  %p1851_p7 = scmp.lt.u32.totalorder %s1844_s28, %s2800_s5 }
  0x6b   : > { %p1847_p4 = pnand %p1845_p10, %p2802_p2 }
  0x6d   : > { %p1848_p11 = pneg %p1847_p4 }
  0x6f   : > { %p1853_p6 = pnand %p1851_p7, %p1848_p11 }
  0x71   : > { %1856 = shalt.err (!%p1853_p6)
}
  0x72   : > { %s1857_s4 = scalar_lea.vmem %s313_s3, 512  ;;  %p2803_p0 = pmov %p2802_p2 }
  0x73   : > { %p1858_p8 = scmp.ne.s32.totalorder %s313_s3, %s1857_s4  ;;  %p1865_p1 = scmp.lt.s32.totalorder %s313_s3, %s313_s3 }
  0x74   : > { %p1866_p13 = scmp.lt.s32.totalorder %s1857_s4, %s1857_s4 }
  0x75   : > { %p1860_p5 = pnand %p1858_p8, %p2803_p0 }
  0x76   : > { %p1867_p3 = por %p1866_p13, %p1865_p1 }
  0x77   : > { %p1861_p9 = pneg %p1860_p5 }
  0x79   : > { %p1868_p2 = pnand %p1867_p3, %p1861_p9 }
  0x7b   : > { %1871 = shalt.err (!%p1868_p2)
}
  0x7c   : > { %1642 = dma.hbm_to_vmem [thread:$0]  (!%p2801_p12), %s2800_s5, 512, %s313_s3, [#allocation13], %s2799_s15, %s2799_s15, %s2798_s8  }
  0x7d   : > { %s2381_s23 = scalar_lea.hbm %s2736_s0, %s2300_s25  ;;  %s336_s27 = scalar_lea.vmem [#allocation6], %s2297_s21 }
  0x7e   : > { %s343_s28 = sshll.u32 %s336_s27, 4  ;;  %s2390_s4 = scalar_lea.hbm %s2738_s2, %s2300_s25  ;;  %s2384_s28 = int_to_ptr.vmem [resolvable:$true] %s343_s28 }
  0x7f   : > { %s2804_s1 = sand.u32 1, %s2076_s14   ;;  %s1872_s13 = scalar_lea.hbm %s2381_s23, 256 }
  0x80   : > { %s2394_s3 = scalar_lea.sflag [#allocation7], %s2804_s1  ;;  %p1873_p13 = scmp.ne.s32.totalorder %s2381_s23, %s1872_s13 }
  0x81   : > { %p2805_p3 = scmp.ne.s32.totalorder %s2797_s9, 0  ;;  %s1877_s5 = scalar_lea.hbm %s2736_s0, 512 }
  0x82   : > { %p1878_p4 = scmp.lt.u32.totalorder %s2381_s23, %s2736_s0  ;;  %p1879_p11 = scmp.lt.u32.totalorder %s1877_s5, %s1872_s13 }
  0x83   : > { %p1875_p10 = pnand %p1873_p13, %p2805_p3  ;;  %p1881_p6 = scmp.lt.u32.totalorder %s1872_s13, %s2381_s23 }
  0x84   : > { %p1880_p7 = por %p1879_p11, %p1878_p4 }
  0x85   : > { %p1876_p12 = pneg %p1875_p10 }
  0x86   : > { %p1882_p8 = por %p1881_p6, %p1880_p7 }
  0x88   : > { %p1883_p0 = pnand %p1882_p8, %p1876_p12 }
  0x8a   : > { %1886 = shalt.err (!%p1883_p0)
}
  0x8b   : > { %s1887_s25 = scalar_lea.vmem %s2384_s28, 256  ;;  %s2103_s16 = smov [#allocation6]  }
  0x8c   : > { %p1888_p5 = scmp.ne.s32.totalorder %s2384_s28, %s1887_s25  ;;  %s1892_s22 = sshll.u32 %s2103_s16, 4  ;;  %s1893_s22 = int_to_ptr.vmem [resolvable:$false] %s1892_s22 }
  0x8d   : > { %s1894_s24 = scalar_lea.vmem %s1893_s22, 512  ;;  %p1895_p2 = scmp.lt.s32.totalorder %s2384_s28, %s1893_s22 }
  0x8e   : > { %p1890_p9 = pnand %p1888_p5, %p2805_p3  ;;  %p1896_p13 = scmp.lt.s32.totalorder %s1894_s24, %s1887_s25 }
  0x90   : > { %p1891_p1 = pneg %p1890_p9  ;;  %p1897_p10 = por %p1896_p13, %p1895_p2 }
  0x92   : > { %p1898_p4 = pnand %p1897_p10, %p1891_p1 }
  0x94   : > { %1901 = shalt.err (!%p1898_p4)
}
  0x95   : > { %p2806_p12 = scmp.ne.s32.totalorder %s2795_s26, 0  ;;  %s378_s5 = scalar_lea.vmem [#allocation11], %s2297_s21 }
  0x96   : > { %s385_s1 = sshll.u32 %s378_s5, 4  ;;  %s1902_s13 = scalar_lea.hbm %s2390_s4, 256  ;;  %s2422_s1 = int_to_ptr.vmem [resolvable:$true] %s385_s1 }
  0x97   : > { %1646 = dma.hbm_to_vmem [thread:$0]  (!%p2806_p12), %s2381_s23, 256, %s2384_s28, %s2394_s3, %s2799_s15, %s2799_s15, %s2798_s8  }
  0x98   : > { %p1903_p11 = scmp.ne.s32.totalorder %s2390_s4, %s1902_s13  ;;  %s1907_s27 = scalar_lea.hbm %s2738_s2, 512 }
  0x99   : > { %p1908_p8 = scmp.lt.u32.totalorder %s2390_s4, %s2738_s2  ;;  %p1909_p0 = scmp.lt.u32.totalorder %s1907_s27, %s1902_s13 }
  0x9a   : > { %p1905_p7 = pnand %p1903_p11, %p2805_p3  ;;  %p1911_p9 = scmp.lt.u32.totalorder %s1902_s13, %s2390_s4 }
  0x9b   : > { %p1910_p5 = por %p1909_p0, %p1908_p8 }
  0x9c   : > { %p1906_p6 = pneg %p1905_p7 }
  0x9d   : > { %p1912_p1 = por %p1911_p9, %p1910_p5 }
  0x9f   : > { %p1913_p2 = pnand %p1912_p1, %p1906_p6 }
  0xa1   : > { %1916 = shalt.err (!%p1913_p2)
}
  0xa2   : > { %s1917_s21 = scalar_lea.vmem %s2422_s1, 256  ;;  %s2104_s23 = smov [#allocation11]  }
  0xa3   : > { %p1918_p13 = scmp.ne.s32.totalorder %s2422_s1, %s1917_s21  ;;  %s1922_s28 = sshll.u32 %s2104_s23, 4  ;;  %s1923_s28 = int_to_ptr.vmem [resolvable:$false] %s1922_s28 }
  0xa4   : > { %s1924_s3 = scalar_lea.vmem %s1923_s28, 512  ;;  %p1925_p11 = scmp.lt.s32.totalorder %s2422_s1, %s1923_s28 }
  0xa5   : > { %p1920_p10 = pnand %p1918_p13, %p2805_p3  ;;  %p1926_p7 = scmp.lt.s32.totalorder %s1924_s3, %s1917_s21 }
  0xa7   : > { %p1921_p4 = pneg %p1920_p10  ;;  %p1927_p8 = por %p1926_p7, %p1925_p11 }
  0xa9   : > { %p1928_p0 = pnand %p1927_p8, %p1921_p4 }
  0xab   : > { %1931 = shalt.err (!%p1928_p0)
}
  0xac   : > { %1652 = dma.hbm_to_vmem [thread:$0]  (!%p2806_p12), %s2390_s4, 256, %s2422_s1, %s2320_s6, %s2799_s15, %s2799_s15, %s2798_s8  }
  0xad   : > { %s41_s26 = sadd.s32 1, %s2088_s17  ;;  %s44_s9 = sadd.s32 1, %s2092_s18 }
  0xae   : > { %p42_p3 = scmp.ge.s32.totalorder %s41_s26, 4  ;;  %s213_s22 = sadd.s32 1, %s2064_s11 }
  0xaf   : > { %p220_p6 = scmp.ne.s32.totalorder %s2064_s11, %s2060_s10  ;;  %p226_p5 = scmp.ne.s32.totalorder %s2060_s10, %s2056_s30 }
  0xb0   : > { %s2846_s26 = smov (%p42_p3, %s41_s26), 0  ;;  %s2848_s9 = smov (!%p42_p3, %s44_s9), %s2092_s18 }
  0xb1   : > { %s210_s24 = ssub.s32 %s2088_s17, %s2846_s26  ;;  %p2807_p9 = scmp.eq.s32.totalorder %s2096_s19, 0 }
  0xb2   : > { %p46_p12 = scmp.ge.s32.totalorder %s2848_s9, 2  ;;  %p211_p2 = scmp.eq.s32.totalorder %s210_s24, 0 }
  0xb3   : > { %p2463_p1 = por %p220_p6, %p2807_p9  ;;  %p2809_p13 = scmp.eq.s32.totalorder %s2225_s20, 0 }
  0xb4   : > { %s395_s30 = sand.u32 1, %s2064_s11   ;;  %s2850_s9 = smov (%p46_p12, %s2848_s9), 0 }
  0xb5   : > { %p2469_p10 = por %p226_p5, %p2809_p13  ;;  %s48_s15 = ssub.s32 %s2092_s18, %s2850_s9 }
  0xb6   : > { %s2477_s8 = scalar_select %p211_p2, %s2064_s11, %s213_s22  }
  0xb7   : > { %p49_p4 = scmp.eq.s32.totalorder %s48_s15, 0  ;;  %s1495_s4 = sshll.u32 %s395_s30, 3 }
  0xb8   : > { %s1496_s1 = sshll.u32 %s2088_s17, 7  ;;  %s2811_s13 = sadd.s32 1, %s2076_s14 }
  0xb9   : > { %s2485_s12 = scalar_select %p49_p4, %s2076_s14, %s2811_s13  }
  0xba   : > { %s2490_s25 = scalar_lea.hbm %s2743_s7, %s1496_s1  ;;  %s399_s16 = scalar_lea.vmem [#allocation15], %s1495_s4 }
  0xbb   : > { %s406_s21 = sshll.u32 %s399_s16, 4  ;;  %p2812_p11 = scmp.lt.s32.totalorder %s2096_s19, 8  ;;  %s2492_s21 = int_to_ptr.vmem [resolvable:$true] %s406_s21 }
  0xbc   : > { %s396_s28 = scalar_lea.sflag [#allocation16], %s395_s30  ;;  %s1932_s3 = scalar_lea.hbm %s2490_s25, 128 }
  0xbd   : > { %p2498_p7 = pnand %p2812_p11, %p2463_p1  ;;  %p1933_p8 = scmp.ne.s32.totalorder %s2490_s25, %s1932_s3 }
  0xbe   : > { %s1937_s5 = scalar_lea.hbm %s2743_s7, 512  ;;  %p1938_p5 = scmp.lt.u32.totalorder %s2490_s25, %s2743_s7 }
  0xbf   : > { %p1934_p0 = pneg %p2498_p7  ;;  %p1939_p9 = scmp.lt.u32.totalorder %s1937_s5, %s1932_s3 }
  0xc0   : > { %p1941_p12 = scmp.lt.u32.totalorder %s1932_s3, %s2490_s25 }
  0xc1   : > { %p1935_p3 = pnand %p1934_p0, %p1933_p8  ;;  %p1940_p1 = por %p1939_p9, %p1938_p5 }
  0xc3   : > { %p1936_p6 = pneg %p1935_p3  ;;  %p1942_p2 = por %p1941_p12, %p1940_p1 }
  0xc5   : > { %p1943_p13 = pnand %p1942_p2, %p1936_p6 }
  0xc7   : > { %1946 = shalt.err (!%p1943_p13)
}
  0xc8   : > { %s1947_s30 = scalar_lea.vmem %s2492_s21, 128  ;;  %s2105_s1 = smov [#allocation15]  }
  0xc9   : > { %p1948_p4 = scmp.ne.s32.totalorder %s2492_s21, %s1947_s30  ;;  %s1952_s13 = sshll.u32 %s2105_s1, 4  ;;  %s1953_s13 = int_to_ptr.vmem [resolvable:$false] %s1952_s13 }
  0xca   : > { %s1954_s29 = scalar_lea.vmem %s1953_s13, 256  ;;  %p1955_p3 = scmp.lt.s32.totalorder %s2492_s21, %s1953_s13 }
  0xcb   : > { %p1950_p11 = pnand %p1948_p4, %p1934_p0  ;;  %p1956_p5 = scmp.lt.s32.totalorder %s1954_s29, %s1947_s30 }
  0xcd   : > { %p1951_p8 = pneg %p1950_p11  ;;  %p1957_p9 = por %p1956_p5, %p1955_p3 }
  0xcf   : > { %p1958_p1 = pnand %p1957_p9, %p1951_p8 }
  0xd1   : > { %1961 = shalt.err (!%p1958_p1)
}
  0xd2   : > { %1655 = dma.hbm_to_vmem [thread:$0]  (!%p2498_p7), %s2490_s25, 128, %s2492_s21, %s396_s28  }
  0xd3   : > { %s2814_s27 = sld [smem:[#allocation29_spill]] }
  0xd9   : > { %p2815_p6 = scmp.ne.s32.totalorder %s2814_s27, 0 }
  0xda   : > { %s2816_s16 = sld [smem:[#allocation24_spill]] (!%p2815_p6)  ;;  %s2817_s3 = sld [smem:[#allocation27_spill]] (!%p2815_p6) }
  0xdb   : > { %415 = sbr.rel (%p2815_p6) target bundleno = 1470 (0x5be), region = 56 }
  0xe0   : > { %s2530_s22 = sand.u32 (!%p2815_p6), 1, %s2816_s16   ;;  %p2818_p0 = scmp.ne.s32.totalorder (!%p2815_p6), %s2817_s3, 0 }
  0xe1   : > { %s2533_s24 = sshll.u32 (!%p2815_p6), %s2530_s22, 4  ;;  %s418_s5 = scalar_lea.sflag (!%p2815_p6), [#allocation7], %s2530_s22 }
  0xe2   : > { %s421_s15 = scalar_lea.vmem [#allocation6], %s2533_s24 }
  0xe3   : > { %2035 = dma.done.wait (%p2818_p0), %s418_s5, 256  }
  0xe4   : > { %2037 = vsyncadd (%p2818_p0), %s418_s5, 4294967040  ;;  %s426_s25 = sand.u32 1, %s2225_s20   ;;  %s430_s23 = scalar_lea.vmem [#allocation9], %s2533_s24 }
  0xe5   : > { %s427_s21 = scalar_lea.sflag [#allocation10], %s426_s25 }
  0xe6   : > { %2039 = dma.done.wait (%p2818_p0), %s427_s21, 512  }
  0xe7   : > { %2041 = vsyncadd (%p2818_p0), %s427_s21, 4294966784  ;;  %s439_s28 = scalar_lea.vmem [#allocation11], %s2533_s24  ;;  %p2819_p7 = scmp.eq.s32.totalorder %s2225_s20, 0 }
  0xe9   : > { %2043 = dma.done.wait (%p2819_p7), [#allocation13], 1024   ;;  %p2820_p12 = pmov %p2819_p7 }
  0xea   : > { %s452_s4 = sand.u32 1, %s2060_s10  }
  0xeb   : > { %2045 = vsyncadd (%p2820_p12), [#allocation13], 4294966272  ;;  %s2553_s30 = sshll.u32 %s452_s4, 3  ;;  %s453_s1 = scalar_lea.sflag [#allocation16], %s452_s4 }
  0xec   : > { %s456_s13 = scalar_lea.vmem [#allocation15], %s2553_s30 }
  0xed   : > { %2047 = dma.done.wait (%p2469_p10), %s453_s1, 128  }
  0xee   : > { %2049 = vsyncadd (%p2469_p10), %s453_s1, 4294967168  ;;  %s2561_s29 = scalar_lea.vmem [#allocation17], %s2533_s24  ;;  %s2821_s27 = sld [smem:[#allocation25_spill]] }
  0xf4   : > { %p1505_p2 = scmp.ne.s32.totalorder %s2821_s27, 0 }
  0xf5   : > { %v604_v0 = vld [vmem:[#allocation14] sm:$0xff] (!%p1505_p2)  ;;  %v605_v1 = vld [vmem:[#allocation14 + $0x8] sm:$0xff] (!%p1505_p2)  ;;  %v606_v2 = vld [vmem:[#allocation14 + $0x10] sm:$0xff] (!%p1505_p2)  ;;  %vm522_vm0 = vcmask (!%p1505_p2), 261120   ;;  %s2822_s16 = sld [smem:[#allocation36_spill]] (!%p1505_p2)  ;;  %s2823_s25 = sld [smem:[#allocation35_spill]] (!%p1505_p2) }
  0xf6   : > { %513 = sbr.rel (%p1505_p2) target bundleno = 636 (0x27c), region = 84  ;;  %v1610_v3 = vpack.c.bf16 (!%p1505_p2), %v605_v1, %v604_v0  ;;  %v607_v4 = vld [vmem:[#allocation14 + $0x18] sm:$0xff] (!%p1505_p2)  ;;  %v516_v5 = vld [vmem:[%s430_s23] sm:$0xff] (!%p1505_p2)  ;;  %v519_v9 = vld [vmem:[#allocation12 + $0x8] sm:$0xff] (!%p1505_p2)  ;;  %s2106_s21 = smov (!%p1505_p2), 32   ;;  %vm714_vm1 = vcmask (!%p1505_p2), 64512  }
  0xf7   : > { %v1614_v7 = vpack.c.bf16 (!%p1505_p2), %v607_v4, %v606_v2  ;;  %1574 = vmatprep.mubr.msk.f32.mxu1 (!%p1505_p2), %vm522_vm0, %v516_v5  ;;  %v518_v8 = vld [vmem:[#allocation12] sm:$0xff] (!%p1505_p2)  ;;  %v520_v11 = vld [vmem:[#allocation12 + $0x10] sm:$0xff] (!%p1505_p2)  ;;  %v521_v12 = vld [vmem:[#allocation12 + $0x18] sm:$0xff] (!%p1505_p2)  ;;  %s2107_s4 = smov (!%p1505_p2), 120   ;;  %s2108_s1 = smov (!%p1505_p2), 96  }
  0xf8   : > { %1611 = vmatprep.subr.bf16.mxu1 (!%p1505_p2), %v1610_v3  ;;  %v1602_v10 = vpack.c.bf16 (!%p1505_p2), %v519_v9, %v518_v8  ;;  %v514_v13 = vld [vmem:[%s421_s15] sm:$0xff] (!%p1505_p2)  ;;  %v1606_v14 = vpack.c.bf16 (!%p1505_p2), %v521_v12, %v520_v11  ;;  %v517_v16 = vld [vmem:[%s430_s23 + $0x8] sm:$0xff] (!%p1505_p2)  ;;  %s2110_s23 = smov (!%p1505_p2), 112   ;;  %s2111_s27 = smov (!%p1505_p2), 80  }
  0xf9   : > { %1613 = vmatpush3.bf16.msra.mxu1 (!%p1505_p2), %v1610_v3  ;;  %1563 = vmatprep.mubr.msk.f32.mxu0 (!%p1505_p2), %vm522_vm0, %v514_v13  ;;  %v515_v17 = vld [vmem:[%s421_s15 + $0x8] sm:$0xff] (!%p1505_p2)  ;;  %s2109_s15 = smov (!%p1505_p2), 88   ;;  %s2112_s20 = smov (!%p1505_p2), 104  }
  0xfa   : > { %1615 = vmatprep.subr.bf16.mxu1 (!%p1505_p2), %v1614_v7  ;;  %1603 = vmatprep.subr.bf16.mxu0 (!%p1505_p2), %v1602_v10  ;;  %s2113_s6 = smov (!%p1505_p2), 72  }
  0xfb   : > { %v1513_v6 = vld [vmem:[%s2822_s16] ss:$0 sm:$0xff] (!%p1505_p2)  ;;  %1605 = vmatpush3.bf16.msra.mxu0 (!%p1505_p2), %v1602_v10 }
  0xfc   : > { %857 = vst.msk [vmem:[%s2561_s29] sm:$0xff] (!%p1505_p2), %vm522_vm0, %v1513_v6  ;;  %858 = vst.msk [vmem:[%s2561_s29 + $0x8] sm:$0xff] (!%p1505_p2), %vm522_vm0, %v1513_v6  ;;  %v1510_v15 = vld [vmem:[%s2823_s25] ss:$0 sm:$0xff] (!%p1505_p2)  ;;  %1607 = vmatprep.subr.bf16.mxu0 (!%p1505_p2), %v1606_v14 }
  0xfd   : > { %695 = vrot.lane.b32.xlu0 %v1510_v15, %s2106_s21  ;;  %1617 = vmatpush3.bf16.msra.mxu1 %v1614_v7 }
  0xff   : > { %1609 = vmatpush3.bf16.msra.mxu0 %v1606_v14 }
 0x100   : > { %1575 = vmatmul.mubr.msk.f32.vlgmr.msra.gmra.mrb[0].mxu1 %vm522_vm0, %v517_v16 }
 0x102   : > { %1564 = vmatmul.mubr.msk.f32.vlgmr.msra.gmra.mrb[0].mxu0 %vm522_vm0, %v515_v17 }
 0x16f   : > { %v696_v19 = vpop.permute.xlu0 %695 }
 0x1d3   : > { %v1576_v18 = vpop.f32.mrb[0].mxu1 }
 0x1d4   : > { %718 = vst.msk [vmem:[#allocation3 + $0x8] sm:$0xff] %vm714_vm1, %v1576_v18  ;;  %752 = vrot.lane.b32.xlu0 %v1576_v18, %s2107_s4  ;;  %723 = vrot.lane.b32.xlu1 %v1576_v18, %s2108_s1  ;;  %v680_v20 = vpop.f32.mrb[1].mxu1 }
 0x1d5   : > { %717 = vst.msk [vmem:[#allocation3] sm:$0xff] %vm714_vm1, %v680_v20  ;;  %v1565_v21 = vpop.f32.mrb[0].mxu0 }
 0x1d6   : > { %v713_v22 = vmul.f32 0.35355338, %v1565_v21  ;;  %v699_v23 = vadd.f32 %v1565_v21, %v696_v19  ;;  %v595_v24 = vpop.f32.mrb[1].mxu0 }
 0x1d7   : > { %v698_v25 = vadd.f32 %v696_v19, %v595_v24  ;;  %v712_v26 = vmul.f32 0.35355338, %v595_v24 }
 0x1d8   : > { %761 = vrot.lane.b32.xlu0 %v1576_v18, %s2109_s15  ;;  %750 = vrot.lane.b32.xlu1 %v680_v20, %s2107_s4  ;;  %716 = vst.msk [vmem:[#allocation2 + $0x8] sm:$0xff] %vm714_vm1, %v713_v22  ;;  %v1512_v27 = vmul.f32 -1.442695, %v699_v23 }
 0x1d9   : > { %715 = vst.msk [vmem:[#allocation2] sm:$0xff] %vm714_vm1, %v712_v26  ;;  %v1511_v28 = vmul.f32 -1.442695, %v698_v25 }
 0x1da   : > { %1770 = vpow2.f32 %v1512_v27 }
 0x1db   : > { %1772 = vpow2.f32 %v1511_v28 }
 0x1dc   : > { %788 = vrot.lane.b32.xlu0 %v1576_v18, %s2110_s23  ;;  %759 = vrot.lane.b32.xlu1 %v680_v20, %s2109_s15 }
 0x1e0   : > { %797 = vrot.lane.b32.xlu0 %v1576_v18, %s2111_s27  ;;  %786 = vrot.lane.b32.xlu1 %v680_v20, %s2110_s23 }
 0x1e4   : > { %824 = vrot.lane.b32.xlu0 %v1576_v18, %s2112_s20  ;;  %795 = vrot.lane.b32.xlu1 %v680_v20, %s2111_s27  ;;  %v1771_v29 = vpop.eup %1770 }
 0x1e5   : > { %v1773_v30 = vpop.eup %1772  ;;  %v707_v31 = vadd.f32 1.0, %v1771_v29 }
 0x1e6   : > { %v706_v32 = vadd.f32 1.0, %v1773_v30 }
 0x1e7   : > { %1774 = vrcp.f32 %v707_v31 }
 0x1e8   : > { %833 = vrot.lane.b32.xlu0 %v1576_v18, %s2113_s6  ;;  %822 = vrot.lane.b32.xlu1 %v680_v20, %s2112_s20  ;;  %1776 = vrcp.f32 %v706_v32 }
 0x1ec   : > { %831 = vrot.lane.b32.xlu1 %v680_v20, %s2113_s6  ;;  %721 = vrot.lane.b32.xlu0 %v680_v20, %s2108_s1 }
 0x1f0   : > { %743 = vrot.lane.b32.xlu0 %v713_v22, %s2107_s4  ;;  %741 = vrot.lane.b32.xlu1 %v712_v26, %s2107_s4 }
 0x1f1   : > { %v1775_v33 = vpop.eup %1774 }
 0x1f2   : > { %v1777_v34 = vpop.eup %1776 }
 0x1f4   : > { %779 = vrot.lane.b32.xlu0 %v713_v22, %s2110_s23  ;;  %777 = vrot.lane.b32.xlu1 %v712_v26, %s2110_s23 }
 0x1f8   : > { %815 = vrot.lane.b32.xlu0 %v713_v22, %s2112_s20  ;;  %813 = vrot.lane.b32.xlu1 %v712_v26, %s2112_s20 }
 0x1fc   : > { %733 = vrot.lane.b32.xlu0 %v1775_v33, %s2108_s1  ;;  %731 = vrot.lane.b32.xlu1 %v1777_v34, %s2108_s1 }
 0x200   : > { %770 = vrot.lane.b32.xlu0 %v1775_v33, %s2109_s15  ;;  %768 = vrot.lane.b32.xlu1 %v1777_v34, %s2109_s15 }
 0x204   : > { %806 = vrot.lane.b32.xlu0 %v1775_v33, %s2111_s27  ;;  %804 = vrot.lane.b32.xlu1 %v1777_v34, %s2111_s27 }
 0x208   : > { %842 = vrot.lane.b32.xlu0 %v1775_v33, %s2113_s6  ;;  %840 = vrot.lane.b32.xlu1 %v1777_v34, %s2113_s6 }
 0x246   : > { %v753_v35 = vpop.permute.xlu0 %752  ;;  %v724_v36 = vpop.permute.xlu1 %723 }
 0x247   : > { %758 = vst.msk [vmem:[#allocation3 + $0x18] sm:$0xff] %vm714_vm1, %v753_v35  ;;  %728 = vst.msk [vmem:[#allocation4 + $0x8] sm:$0xff] %vm714_vm1, %v724_v36 }
 0x24a   : > { %v762_v37 = vpop.permute.xlu0 %761  ;;  %v751_v38 = vpop.permute.xlu1 %750 }
 0x24b   : > { %767 = vst.msk [vmem:[#allocation4 + $0x18] sm:$0xff] %vm714_vm1, %v762_v37  ;;  %757 = vst.msk [vmem:[#allocation3 + $0x10] sm:$0xff] %vm714_vm1, %v751_v38 }
 0x24e   : > { %v789_v39 = vpop.permute.xlu0 %788  ;;  %v760_v40 = vpop.permute.xlu1 %759 }
 0x24f   : > { %794 = vst.msk [vmem:[#allocation3 + $0x28] sm:$0xff] %vm714_vm1, %v789_v39  ;;  %766 = vst.msk [vmem:[#allocation4 + $0x10] sm:$0xff] %vm714_vm1, %v760_v40 }
 0x252   : > { %v798_v41 = vpop.permute.xlu0 %797  ;;  %v787_v42 = vpop.permute.xlu1 %786 }
 0x253   : > { %803 = vst.msk [vmem:[#allocation4 + $0x28] sm:$0xff] %vm714_vm1, %v798_v41  ;;  %793 = vst.msk [vmem:[#allocation3 + $0x20] sm:$0xff] %vm714_vm1, %v787_v42 }
 0x256   : > { %v825_v43 = vpop.permute.xlu0 %824  ;;  %v796_v44 = vpop.permute.xlu1 %795 }
 0x257   : > { %830 = vst.msk [vmem:[#allocation3 + $0x38] sm:$0xff] %vm714_vm1, %v825_v43  ;;  %802 = vst.msk [vmem:[#allocation4 + $0x20] sm:$0xff] %vm714_vm1, %v796_v44 }
 0x25a   : > { %v834_v45 = vpop.permute.xlu0 %833  ;;  %v823_v46 = vpop.permute.xlu1 %822 }
 0x25b   : > { %839 = vst.msk [vmem:[#allocation4 + $0x38] sm:$0xff] %vm714_vm1, %v834_v45  ;;  %829 = vst.msk [vmem:[#allocation3 + $0x30] sm:$0xff] %vm714_vm1, %v823_v46 }
 0x25e   : > { %v832_v47 = vpop.permute.xlu1 %831  ;;  %v722_v48 = vpop.permute.xlu0 %721 }
 0x25f   : > { %838 = vst.msk [vmem:[#allocation4 + $0x30] sm:$0xff] %vm714_vm1, %v832_v47  ;;  %727 = vst.msk [vmem:[#allocation4] sm:$0xff] %vm714_vm1, %v722_v48 }
 0x262   : > { %v744_v49 = vpop.permute.xlu0 %743  ;;  %v742_v50 = vpop.permute.xlu1 %741 }
 0x263   : > { %749 = vst.msk [vmem:[#allocation2 + $0x18] sm:$0xff] %vm714_vm1, %v744_v49  ;;  %748 = vst.msk [vmem:[#allocation2 + $0x10] sm:$0xff] %vm714_vm1, %v742_v50 }
 0x266   : > { %v780_v51 = vpop.permute.xlu0 %779  ;;  %v778_v52 = vpop.permute.xlu1 %777 }
 0x267   : > { %785 = vst.msk [vmem:[#allocation2 + $0x28] sm:$0xff] %vm714_vm1, %v780_v51  ;;  %784 = vst.msk [vmem:[#allocation2 + $0x20] sm:$0xff] %vm714_vm1, %v778_v52 }
 0x26a   : > { %v816_v53 = vpop.permute.xlu0 %815  ;;  %v814_v54 = vpop.permute.xlu1 %813 }
 0x26b   : > { %821 = vst.msk [vmem:[#allocation2 + $0x38] sm:$0xff] %vm714_vm1, %v816_v53  ;;  %820 = vst.msk [vmem:[#allocation2 + $0x30] sm:$0xff] %vm714_vm1, %v814_v54 }
 0x26e   : > { %v734_v55 = vpop.permute.xlu0 %733  ;;  %v732_v56 = vpop.permute.xlu1 %731 }
 0x26f   : > { %738 = vst.msk [vmem:[#allocation5 + $0x8] sm:$0xff] %vm714_vm1, %v734_v55  ;;  %737 = vst.msk [vmem:[#allocation5] sm:$0xff] %vm714_vm1, %v732_v56 }
 0x272   : > { %v771_v57 = vpop.permute.xlu0 %770  ;;  %v769_v58 = vpop.permute.xlu1 %768 }
 0x273   : > { %776 = vst.msk [vmem:[#allocation5 + $0x18] sm:$0xff] %vm714_vm1, %v771_v57  ;;  %775 = vst.msk [vmem:[#allocation5 + $0x10] sm:$0xff] %vm714_vm1, %v769_v58 }
 0x276   : > { %v807_v59 = vpop.permute.xlu0 %806  ;;  %v805_v60 = vpop.permute.xlu1 %804 }
 0x277   : > { %812 = vst.msk [vmem:[#allocation5 + $0x28] sm:$0xff] %vm714_vm1, %v807_v59  ;;  %811 = vst.msk [vmem:[#allocation5 + $0x20] sm:$0xff] %vm714_vm1, %v805_v60 }
 0x27a   : > { %v843_v61 = vpop.permute.xlu0 %842  ;;  %v841_v62 = vpop.permute.xlu1 %840 }
 0x27b   : > { %848 = vst.msk [vmem:[#allocation5 + $0x38] sm:$0xff] %vm714_vm1, %v843_v61  ;;  %847 = vst.msk [vmem:[#allocation5 + $0x30] sm:$0xff] %vm714_vm1, %v841_v62 }
 0x27c PF: > { %s2824_s16 = sld [smem:[#allocation25_spill]]  ;;  %vm877_vm2 = vcmask 64512   ;;  %v2114_v63 = vmov 0.0   ;;  %vm2115_vm3 = vmmov 0   ;;  %v872_v4 = vld [vmem:[%s439_s28] sm:$0xff]  ;;  %v873_v6 = vld [vmem:[%s439_s28 + $0x8] sm:$0xff] }
 0x27d   : > { %1577 = vmatprep.subr.mxu0 %v2114_v63  ;;  %1579 = vmatprep.mubr.msk.f32.mxu0 %vm2115_vm3, %v2114_v63  ;;  %s2825_s1 = sld [smem:[#allocation32_spill]]  ;;  %v1200_v29 = vld [vmem:[%s456_s13] sm:$0xff]  ;;  %s2826_s24 = sld [smem:[#allocation26_spill]]  ;;  %vm1286_vm4 = vcmask 261120  }
 0x27e   : > { %1582 = vmatprep.subr.mxu1 %v2114_v63  ;;  %1584 = vmatprep.mubr.msk.f32.mxu1 %vm2115_vm3, %v2114_v63  ;;  %s2827_s30 = sld [smem:[#allocation30_spill]]  ;;  %s1303_s23 = sshll.u32 %s2561_s29, 4  ;;  %s2671_s23 = int_to_ptr.vmem [resolvable:$true] %s1303_s23 }
 0x27f   : > { %s2828_s6 = sld [smem:[#allocation37_spill]] }
 0x282   : > { %s2631_s3 = sshll.u32 %s2824_s16, 4  ;;  %v1283_v44 = vld [vmem:[%s2561_s29 + $0x8] sm:$0xff]  ;;  %v1282_v45 = vld [vmem:[%s2561_s29] sm:$0xff] }
 0x283   : > { %s863_s5 = scalar_lea.vmem [#allocation3], %s2631_s3  ;;  %s860_s25 = scalar_lea.vmem [#allocation2], %s2631_s3  ;;  %v874_v5 = vld [vmem:[%s2825_s1] sm:$0xff] }
 0x284   : > { %v864_v0 = vld [vmem:[%s863_s5] sm:$0xff]  ;;  %v865_v1 = vld [vmem:[%s863_s5 + $0x8] sm:$0xff]  ;;  %v875_v7 = vadd.f32 %v874_v5, %v872_v4  ;;  %v876_v8 = vadd.f32 %v874_v5, %v873_v6  ;;  %s866_s15 = scalar_lea.vmem [#allocation4], %s2631_s3  ;;  %s869_s28 = scalar_lea.vmem [#allocation5], %s2631_s3 }
 0x285   : > { %1578 = vmatpush3.xpose.msk.msra.mxu0 %vm877_vm2, %v864_v0  ;;  %v861_v2 = vld [vmem:[%s860_s25] sm:$0xff]  ;;  %1583 = vmatpush3.xpose.msk.msra.mxu1 %vm877_vm2, %v865_v1  ;;  %v862_v3 = vld [vmem:[%s860_s25 + $0x8] sm:$0xff]  ;;  %s1531_s13 = sshll.u32 %s2826_s24, 8  ;;  %s1290_s3 = scalar_lea.sflag [#allocation8], %s2530_s22 }
 0x286   : > { %1587 = vmatprep.subr.mxu0 %v2114_v63  ;;  %1592 = vmatprep.subr.mxu1 %v2114_v63  ;;  %v867_v17 = vld [vmem:[%s866_s15] sm:$0xff]  ;;  %v868_v18 = vld [vmem:[%s866_s15 + $0x8] sm:$0xff]  ;;  %s2669_s16 = scalar_lea.hbm %s2828_s6, %s1531_s13  ;;  %s1962_s5 = scalar_lea.vmem %s2671_s23, 256 }
 0x287   : > { %v870_v33 = vld [vmem:[%s869_s28] sm:$0xff]  ;;  %v871_v39 = vld [vmem:[%s869_s28 + $0x8] sm:$0xff]  ;;  %p1963_p10 = scmp.ne.s32.totalorder %s2671_s23, %s1962_s5  ;;  %p2829_p13 = scmp.ne.s32.totalorder %s2827_s30, 0 }
 0x288   : > { %1580 = vmatmul.mubr.msk.f32.vlgmr.msra.gmra.mrb[0].mxu0 %vm877_vm2, %v861_v2  ;;  %1585 = vmatmul.mubr.msk.f32.vlgmr.msra.gmra.mrb[0].mxu1 %vm877_vm2, %v862_v3  ;;  %s2116_s25 = smov [#allocation17]  }
 0x289   : > { %1589 = vmatprep.mubr.msk.f32.mxu0 %vm2115_vm3, %v2114_v63  ;;  %1594 = vmatprep.mubr.msk.f32.mxu1 %vm2115_vm3, %v2114_v63  ;;  %p1964_p4 = pnand %p1963_p10, %p2829_p13  ;;  %s1966_s21 = sshll.u32 %s2116_s25, 4  ;;  %s1967_s21 = int_to_ptr.vmem [resolvable:$false] %s1966_s21 }
 0x28a   : > { %1588 = vmatpush3.msra.mxu0 %v867_v17  ;;  %1593 = vmatpush3.msra.mxu1 %v868_v18  ;;  %s1968_s4 = scalar_lea.vmem %s1967_s21, 512  ;;  %p1969_p8 = scmp.lt.s32.totalorder %s2671_s23, %s1967_s21 }
 0x28b   : > { %1597 = vmatprep.subr.mxu0 %v1200_v29  ;;  %p1965_p11 = pneg %p1964_p4  ;;  %p1970_p3 = scmp.lt.s32.totalorder %s1968_s4, %s1962_s5 }
 0x28d   : > { %p1971_p5 = por %p1970_p3, %p1969_p8 }
 0x28f   : > { %p1972_p9 = pnand %p1971_p5, %p1965_p11 }
 0x35b   : > { %v950_v9 = vpop.f32.mrb[0].mxu0  ;;  %v1026_v10 = vpop.f32.mrb[0].mxu1 }
 0x35c   : > { %v951_v11 = vadd.f32 %v950_v9, %v875_v7  ;;  %v1581_v12 = vpop.f32.mrb[1].mxu0  ;;  %v1027_v13 = vadd.f32 %v1026_v10, %v876_v8  ;;  %v1586_v14 = vpop.f32.mrb[1].mxu1 }
 0x35e   : > { %v1030_v15 = vsel %vm877_vm2, %v951_v11, -inf  ;;  %v1033_v16 = vsel %vm877_vm2, %v1027_v13, -inf }
 0x35f   : > { %1031 = vmax.xlane.f32.xlu0 %v1030_v15 }
 0x363   : > { %1034 = vmax.xlane.f32.xlu0 %v1033_v16 }
 0x3ec   : > { %v1032_v19 = vpop.xlane.xlu0 %1031 }
 0x3ed   : > { %v1036_v20 = vsub.f32 %v951_v11, %v1032_v19 }
 0x3ef   : > { %v1038_v21 = vmul.f32 1.442695, %v1036_v20 }
 0x3f0   : > { %v1035_v22 = vpop.xlane.xlu0 %1034 }
 0x3f1   : > { %1778 = vpow2.f32 %v1038_v21  ;;  %v1037_v23 = vsub.f32 %v1027_v13, %v1035_v22 }
 0x3f3   : > { %v1040_v24 = vmul.f32 1.442695, %v1037_v23 }
 0x3f5   : > { %1780 = vpow2.f32 %v1040_v24 }
 0x3fb   : > { %v1779_v25 = vpop.eup %1778 }
 0x3fc   : > { %1590 = vmatmul.mubr.msk.f32.vlgmr.msra.gmra.mrb[2].mxu0 %vm877_vm2, %v1779_v25  ;;  %v1042_v26 = vsel %vm877_vm2, %v1779_v25, 0.0 }
 0x3fd   : > { %1043 = vadd.xlane.f32.xlu1 %v1042_v26  ;;  %1598 = vmatpush3.msra.mxu0 %v1200_v29 }
 0x3ff   : > { %v1781_v27 = vpop.eup %1780 }
 0x400   : > { %1595 = vmatmul.mubr.msk.f32.vlgmr.msra.gmra.mrb[2].mxu1 %vm877_vm2, %v1781_v27  ;;  %v1045_v28 = vsel %vm877_vm2, %v1781_v27, 0.0 }
 0x401   : > { %1046 = vadd.xlane.f32.xlu1 %v1045_v28 }
 0x48a   : > { %v1044_v30 = vpop.xlane.xlu1 %1043 }
 0x48b   : > { %1782 = vrcp.f32 %v1044_v30 }
 0x48e   : > { %v1047_v31 = vpop.xlane.xlu1 %1046 }
 0x48f   : > { %1784 = vrcp.f32 %v1047_v31 }
 0x495   : > { %v1783_v32 = vpop.eup %1782 }
 0x499   : > { %v1785_v38 = vpop.eup %1784 }
 0x4cf   : > { %v1117_v34 = vpop.f32.mrb[2].mxu0 }
 0x4d0   : > { %v1196_v35 = vmul.f32 %v1783_v32, %v1117_v34  ;;  %v1591_v36 = vpop.f32.mrb[3].mxu0 }
 0x4d2   : > { %v1198_v37 = vmul.f32 %v1196_v35, %v870_v33 }
 0x4d3   : > { %v1190_v40 = vpop.f32.mrb[2].mxu1 }
 0x4d4   : > { %v1197_v41 = vmul.f32 %v1785_v38, %v1190_v40  ;;  %v1596_v42 = vpop.f32.mrb[3].mxu1  ;;  %1599 = vmatprep.mubr.msk.f32.mxu0 %vm877_vm2, %v1198_v37 }
 0x4d6   : > { %v1199_v43 = vmul.f32 %v1197_v41, %v871_v39 }
 0x4d8   : > { %1600 = vmatmul.mubr.msk.f32.vlgmr.msra.gmra.mrb[4].mxu0 %vm877_vm2, %v1199_v43 }
 0x5ab   : > { %v1601_v46 = vpop.f32.mrb[4].mxu0 }
 0x5ac   : > { %v1285_v47 = vadd.f32 %v1601_v46, %v1283_v44  ;;  %v1273_v48 = vpop.f32.mrb[5].mxu0 }
 0x5ad   : > { %v1284_v49 = vadd.f32 %v1282_v45, %v1273_v48 }
 0x5ae   : > { %1288 = vst.msk [vmem:[%s2561_s29 + $0x8] sm:$0xff] %vm1286_vm4, %v1285_v47 }
 0x5af   : > { %1287 = vst.msk [vmem:[%s2561_s29] sm:$0xff] %vm1286_vm4, %v1284_v49 }
 0x5b0   : > { %1975 = shalt.err (!%p1972_p9)
}
 0x5b1   : > { %s1976_s29 = scalar_lea.hbm %s2669_s16, 256  ;;  %s1980_s24 = scalar_lea.hbm %s2828_s6, 512 }
 0x5b2   : > { %p1977_p1 = scmp.ne.s32.totalorder %s2669_s16, %s1976_s29  ;;  %p1981_p7 = scmp.lt.u32.totalorder %s2669_s16, %s2828_s6 }
 0x5b3   : > { %p1982_p12 = scmp.lt.u32.totalorder %s1980_s24, %s1976_s29  ;;  %p1984_p10 = scmp.lt.u32.totalorder %s1976_s29, %s2669_s16 }
 0x5b4   : > { %p1978_p6 = pnand %p1977_p1, %p2829_p13 }
 0x5b5   : > { %p1983_p2 = por %p1982_p12, %p1981_p7 }
 0x5b6   : > { %p1979_p0 = pneg %p1978_p6 }
 0x5b7   : > { %p1985_p4 = por %p1984_p10, %p1983_p2 }
 0x5b9   : > { %p1986_p11 = pnand %p1985_p4, %p1979_p0 }
 0x5bb   : > { %1989 = shalt.err (!%p1986_p11)
}
 0x5bc   : > { %s2117_s27 = smov 128   ;;  %s2118_s20 = smov 8  }
 0x5bd   : > { %1634 = dma.vmem_to_hbm [thread:$0]  (%p2829_p13), %s2671_s23, 256, %s2669_s16, %s1290_s3, %s2117_s27, %s2117_s27, %s2118_s20  }
 0x5be PF: > { %s2830_s5 = sld [smem:[#allocation23_spill]]  ;;  %s2831_s25 = sld [smem:[#allocation28_spill]] }
 0x5bf   : > { %p1665_p8 = scmp.ge.s32.totalorder %s2096_s19, 2 }
 0x5c4   : > { %s1318_s21 = sand.u32 1, %s2830_s5   ;;  %p2832_p3 = scmp.ne.s32.totalorder %s2831_s25, 0 }
 0x5c5   : > { %s1319_s4 = scalar_lea.sflag [#allocation8], %s1318_s21 }
 0x5c6   : > { %p1657_p5 = pnand %p1665_p8, %p2832_p3 }
 0x5c8   : > { %2051 = dma.done.wait (!%p1657_p5), %s1319_s4, 256  }
 0x5c9   : > { %2053 = vsyncadd (!%p1657_p5), %s1319_s4, 4294967040  ;;  %s32_s19 = sadd.s32 1, %s2096_s19   ;;  %s2833_s29 = sld [smem:[#allocation24_spill]] }
 0x5ca   : > { %p29_p9 = scmp.ge.s32.totalorder %s32_s19, 10   ;;  %s2834_s22 = smov %s2485_s12 }
 0x5cb   : > { %s2835_s30 = smov %s2060_s10  ;;  %s2836_s10 = smov %s2064_s11 }
 0x5cc   : > { %s2837_s11 = smov %s2477_s8  ;;  %s2839_s13 = smov %s2076_s14 }
 0x5cd   : > { %s2840_s14 = smov %s2834_s22  ;;  %s2841_s15 = smov %s2088_s17 }
 0x5ce   : > { %s2842_s16 = smov %s2092_s18  ;;  %s2843_s17 = smov %s2846_s26 }
 0x5cf   : > { %s2838_s12 = smov %s2833_s29  ;;  %s2844_s18 = smov %s2850_s9 }
 0x5d0   :  { %31 = sbr.rel (!%p29_p9) target bundleno = 22 (0x16), region = 166 }
 0x5d7   :  { %1324 = vsyncpa [#allocation7], 1 }
 0x5d8   :  { %1326 = vsyncpa [#allocation7 + $0x1], 1 }
 0x5d9   :  { %1327 = vsyncpa [#allocation10], 1 }
 0x5da   :  { %1329 = vsyncpa [#allocation10 + $0x1], 1 }
 0x5db   :  { %1330 = vsyncpa [#allocation13], 1 }
 0x5dc   :  { %1331 = vsyncpa [#allocation16], 1 }
 0x5dd   :  { %1333 = vsyncpa [#allocation16 + $0x1], 1 }
 0x5de   :  { %1334 = vsyncpa [#allocation8], 1 }
 0x5df   :  { %1336 = vsyncpa [#allocation8 + $0x1], 1 }

</bundles_post_ra>
